<compile_context>
chip_gen: v5e
topology: v5e:2x2
jax: 0.10.0
libtpu: 0.0.40
codegen_flags: <defaults>
</compile_context>

<pallas_src>
import functools

import jax
import jax.numpy as jnp
from jax.experimental import pallas as pl
from jax.experimental.pallas import tpu as pltpu


def _round_up(x, m):
    return ((x + m - 1) // m) * m


# ----------------------------------------------------------------------------
# Fused GRCL kernel: one grid step == one chunk of images, resident in VMEM
# ----------------------------------------------------------------------------
def _grcl_fused_kernel(u_ref, mask_ref, wgf_ref, wf_ref, wgr_ref, wr_ref,
                       bn_init_ref, bn_units_ref,            # inputs
                       out_ref,                              # output
                       h_ref, wgfu_ref, wfu_ref,             # VMEM scratch
                       *, N, GP, shifts, num_iter, compute_dtype, state_dtype):
    cdt = compute_dtype

    def mm(lhs, rhs):
        return jnp.dot(lhs.astype(cdt), rhs.astype(cdt),
                       preferred_element_type=jnp.float32)

    def conv1x1(src_ref, w_ref_):
        return mm(src_ref[GP:GP + N, :], w_ref_[...])

    def conv_kxk(src_ref, w_ref_):
        # kxk conv == sum over packed-row shifts of dense (N,128)@(128,128)
        # matmuls (lane shifts are pre-folded into the stacked weights).
        acc = None
        for t, dr in enumerate(shifts):
            r0 = GP + dr
            term = mm(src_ref[r0:r0 + N, :], w_ref_[t])
            acc = term if acc is None else acc + term
        return acc

    mask = mask_ref[...]                                      # (N,128) f32

    # ---- input convs (once per chunk, reused by every iteration) -----------
    wgfu_ref[...] = mm(u_ref[GP:GP + N, :], wgf_ref[...]).astype(state_dtype)
    wfu = conv_kxk(u_ref, wf_ref)
    wfu_ref[...] = wfu.astype(state_dtype)

    # ---- zero ONLY the guard bands of h (interior is fully overwritten) -----
    h_ref[0:GP, :] = jnp.zeros((GP, 128), state_dtype)
    h_ref[GP + N:, :] = jnp.zeros((GP, 128), state_dtype)

    # ---- h0 = relu(BN_x_init(wf_u)), re-masked to the interior --------------
    h0 = jnp.maximum(wfu * bn_init_ref[0:1, :] + bn_init_ref[1:2, :], 0.0)
    h_ref[GP:GP + N, :] = (h0 * mask).astype(state_dtype)

    # ---- GRCL recurrence, fully fused (h never leaves VMEM) -----------------
    # TODO(synk): switch to lax.fori_loop with dynamic bn_units indexing if
    # num_iteration grows beyond ~4 (bounds code size / vreg live ranges).
    for i in range(num_iter):
        sc = [bn_units_ref[i, j, 0:1, :] for j in range(5)]   # bound once/iter
        sh = [bn_units_ref[i, j, 1:2, :] for j in range(5)]
        wgr_x = conv1x1(h_ref, wgr_ref)
        wr_x = conv_kxk(h_ref, wr_ref)
        wgfu = wgfu_ref[...].astype(jnp.float32)
        wfu_i = wfu_ref[...].astype(jnp.float32)
        G = jax.nn.sigmoid((wgfu * sc[0] + sh[0]) + (wgr_x * sc[1] + sh[1]))
        x = jnp.maximum((wfu_i * sc[2] + sh[2]) +
                        ((wr_x * sc[3] + sh[3]) * G) * sc[4] + sh[4], 0.0)
        h_ref[GP:GP + N, :] = (x * mask).astype(state_dtype)   # keep pad ring 0

    out_ref[...] = h_ref[GP:GP + N, :].astype(out_ref.dtype)   # lane-dense store


# ----------------------------------------------------------------------------
# Wrapper: layout prep (packing, weight folding) is cheap one-time XLA glue
# ----------------------------------------------------------------------------
def _choose_images_per_block(B, Rp, C, budget_bytes=6 << 20):
    per_image = 4 * Rp * C * 4                 # u + h + wgf_u + wf_u (f32)
    by_vmem = max(1, budget_bytes // max(per_image, 1))
    if B >= 2:
        return int(max(1, min(by_vmem, B // 2)))   # keep >=2 chunks (v7x 2 TCs)
    return 1


def grcl_forward(x, params, *, compute_dtype=jnp.float32,
                 state_dtype=jnp.float32, images_per_block=None,
                 data_format="NCHW"):
    if data_format == "NCHW":
        B, Cin, H, W = x.shape
        x_nhwc = jnp.transpose(x, (0, 2, 3, 1))
    else:                                       # NHWC passthrough (no transposes)
        B, H, W, Cin = x.shape
        x_nhwc = x

    pad = int(params['pad'])
    ksize = int(params['ksize'])
    num_iter = int(params['num_iteration'])
    C = params['wf_u'].shape[-1]
    K2 = ksize * ksize
    assert params['wf_u'].shape == (ksize, ksize, Cin, C)
    assert ksize == 2 * pad + 1, "GRCL requires 'same' convs (ksize == 2*pad+1)"
    assert 128 % C == 0 and Cin <= C, (
        "packed layout requires 128 % Cout == 0 and Cin <= Cout")

    P = 128 // C                                # spatial positions per lane row
    LANES = P * C                               # == 128
    Hp, Wp = H + 2 * pad, W + 2 * pad
    Rp = Hp * Wp
    M = pad * (Wp + 1)                          # max |row shift| of any tap
    GP = _round_up((M + P - 1) // P + 2, 8)     # packed guard rows at each end

    ipb = images_per_block or _choose_images_per_block(B, Rp, C)
    nchunks = -(-B // ipb)
    B_pad = nchunks * ipb
    rows = ipb * Rp                             # unpacked rows per chunk
    ROWS4 = _round_up(rows, 8 * P)              # -> packed rows multiple of 8
    N = ROWS4 // P
    NP = N + 2 * GP

    # ---- input: zero-pad spatially + channels, stack per chunk, pack --------
    x_nhwc = x_nhwc.astype(jnp.float32)
    if B_pad != B:
        x_nhwc = jnp.pad(x_nhwc, ((0, B_pad - B), (0, 0), (0, 0), (0, 0)))
    xp = jnp.pad(x_nhwc, ((0, 0), (pad, pad), (pad, pad), (0, C - Cin)))
    u = xp.reshape(nchunks, rows, C)
    u = jnp.pad(u, ((0, 0), (0, ROWS4 - rows), (0, 0)))
    u = u.reshape(nchunks, N, LANES)
    u = jnp.pad(u, ((0, 0), (GP, GP), (0, 0))).astype(compute_dtype)

    # ---- interior mask, precomputed full-width (no in-kernel broadcasts) ----
    rr = jnp.arange(rows, dtype=jnp.int32) % Rp
    yy, xx = rr // Wp, rr % Wp
    interior = ((yy >= pad) & (yy < pad + H) &
                (xx >= pad) & (xx < pad + W)).astype(jnp.float32)
    interior = jnp.pad(interior, (0, ROWS4 - rows))
    mask = jnp.repeat(interior, C).reshape(N, LANES)

    # ---- conv weights folded into shifted block-diagonal (128,128) RHS ------
    eye_p = jnp.eye(P, dtype=jnp.float32)

    def block_diag(w):                          # (ci, C) -> (128, 128)
        wp = jnp.zeros((C, C), jnp.float32).at[:w.shape[0], :].set(w)
        return jnp.kron(eye_p, wp)

    offs = [(ky - pad) * Wp + (kx - pad) for ky in range(ksize)
            for kx in range(ksize)]

    def fold_kxk(w_taps):                       # (K2, ci, C) -> {dr: (128,128)}
        terms = {}
        for t, off in enumerate(offs):
            dr, dl = divmod(off * C, LANES)
            bd = block_diag(w_taps[t])
            if dl == 0:
                pieces = [(dr, bd)]
            else:
                canvas = jnp.zeros((2 * LANES, LANES), jnp.float32)
                canvas = canvas.at[dl:dl + LANES, :].set(bd)
                pieces = [(dr, canvas[:LANES]), (dr + 1, canvas[LANES:])]
            for d, piece in pieces:
                terms[d] = piece if d not in terms else terms[d] + piece
        return terms

    terms_f = fold_kxk(params['wf_u'].reshape(K2, Cin, C))
    terms_r = fold_kxk(params['wr_x'].reshape(K2, C, C))
    shifts = tuple(sorted(terms_f))             # identical key set for both
    NS = len(shifts)
    w_f = jnp.stack([terms_f[d] for d in shifts]).astype(compute_dtype)
    w_r = jnp.stack([terms_r[d] for d in shifts]).astype(compute_dtype)
    w_gf = block_diag(params['wgf_u'].reshape(Cin, C)).astype(compute_dtype)
    w_gr = block_diag(params['wgr_x'].reshape(C, C)).astype(compute_dtype)

    # folded (inference) BN tables, tiled to the packed lane width
    bn_init = jnp.tile(params['bn_x_init'], (1, P)).astype(jnp.float32)
    bn_units = jnp.tile(params['bn_units'], (1, 1, 1, P)).astype(jnp.float32)

    # ---- right-sized VMEM limit (working set + headroom, << 64 MiB) ---------
    sdb = jnp.dtype(state_dtype).itemsize
    cdb = jnp.dtype(compute_dtype).itemsize
    ws = ((NP + 2 * N) * 128 * sdb              # h + wgf_u + wf_u scratch
          + 2 * NP * 128 * cdb                  # double-buffered input block
          + 2 * N * 128 * 4                     # double-buffered output block
          + (2 * NS + 2) * 128 * 128 * cdb      # folded conv weights
          + (N + num_iter * 10 + 2) * 128 * 4)  # mask + BN tables
    vmem_limit = int(min(max(2 * ws + (2 << 20), 8 << 20), 48 << 20))

    kernel = functools.partial(
        _grcl_fused_kernel, N=N, GP=GP, shifts=shifts, num_iter=num_iter,
        compute_dtype=compute_dtype, state_dtype=state_dtype)

    out = pl.pallas_call(
        kernel,
        out_shape=jax.ShapeDtypeStruct((nchunks, N, 128), jnp.float32),
        grid=(nchunks,),
        in_specs=[
            pl.BlockSpec((None, NP, 128), lambda g: (g, 0, 0)),           # u
            pl.BlockSpec((N, 128), lambda g: (0, 0)),                     # mask
            pl.BlockSpec((128, 128), lambda g: (0, 0)),                   # w_gf
            pl.BlockSpec((NS, 128, 128), lambda g: (0, 0, 0)),            # w_f
            pl.BlockSpec((128, 128), lambda g: (0, 0)),                   # w_gr
            pl.BlockSpec((NS, 128, 128), lambda g: (0, 0, 0)),            # w_r
            pl.BlockSpec((2, 128), lambda g: (0, 0)),                     # bn_init
            pl.BlockSpec((num_iter, 5, 2, 128), lambda g: (0, 0, 0, 0)),  # bn_units
        ],
        out_specs=pl.BlockSpec((None, N, 128), lambda g: (g, 0, 0)),
        scratch_shapes=[
            pltpu.VMEM((NP, 128), state_dtype),   # recurrent state h (+ guards)
            pltpu.VMEM((N, 128), state_dtype),    # wgf_u (resident across iters)
            pltpu.VMEM((N, 128), state_dtype),    # wf_u  (resident across iters)
        ],
        compiler_params=pltpu.CompilerParams(
            dimension_semantics=("parallel",),
            vmem_limit_bytes=vmem_limit),
    )(u, mask, w_gf, w_f, w_gr, w_r, bn_init, bn_units)

    # ---- unpack: (nchunks, N, 128) -> (B, H, W, C) interior ------------------
    h = out.reshape(nchunks, ROWS4, C)[:, :rows, :]
    h = h.reshape(B_pad, Hp, Wp, C)[:B, pad:pad + H, pad:pad + W, :]
    if data_format == "NCHW":
        return jnp.transpose(h, (0, 3, 1, 2))
    return h


# ----------------------------------------------------------------------------
# Deterministic parameter init (shapes match GRCL.__init__, BN folded = eval)
# ----------------------------------------------------------------------------
def init_params(key, cin, cout, ksize, pad, num_iter, eps=1e-5):
    def conv_w(k_, kh, kw, ci, co):
        fan_in = ci * kh * kw
        return (jax.random.normal(k_, (kh, kw, ci, co), jnp.float32)
                / jnp.sqrt(jnp.float32(fan_in)))

    def bn_fold(k_, c):
        kg, kb, km, kv = jax.random.split(k_, 4)
        gamma = 1.0 + 0.1 * jax.random.normal(kg, (c,), jnp.float32)
        beta = 0.1 * jax.random.normal(kb, (c,), jnp.float32)
        mean = 0.1 * jax.random.normal(km, (c,), jnp.float32)
        var = jnp.abs(jax.random.normal(kv, (c,), jnp.float32)) + 0.5
        scale = gamma * jax.lax.rsqrt(var + eps)
        shift = beta - mean * scale
        return jnp.stack([scale, shift])                  # (2, c)

    keys = jax.random.split(key, 6)
    bn_units = jnp.stack([
        jnp.stack([bn_fold(jax.random.fold_in(keys[5], i * 5 + j), cout)
                   for j in range(5)])
        for i in range(num_iter)])                        # (num_iter, 5, 2, C)
    return {
        'wgf_u': conv_w(keys[0], 1, 1, cin, cout),
        'wgr_x': conv_w(keys[1], 1, 1, cout, cout),
        'wf_u': conv_w(keys[2], ksize, ksize, cin, cout),
        'wr_x': conv_w(keys[3], ksize, ksize, cout, cout),
        'bn_x_init': bn_fold(keys[4], cout),
        'bn_units': bn_units,
        'pad': pad,
        'ksize': ksize,
        'num_iteration': num_iter,
    }


# ----------------------------------------------------------------------------
# Pure-JAX reference (verification only)
# ----------------------------------------------------------------------------
def grcl_forward_ref(x_nchw, params):
    def conv(x, w, pad):
        return jax.lax.conv_general_dilated(
            x, w, window_strides=(1, 1), padding=[(pad, pad), (pad, pad)],
            dimension_numbers=('NHWC', 'HWIO', 'NHWC'))

    def bn(v, sp):
        return v * sp[0] + sp[1]

    x = jnp.transpose(x_nchw, (0, 2, 3, 1))
    pad = params['pad']
    wgf_u = conv(x, params['wgf_u'], 0)
    wf_u = conv(x, params['wf_u'], pad)
    h = jax.nn.relu(bn(wf_u, params['bn_x_init']))
    for i in range(params['num_iteration']):
        p = params['bn_units'][i]
        wgr_x = conv(h, params['wgr_x'], 0)
        wr_x = conv(h, params['wr_x'], pad)
        G = jax.nn.sigmoid(bn(wgf_u, p[0]) + bn(wgr_x, p[1]))
        h = jax.nn.relu(bn(wf_u, p[2]) + bn(bn(wr_x, p[3]) * G, p[4]))
    return jnp.transpose(h, (0, 3, 1, 2))


# ----------------------------------------------------------------------------
if __name__ == "__main__":
    key = jax.random.PRNGKey(0)
    B, Cin, H, W = 2, 4, 16, 16
    Cout, num_iter, ksize, pad = 32, 2, 3, 1

    kx, kp = jax.random.split(key)
    x = jax.random.normal(kx, (B, Cin, H, W), jnp.float32)
    params = init_params(kp, Cin, Cout, ksize, pad, num_iter)

    out = grcl_forward(x, params)
    out = jax.block_until_ready(out)
    assert out.shape == (B, Cout, H, W), out.shape

    ref = jax.block_until_ready(grcl_forward_ref(x, params))
    assert jnp.allclose(out, ref, atol=2e-3, rtol=2e-3), (
        float(jnp.max(jnp.abs(out - ref))))

    print("KERNEL_OK")
</pallas_src>

<mosaic_0001>
module attributes {stable_mosaic.version = 11 : i64} {
  func.func @_grcl_fused_kernel(%arg0: i32, %arg1: memref<1x104x128xf32, #tpu.memory_space<vmem>>, %arg2: memref<88x128xf32, #tpu.memory_space<vmem>>, %arg3: memref<128x128xf32, #tpu.memory_space<vmem>>, %arg4: memref<7x128x128xf32, #tpu.memory_space<vmem>>, %arg5: memref<128x128xf32, #tpu.memory_space<vmem>>, %arg6: memref<7x128x128xf32, #tpu.memory_space<vmem>>, %arg7: memref<2x128xf32, #tpu.memory_space<vmem>>, %arg8: memref<2x5x2x128xf32, #tpu.memory_space<vmem>>, %arg9: memref<1x88x128xf32, #tpu.memory_space<vmem>>, %arg10: memref<104x128xf32, #tpu.memory_space<vmem>>, %arg11: memref<88x128xf32, #tpu.memory_space<vmem>>, %arg12: memref<88x128xf32, #tpu.memory_space<vmem>>) attributes {dimension_semantics = [#tpu.dimension_semantics<parallel>], iteration_bounds = array<i64: 2>, scalar_prefetch = 0 : i64, scratch_operands = 3 : i64, tpu.core_type = #tpu.core_type<tc>, window_params = [{transform_indices = @transform_0, window_bounds = array<i64: 1, 104, 128>}, {pipeline_mode = #tpu.pipeline_mode<synchronous>, transform_indices = @transform_1, window_bounds = array<i64: 88, 128>}, {pipeline_mode = #tpu.pipeline_mode<synchronous>, transform_indices = @transform_2, window_bounds = array<i64: 128, 128>}, {pipeline_mode = #tpu.pipeline_mode<synchronous>, transform_indices = @transform_3, window_bounds = array<i64: 7, 128, 128>}, {pipeline_mode = #tpu.pipeline_mode<synchronous>, transform_indices = @transform_4, window_bounds = array<i64: 128, 128>}, {pipeline_mode = #tpu.pipeline_mode<synchronous>, transform_indices = @transform_5, window_bounds = array<i64: 7, 128, 128>}, {pipeline_mode = #tpu.pipeline_mode<synchronous>, transform_indices = @transform_6, window_bounds = array<i64: 2, 128>}, {pipeline_mode = #tpu.pipeline_mode<synchronous>, transform_indices = @transform_7, window_bounds = array<i64: 2, 5, 2, 128>}, {transform_indices = @transform_8, window_bounds = array<i64: 1, 88, 128>}]} {
    %c0 = arith.constant 0 : index
    %c0_0 = arith.constant 0 : index
    %0 = vector.load %arg2[%c0, %c0_0] : memref<88x128xf32, #tpu.memory_space<vmem>>, vector<88x128xf32>
    %c0_1 = arith.constant 0 : index
    %c8 = arith.constant 8 : index
    %c0_2 = arith.constant 0 : index
    %1 = vector.load %arg1[%c0_1, %c8, %c0_2] : memref<1x104x128xf32, #tpu.memory_space<vmem>>, vector<1x88x128xf32>
    %2 = vector.shape_cast %1 : vector<1x88x128xf32> to vector<88x128xf32>
    %c0_3 = arith.constant 0 : index
    %c0_4 = arith.constant 0 : index
    %3 = vector.load %arg3[%c0_3, %c0_4] : memref<128x128xf32, #tpu.memory_space<vmem>>, vector<128x128xf32>
    %cst = arith.constant dense<0.000000e+00> : vector<88x128xf32>
    %4 = tpu.matmul %2, %3, %cst {dimension_numbers = #tpu.dot_dimension_numbers<[1], [0], [0], [1], [0, 0, 1, 1], [], []>} : vector<88x128xf32>, vector<128x128xf32>, vector<88x128xf32> -> vector<88x128xf32>
    %c0_5 = arith.constant 0 : index
    %c0_6 = arith.constant 0 : index
    %5 = vector.load %arg11[%c0_5, %c0_6] : memref<88x128xf32, #tpu.memory_space<vmem>>, vector<88x128xf32>
    tpu.vector_store %arg11[%c0_5, %c0_6], %4 {strides = array<i32>} : memref<88x128xf32, #tpu.memory_space<vmem>>, vector<88x128xf32>,
    %c0_7 = arith.constant 0 : index
    %c3 = arith.constant 3 : index
    %c0_8 = arith.constant 0 : index
    %6 = vector.load %arg1[%c0_7, %c3, %c0_8] : memref<1x104x128xf32, #tpu.memory_space<vmem>>, vector<1x88x128xf32>
    %7 = vector.shape_cast %6 : vector<1x88x128xf32> to vector<88x128xf32>
    %c0_9 = arith.constant 0 : index
    %c0_10 = arith.constant 0 : index
    %c0_11 = arith.constant 0 : index
    %8 = vector.load %arg4[%c0_9, %c0_10, %c0_11] : memref<7x128x128xf32, #tpu.memory_space<vmem>>, vector<1x128x128xf32>
    %9 = vector.shape_cast %8 : vector<1x128x128xf32> to vector<128x128xf32>
    %cst_12 = arith.constant dense<0.000000e+00> : vector<88x128xf32>
    %10 = tpu.matmul %7, %9, %cst_12 {dimension_numbers = #tpu.dot_dimension_numbers<[1], [0], [0], [1], [0, 0, 1, 1], [], []>} : vector<88x128xf32>, vector<128x128xf32>, vector<88x128xf32> -> vector<88x128xf32>
    %c0_13 = arith.constant 0 : index
    %c4 = arith.constant 4 : index
    %c0_14 = arith.constant 0 : index
    %11 = vector.load %arg1[%c0_13, %c4, %c0_14] : memref<1x104x128xf32, #tpu.memory_space<vmem>>, vector<1x88x128xf32>
    %12 = vector.shape_cast %11 : vector<1x88x128xf32> to vector<88x128xf32>
    %c1 = arith.constant 1 : index
    %c0_15 = arith.constant 0 : index
    %c0_16 = arith.constant 0 : index
    %13 = vector.load %arg4[%c1, %c0_15, %c0_16] : memref<7x128x128xf32, #tpu.memory_space<vmem>>, vector<1x128x128xf32>
    %14 = vector.shape_cast %13 : vector<1x128x128xf32> to vector<128x128xf32>
    %cst_17 = arith.constant dense<0.000000e+00> : vector<88x128xf32>
    %15 = tpu.matmul %12, %14, %cst_17 {dimension_numbers = #tpu.dot_dimension_numbers<[1], [0], [0], [1], [0, 0, 1, 1], [], []>} : vector<88x128xf32>, vector<128x128xf32>, vector<88x128xf32> -> vector<88x128xf32>
    %16 = arith.addf %10, %15 : vector<88x128xf32>
    %c0_18 = arith.constant 0 : index
    %c7 = arith.constant 7 : index
    %c0_19 = arith.constant 0 : index
    %17 = vector.load %arg1[%c0_18, %c7, %c0_19] : memref<1x104x128xf32, #tpu.memory_space<vmem>>, vector<1x88x128xf32>
    %18 = vector.shape_cast %17 : vector<1x88x128xf32> to vector<88x128xf32>
    %c2 = arith.constant 2 : index
    %c0_20 = arith.constant 0 : index
    %c0_21 = arith.constant 0 : index
    %19 = vector.load %arg4[%c2, %c0_20, %c0_21] : memref<7x128x128xf32, #tpu.memory_space<vmem>>, vector<1x128x128xf32>
    %20 = vector.shape_cast %19 : vector<1x128x128xf32> to vector<128x128xf32>
    %cst_22 = arith.constant dense<0.000000e+00> : vector<88x128xf32>
    %21 = tpu.matmul %18, %20, %cst_22 {dimension_numbers = #tpu.dot_dimension_numbers<[1], [0], [0], [1], [0, 0, 1, 1], [], []>} : vector<88x128xf32>, vector<128x128xf32>, vector<88x128xf32> -> vector<88x128xf32>
    %22 = arith.addf %16, %21 : vector<88x128xf32>
    %c0_23 = arith.constant 0 : index
    %c8_24 = arith.constant 8 : index
    %c0_25 = arith.constant 0 : index
    %23 = vector.load %arg1[%c0_23, %c8_24, %c0_25] : memref<1x104x128xf32, #tpu.memory_space<vmem>>, vector<1x88x128xf32>
    %24 = vector.shape_cast %23 : vector<1x88x128xf32> to vector<88x128xf32>
    %c3_26 = arith.constant 3 : index
    %c0_27 = arith.constant 0 : index
    %c0_28 = arith.constant 0 : index
    %25 = vector.load %arg4[%c3_26, %c0_27, %c0_28] : memref<7x128x128xf32, #tpu.memory_space<vmem>>, vector<1x128x128xf32>
    %26 = vector.shape_cast %25 : vector<1x128x128xf32> to vector<128x128xf32>
    %cst_29 = arith.constant dense<0.000000e+00> : vector<88x128xf32>
    %27 = tpu.matmul %24, %26, %cst_29 {dimension_numbers = #tpu.dot_dimension_numbers<[1], [0], [0], [1], [0, 0, 1, 1], [], []>} : vector<88x128xf32>, vector<128x128xf32>, vector<88x128xf32> -> vector<88x128xf32>
    %28 = arith.addf %22, %27 : vector<88x128xf32>
    %c0_30 = arith.constant 0 : index
    %c9 = arith.constant 9 : index
    %c0_31 = arith.constant 0 : index
    %29 = vector.load %arg1[%c0_30, %c9, %c0_31] : memref<1x104x128xf32, #tpu.memory_space<vmem>>, vector<1x88x128xf32>
    %30 = vector.shape_cast %29 : vector<1x88x128xf32> to vector<88x128xf32>
    %c4_32 = arith.constant 4 : index
    %c0_33 = arith.constant 0 : index
    %c0_34 = arith.constant 0 : index
    %31 = vector.load %arg4[%c4_32, %c0_33, %c0_34] : memref<7x128x128xf32, #tpu.memory_space<vmem>>, vector<1x128x128xf32>
    %32 = vector.shape_cast %31 : vector<1x128x128xf32> to vector<128x128xf32>
    %cst_35 = arith.constant dense<0.000000e+00> : vector<88x128xf32>
    %33 = tpu.matmul %30, %32, %cst_35 {dimension_numbers = #tpu.dot_dimension_numbers<[1], [0], [0], [1], [0, 0, 1, 1], [], []>} : vector<88x128xf32>, vector<128x128xf32>, vector<88x128xf32> -> vector<88x128xf32>
    %34 = arith.addf %28, %33 : vector<88x128xf32>
    %c0_36 = arith.constant 0 : index
    %c12 = arith.constant 12 : index
    %c0_37 = arith.constant 0 : index
    %35 = vector.load %arg1[%c0_36, %c12, %c0_37] : memref<1x104x128xf32, #tpu.memory_space<vmem>>, vector<1x88x128xf32>
    %36 = vector.shape_cast %35 : vector<1x88x128xf32> to vector<88x128xf32>
    %c5 = arith.constant 5 : index
    %c0_38 = arith.constant 0 : index
    %c0_39 = arith.constant 0 : index
    %37 = vector.load %arg4[%c5, %c0_38, %c0_39] : memref<7x128x128xf32, #tpu.memory_space<vmem>>, vector<1x128x128xf32>
    %38 = vector.shape_cast %37 : vector<1x128x128xf32> to vector<128x128xf32>
    %cst_40 = arith.constant dense<0.000000e+00> : vector<88x128xf32>
    %39 = tpu.matmul %36, %38, %cst_40 {dimension_numbers = #tpu.dot_dimension_numbers<[1], [0], [0], [1], [0, 0, 1, 1], [], []>} : vector<88x128xf32>, vector<128x128xf32>, vector<88x128xf32> -> vector<88x128xf32>
    %40 = arith.addf %34, %39 : vector<88x128xf32>
    %c0_41 = arith.constant 0 : index
    %c13 = arith.constant 13 : index
    %c0_42 = arith.constant 0 : index
    %41 = vector.load %arg1[%c0_41, %c13, %c0_42] : memref<1x104x128xf32, #tpu.memory_space<vmem>>, vector<1x88x128xf32>
    %42 = vector.shape_cast %41 : vector<1x88x128xf32> to vector<88x128xf32>
    %c6 = arith.constant 6 : index
    %c0_43 = arith.constant 0 : index
    %c0_44 = arith.constant 0 : index
    %43 = vector.load %arg4[%c6, %c0_43, %c0_44] : memref<7x128x128xf32, #tpu.memory_space<vmem>>, vector<1x128x128xf32>
    %44 = vector.shape_cast %43 : vector<1x128x128xf32> to vector<128x128xf32>
    %cst_45 = arith.constant dense<0.000000e+00> : vector<88x128xf32>
    %45 = tpu.matmul %42, %44, %cst_45 {dimension_numbers = #tpu.dot_dimension_numbers<[1], [0], [0], [1], [0, 0, 1, 1], [], []>} : vector<88x128xf32>, vector<128x128xf32>, vector<88x128xf32> -> vector<88x128xf32>
    %46 = arith.addf %40, %45 : vector<88x128xf32>
    %c0_46 = arith.constant 0 : index
    %c0_47 = arith.constant 0 : index
    %47 = vector.load %arg12[%c0_46, %c0_47] : memref<88x128xf32, #tpu.memory_space<vmem>>, vector<88x128xf32>
    tpu.vector_store %arg12[%c0_46, %c0_47], %46 {strides = array<i32>} : memref<88x128xf32, #tpu.memory_space<vmem>>, vector<88x128xf32>,
    %cst_48 = arith.constant 0.000000e+00 : f32
    %48 = vector.broadcast %cst_48 : f32 to vector<8x128xf32>
    %c0_49 = arith.constant 0 : index
    %c0_50 = arith.constant 0 : index
    %49 = vector.load %arg10[%c0_49, %c0_50] : memref<104x128xf32, #tpu.memory_space<vmem>>, vector<8x128xf32>
    tpu.vector_store %arg10[%c0_49, %c0_50], %48 {strides = array<i32>} : memref<104x128xf32, #tpu.memory_space<vmem>>, vector<8x128xf32>,
    %cst_51 = arith.constant 0.000000e+00 : f32
    %50 = vector.broadcast %cst_51 : f32 to vector<8x128xf32>
    %c96 = arith.constant 96 : index
    %c0_52 = arith.constant 0 : index
    %51 = vector.load %arg10[%c96, %c0_52] : memref<104x128xf32, #tpu.memory_space<vmem>>, vector<8x128xf32>
    tpu.vector_store %arg10[%c96, %c0_52], %50 {strides = array<i32>} : memref<104x128xf32, #tpu.memory_space<vmem>>, vector<8x128xf32>,
    %c0_53 = arith.constant 0 : index
    %c0_54 = arith.constant 0 : index
    %52 = vector.load %arg7[%c0_53, %c0_54] : memref<2x128xf32, #tpu.memory_space<vmem>>, vector<1x128xf32>
    %53 = vector.broadcast %52 : vector<1x128xf32> to vector<88x128xf32>
    %54 = arith.mulf %46, %53 : vector<88x128xf32>
    %c1_55 = arith.constant 1 : index
    %c0_56 = arith.constant 0 : index
    %55 = vector.load %arg7[%c1_55, %c0_56] : memref<2x128xf32, #tpu.memory_space<vmem>>, vector<1x128xf32>
    %56 = vector.broadcast %55 : vector<1x128xf32> to vector<88x128xf32>
    %57 = arith.addf %54, %56 : vector<88x128xf32>
    %cst_57 = arith.constant 0.000000e+00 : f32
    %58 = vector.broadcast %cst_57 : f32 to vector<88x128xf32>
    %59 = arith.maximumf %57, %58 : vector<88x128xf32>
    %60 = arith.mulf %59, %0 : vector<88x128xf32>
    %c8_58 = arith.constant 8 : index
    %c0_59 = arith.constant 0 : index
    %61 = vector.load %arg10[%c8_58, %c0_59] : memref<104x128xf32, #tpu.memory_space<vmem>>, vector<88x128xf32>
    tpu.vector_store %arg10[%c8_58, %c0_59], %60 {strides = array<i32>} : memref<104x128xf32, #tpu.memory_space<vmem>>, vector<88x128xf32>,
    %c0_60 = arith.constant 0 : index
    %c0_61 = arith.constant 0 : index
    %c0_62 = arith.constant 0 : index
    %c0_63 = arith.constant 0 : index
    %62 = vector.load %arg8[%c0_60, %c0_61, %c0_62, %c0_63] : memref<2x5x2x128xf32, #tpu.memory_space<vmem>>, vector<1x1x1x128xf32>
    %63 = vector.shape_cast %62 : vector<1x1x1x128xf32> to vector<1x128xf32>
    %c0_64 = arith.constant 0 : index
    %c1_65 = arith.constant 1 : index
    %c0_66 = arith.constant 0 : index
    %c0_67 = arith.constant 0 : index
    %64 = vector.load %arg8[%c0_64, %c1_65, %c0_66, %c0_67] : memref<2x5x2x128xf32, #tpu.memory_space<vmem>>, vector<1x1x1x128xf32>
    %65 = vector.shape_cast %64 : vector<1x1x1x128xf32> to vector<1x128xf32>
    %c0_68 = arith.constant 0 : index
    %c2_69 = arith.constant 2 : index
    %c0_70 = arith.constant 0 : index
    %c0_71 = arith.constant 0 : index
    %66 = vector.load %arg8[%c0_68, %c2_69, %c0_70, %c0_71] : memref<2x5x2x128xf32, #tpu.memory_space<vmem>>, vector<1x1x1x128xf32>
    %67 = vector.shape_cast %66 : vector<1x1x1x128xf32> to vector<1x128xf32>
    %c0_72 = arith.constant 0 : index
    %c3_73 = arith.constant 3 : index
    %c0_74 = arith.constant 0 : index
    %c0_75 = arith.constant 0 : index
    %68 = vector.load %arg8[%c0_72, %c3_73, %c0_74, %c0_75] : memref<2x5x2x128xf32, #tpu.memory_space<vmem>>, vector<1x1x1x128xf32>
    %69 = vector.shape_cast %68 : vector<1x1x1x128xf32> to vector<1x128xf32>
    %c0_76 = arith.constant 0 : index
    %c4_77 = arith.constant 4 : index
    %c0_78 = arith.constant 0 : index
    %c0_79 = arith.constant 0 : index
    %70 = vector.load %arg8[%c0_76, %c4_77, %c0_78, %c0_79] : memref<2x5x2x128xf32, #tpu.memory_space<vmem>>, vector<1x1x1x128xf32>
    %71 = vector.shape_cast %70 : vector<1x1x1x128xf32> to vector<1x128xf32>
    %c0_80 = arith.constant 0 : index
    %c0_81 = arith.constant 0 : index
    %c1_82 = arith.constant 1 : index
    %c0_83 = arith.constant 0 : index
    %72 = vector.load %arg8[%c0_80, %c0_81, %c1_82, %c0_83] : memref<2x5x2x128xf32, #tpu.memory_space<vmem>>, vector<1x1x1x128xf32>
    %73 = vector.shape_cast %72 : vector<1x1x1x128xf32> to vector<1x128xf32>
    %c0_84 = arith.constant 0 : index
    %c1_85 = arith.constant 1 : index
    %c1_86 = arith.constant 1 : index
    %c0_87 = arith.constant 0 : index
    %74 = vector.load %arg8[%c0_84, %c1_85, %c1_86, %c0_87] : memref<2x5x2x128xf32, #tpu.memory_space<vmem>>, vector<1x1x1x128xf32>
    %75 = vector.shape_cast %74 : vector<1x1x1x128xf32> to vector<1x128xf32>
    %c0_88 = arith.constant 0 : index
    %c2_89 = arith.constant 2 : index
    %c1_90 = arith.constant 1 : index
    %c0_91 = arith.constant 0 : index
    %76 = vector.load %arg8[%c0_88, %c2_89, %c1_90, %c0_91] : memref<2x5x2x128xf32, #tpu.memory_space<vmem>>, vector<1x1x1x128xf32>
    %77 = vector.shape_cast %76 : vector<1x1x1x128xf32> to vector<1x128xf32>
    %c0_92 = arith.constant 0 : index
    %c3_93 = arith.constant 3 : index
    %c1_94 = arith.constant 1 : index
    %c0_95 = arith.constant 0 : index
    %78 = vector.load %arg8[%c0_92, %c3_93, %c1_94, %c0_95] : memref<2x5x2x128xf32, #tpu.memory_space<vmem>>, vector<1x1x1x128xf32>
    %79 = vector.shape_cast %78 : vector<1x1x1x128xf32> to vector<1x128xf32>
    %c0_96 = arith.constant 0 : index
    %c4_97 = arith.constant 4 : index
    %c1_98 = arith.constant 1 : index
    %c0_99 = arith.constant 0 : index
    %80 = vector.load %arg8[%c0_96, %c4_97, %c1_98, %c0_99] : memref<2x5x2x128xf32, #tpu.memory_space<vmem>>, vector<1x1x1x128xf32>
    %81 = vector.shape_cast %80 : vector<1x1x1x128xf32> to vector<1x128xf32>
    %c8_100 = arith.constant 8 : index
    %c0_101 = arith.constant 0 : index
    %82 = vector.load %arg10[%c8_100, %c0_101] : memref<104x128xf32, #tpu.memory_space<vmem>>, vector<88x128xf32>
    %c0_102 = arith.constant 0 : index
    %c0_103 = arith.constant 0 : index
    %83 = vector.load %arg5[%c0_102, %c0_103] : memref<128x128xf32, #tpu.memory_space<vmem>>, vector<128x128xf32>
    %cst_104 = arith.constant dense<0.000000e+00> : vector<88x128xf32>
    %84 = tpu.matmul %82, %83, %cst_104 {dimension_numbers = #tpu.dot_dimension_numbers<[1], [0], [0], [1], [0, 0, 1, 1], [], []>} : vector<88x128xf32>, vector<128x128xf32>, vector<88x128xf32> -> vector<88x128xf32>
    %c3_105 = arith.constant 3 : index
    %c0_106 = arith.constant 0 : index
    %85 = vector.load %arg10[%c3_105, %c0_106] : memref<104x128xf32, #tpu.memory_space<vmem>>, vector<88x128xf32>
    %c0_107 = arith.constant 0 : index
    %c0_108 = arith.constant 0 : index
    %c0_109 = arith.constant 0 : index
    %86 = vector.load %arg6[%c0_107, %c0_108, %c0_109] : memref<7x128x128xf32, #tpu.memory_space<vmem>>, vector<1x128x128xf32>
    %87 = vector.shape_cast %86 : vector<1x128x128xf32> to vector<128x128xf32>
    %cst_110 = arith.constant dense<0.000000e+00> : vector<88x128xf32>
    %88 = tpu.matmul %85, %87, %cst_110 {dimension_numbers = #tpu.dot_dimension_numbers<[1], [0], [0], [1], [0, 0, 1, 1], [], []>} : vector<88x128xf32>, vector<128x128xf32>, vector<88x128xf32> -> vector<88x128xf32>
    %c4_111 = arith.constant 4 : index
    %c0_112 = arith.constant 0 : index
    %89 = vector.load %arg10[%c4_111, %c0_112] : memref<104x128xf32, #tpu.memory_space<vmem>>, vector<88x128xf32>
    %c1_113 = arith.constant 1 : index
    %c0_114 = arith.constant 0 : index
    %c0_115 = arith.constant 0 : index
    %90 = vector.load %arg6[%c1_113, %c0_114, %c0_115] : memref<7x128x128xf32, #tpu.memory_space<vmem>>, vector<1x128x128xf32>
    %91 = vector.shape_cast %90 : vector<1x128x128xf32> to vector<128x128xf32>
    %cst_116 = arith.constant dense<0.000000e+00> : vector<88x128xf32>
    %92 = tpu.matmul %89, %91, %cst_116 {dimension_numbers = #tpu.dot_dimension_numbers<[1], [0], [0], [1], [0, 0, 1, 1], [], []>} : vector<88x128xf32>, vector<128x128xf32>, vector<88x128xf32> -> vector<88x128xf32>
    %93 = arith.addf %88, %92 : vector<88x128xf32>
    %c7_117 = arith.constant 7 : index
    %c0_118 = arith.constant 0 : index
    %94 = vector.load %arg10[%c7_117, %c0_118] : memref<104x128xf32, #tpu.memory_space<vmem>>, vector<88x128xf32>
    %c2_119 = arith.constant 2 : index
    %c0_120 = arith.constant 0 : index
    %c0_121 = arith.constant 0 : index
    %95 = vector.load %arg6[%c2_119, %c0_120, %c0_121] : memref<7x128x128xf32, #tpu.memory_space<vmem>>, vector<1x128x128xf32>
    %96 = vector.shape_cast %95 : vector<1x128x128xf32> to vector<128x128xf32>
    %cst_122 = arith.constant dense<0.000000e+00> : vector<88x128xf32>
    %97 = tpu.matmul %94, %96, %cst_122 {dimension_numbers = #tpu.dot_dimension_numbers<[1], [0], [0], [1], [0, 0, 1, 1], [], []>} : vector<88x128xf32>, vector<128x128xf32>, vector<88x128xf32> -> vector<88x128xf32>
    %98 = arith.addf %93, %97 : vector<88x128xf32>
    %c8_123 = arith.constant 8 : index
    %c0_124 = arith.constant 0 : index
    %99 = vector.load %arg10[%c8_123, %c0_124] : memref<104x128xf32, #tpu.memory_space<vmem>>, vector<88x128xf32>
    %c3_125 = arith.constant 3 : index
    %c0_126 = arith.constant 0 : index
    %c0_127 = arith.constant 0 : index
    %100 = vector.load %arg6[%c3_125, %c0_126, %c0_127] : memref<7x128x128xf32, #tpu.memory_space<vmem>>, vector<1x128x128xf32>
    %101 = vector.shape_cast %100 : vector<1x128x128xf32> to vector<128x128xf32>
    %cst_128 = arith.constant dense<0.000000e+00> : vector<88x128xf32>
    %102 = tpu.matmul %99, %101, %cst_128 {dimension_numbers = #tpu.dot_dimension_numbers<[1], [0], [0], [1], [0, 0, 1, 1], [], []>} : vector<88x128xf32>, vector<128x128xf32>, vector<88x128xf32> -> vector<88x128xf32>
    %103 = arith.addf %98, %102 : vector<88x128xf32>
    %c9_129 = arith.constant 9 : index
    %c0_130 = arith.constant 0 : index
    %104 = vector.load %arg10[%c9_129, %c0_130] : memref<104x128xf32, #tpu.memory_space<vmem>>, vector<88x128xf32>
    %c4_131 = arith.constant 4 : index
    %c0_132 = arith.constant 0 : index
    %c0_133 = arith.constant 0 : index
    %105 = vector.load %arg6[%c4_131, %c0_132, %c0_133] : memref<7x128x128xf32, #tpu.memory_space<vmem>>, vector<1x128x128xf32>
    %106 = vector.shape_cast %105 : vector<1x128x128xf32> to vector<128x128xf32>
    %cst_134 = arith.constant dense<0.000000e+00> : vector<88x128xf32>
    %107 = tpu.matmul %104, %106, %cst_134 {dimension_numbers = #tpu.dot_dimension_numbers<[1], [0], [0], [1], [0, 0, 1, 1], [], []>} : vector<88x128xf32>, vector<128x128xf32>, vector<88x128xf32> -> vector<88x128xf32>
    %108 = arith.addf %103, %107 : vector<88x128xf32>
    %c12_135 = arith.constant 12 : index
    %c0_136 = arith.constant 0 : index
    %109 = vector.load %arg10[%c12_135, %c0_136] : memref<104x128xf32, #tpu.memory_space<vmem>>, vector<88x128xf32>
    %c5_137 = arith.constant 5 : index
    %c0_138 = arith.constant 0 : index
    %c0_139 = arith.constant 0 : index
    %110 = vector.load %arg6[%c5_137, %c0_138, %c0_139] : memref<7x128x128xf32, #tpu.memory_space<vmem>>, vector<1x128x128xf32>
    %111 = vector.shape_cast %110 : vector<1x128x128xf32> to vector<128x128xf32>
    %cst_140 = arith.constant dense<0.000000e+00> : vector<88x128xf32>
    %112 = tpu.matmul %109, %111, %cst_140 {dimension_numbers = #tpu.dot_dimension_numbers<[1], [0], [0], [1], [0, 0, 1, 1], [], []>} : vector<88x128xf32>, vector<128x128xf32>, vector<88x128xf32> -> vector<88x128xf32>
    %113 = arith.addf %108, %112 : vector<88x128xf32>
    %c13_141 = arith.constant 13 : index
    %c0_142 = arith.constant 0 : index
    %114 = vector.load %arg10[%c13_141, %c0_142] : memref<104x128xf32, #tpu.memory_space<vmem>>, vector<88x128xf32>
    %c6_143 = arith.constant 6 : index
    %c0_144 = arith.constant 0 : index
    %c0_145 = arith.constant 0 : index
    %115 = vector.load %arg6[%c6_143, %c0_144, %c0_145] : memref<7x128x128xf32, #tpu.memory_space<vmem>>, vector<1x128x128xf32>
    %116 = vector.shape_cast %115 : vector<1x128x128xf32> to vector<128x128xf32>
    %cst_146 = arith.constant dense<0.000000e+00> : vector<88x128xf32>
    %117 = tpu.matmul %114, %116, %cst_146 {dimension_numbers = #tpu.dot_dimension_numbers<[1], [0], [0], [1], [0, 0, 1, 1], [], []>} : vector<88x128xf32>, vector<128x128xf32>, vector<88x128xf32> -> vector<88x128xf32>
    %118 = arith.addf %113, %117 : vector<88x128xf32>
    %c0_147 = arith.constant 0 : index
    %c0_148 = arith.constant 0 : index
    %119 = vector.load %arg11[%c0_147, %c0_148] : memref<88x128xf32, #tpu.memory_space<vmem>>, vector<88x128xf32>
    %c0_149 = arith.constant 0 : index
    %c0_150 = arith.constant 0 : index
    %120 = vector.load %arg12[%c0_149, %c0_150] : memref<88x128xf32, #tpu.memory_space<vmem>>, vector<88x128xf32>
    %121 = vector.broadcast %63 : vector<1x128xf32> to vector<88x128xf32>
    %122 = arith.mulf %119, %121 : vector<88x128xf32>
    %123 = vector.broadcast %73 : vector<1x128xf32> to vector<88x128xf32>
    %124 = arith.addf %122, %123 : vector<88x128xf32>
    %125 = vector.broadcast %65 : vector<1x128xf32> to vector<88x128xf32>
    %126 = arith.mulf %84, %125 : vector<88x128xf32>
    %127 = vector.broadcast %75 : vector<1x128xf32> to vector<88x128xf32>
    %128 = arith.addf %126, %127 : vector<88x128xf32>
    %129 = arith.addf %124, %128 : vector<88x128xf32>
    %130 = arith.negf %129 : vector<88x128xf32>
    %131 = math.exp %130 : vector<88x128xf32>
    %cst_151 = arith.constant 1.000000e+00 : f32
    %132 = vector.broadcast %cst_151 : f32 to vector<88x128xf32>
    %133 = arith.addf %132, %131 : vector<88x128xf32>
    %134 = arith.divf %132, %133 : vector<88x128xf32>
    %135 = vector.broadcast %67 : vector<1x128xf32> to vector<88x128xf32>
    %136 = arith.mulf %120, %135 : vector<88x128xf32>
    %137 = vector.broadcast %77 : vector<1x128xf32> to vector<88x128xf32>
    %138 = arith.addf %136, %137 : vector<88x128xf32>
    %139 = vector.broadcast %69 : vector<1x128xf32> to vector<88x128xf32>
    %140 = arith.mulf %118, %139 : vector<88x128xf32>
    %141 = vector.broadcast %79 : vector<1x128xf32> to vector<88x128xf32>
    %142 = arith.addf %140, %141 : vector<88x128xf32>
    %143 = arith.mulf %142, %134 : vector<88x128xf32>
    %144 = vector.broadcast %71 : vector<1x128xf32> to vector<88x128xf32>
    %145 = arith.mulf %143, %144 : vector<88x128xf32>
    %146 = arith.addf %138, %145 : vector<88x128xf32>
    %147 = vector.broadcast %81 : vector<1x128xf32> to vector<88x128xf32>
    %148 = arith.addf %146, %147 : vector<88x128xf32>
    %cst_152 = arith.constant 0.000000e+00 : f32
    %149 = vector.broadcast %cst_152 : f32 to vector<88x128xf32>
    %150 = arith.maximumf %148, %149 : vector<88x128xf32>
    %151 = arith.mulf %150, %0 : vector<88x128xf32>
    %c8_153 = arith.constant 8 : index
    %c0_154 = arith.constant 0 : index
    %152 = vector.load %arg10[%c8_153, %c0_154] : memref<104x128xf32, #tpu.memory_space<vmem>>, vector<88x128xf32>
    tpu.vector_store %arg10[%c8_153, %c0_154], %151 {strides = array<i32>} : memref<104x128xf32, #tpu.memory_space<vmem>>, vector<88x128xf32>,
    %c1_155 = arith.constant 1 : index
    %c0_156 = arith.constant 0 : index
    %c0_157 = arith.constant 0 : index
    %c0_158 = arith.constant 0 : index
    %153 = vector.load %arg8[%c1_155, %c0_156, %c0_157, %c0_158] : memref<2x5x2x128xf32, #tpu.memory_space<vmem>>, vector<1x1x1x128xf32>
    %154 = vector.shape_cast %153 : vector<1x1x1x128xf32> to vector<1x128xf32>
    %c1_159 = arith.constant 1 : index
    %c1_160 = arith.constant 1 : index
    %c0_161 = arith.constant 0 : index
    %c0_162 = arith.constant 0 : index
    %155 = vector.load %arg8[%c1_159, %c1_160, %c0_161, %c0_162] : memref<2x5x2x128xf32, #tpu.memory_space<vmem>>, vector<1x1x1x128xf32>
    %156 = vector.shape_cast %155 : vector<1x1x1x128xf32> to vector<1x128xf32>
    %c1_163 = arith.constant 1 : index
    %c2_164 = arith.constant 2 : index
    %c0_165 = arith.constant 0 : index
    %c0_166 = arith.constant 0 : index
    %157 = vector.load %arg8[%c1_163, %c2_164, %c0_165, %c0_166] : memref<2x5x2x128xf32, #tpu.memory_space<vmem>>, vector<1x1x1x128xf32>
    %158 = vector.shape_cast %157 : vector<1x1x1x128xf32> to vector<1x128xf32>
    %c1_167 = arith.constant 1 : index
    %c3_168 = arith.constant 3 : index
    %c0_169 = arith.constant 0 : index
    %c0_170 = arith.constant 0 : index
    %159 = vector.load %arg8[%c1_167, %c3_168, %c0_169, %c0_170] : memref<2x5x2x128xf32, #tpu.memory_space<vmem>>, vector<1x1x1x128xf32>
    %160 = vector.shape_cast %159 : vector<1x1x1x128xf32> to vector<1x128xf32>
    %c1_171 = arith.constant 1 : index
    %c4_172 = arith.constant 4 : index
    %c0_173 = arith.constant 0 : index
    %c0_174 = arith.constant 0 : index
    %161 = vector.load %arg8[%c1_171, %c4_172, %c0_173, %c0_174] : memref<2x5x2x128xf32, #tpu.memory_space<vmem>>, vector<1x1x1x128xf32>
    %162 = vector.shape_cast %161 : vector<1x1x1x128xf32> to vector<1x128xf32>
    %c1_175 = arith.constant 1 : index
    %c0_176 = arith.constant 0 : index
    %c1_177 = arith.constant 1 : index
    %c0_178 = arith.constant 0 : index
    %163 = vector.load %arg8[%c1_175, %c0_176, %c1_177, %c0_178] : memref<2x5x2x128xf32, #tpu.memory_space<vmem>>, vector<1x1x1x128xf32>
    %164 = vector.shape_cast %163 : vector<1x1x1x128xf32> to vector<1x128xf32>
    %c1_179 = arith.constant 1 : index
    %c1_180 = arith.constant 1 : index
    %c1_181 = arith.constant 1 : index
    %c0_182 = arith.constant 0 : index
    %165 = vector.load %arg8[%c1_179, %c1_180, %c1_181, %c0_182] : memref<2x5x2x128xf32, #tpu.memory_space<vmem>>, vector<1x1x1x128xf32>
    %166 = vector.shape_cast %165 : vector<1x1x1x128xf32> to vector<1x128xf32>
    %c1_183 = arith.constant 1 : index
    %c2_184 = arith.constant 2 : index
    %c1_185 = arith.constant 1 : index
    %c0_186 = arith.constant 0 : index
    %167 = vector.load %arg8[%c1_183, %c2_184, %c1_185, %c0_186] : memref<2x5x2x128xf32, #tpu.memory_space<vmem>>, vector<1x1x1x128xf32>
    %168 = vector.shape_cast %167 : vector<1x1x1x128xf32> to vector<1x128xf32>
    %c1_187 = arith.constant 1 : index
    %c3_188 = arith.constant 3 : index
    %c1_189 = arith.constant 1 : index
    %c0_190 = arith.constant 0 : index
    %169 = vector.load %arg8[%c1_187, %c3_188, %c1_189, %c0_190] : memref<2x5x2x128xf32, #tpu.memory_space<vmem>>, vector<1x1x1x128xf32>
    %170 = vector.shape_cast %169 : vector<1x1x1x128xf32> to vector<1x128xf32>
    %c1_191 = arith.constant 1 : index
    %c4_192 = arith.constant 4 : index
    %c1_193 = arith.constant 1 : index
    %c0_194 = arith.constant 0 : index
    %171 = vector.load %arg8[%c1_191, %c4_192, %c1_193, %c0_194] : memref<2x5x2x128xf32, #tpu.memory_space<vmem>>, vector<1x1x1x128xf32>
    %172 = vector.shape_cast %171 : vector<1x1x1x128xf32> to vector<1x128xf32>
    %c8_195 = arith.constant 8 : index
    %c0_196 = arith.constant 0 : index
    %173 = vector.load %arg10[%c8_195, %c0_196] : memref<104x128xf32, #tpu.memory_space<vmem>>, vector<88x128xf32>
    %c0_197 = arith.constant 0 : index
    %c0_198 = arith.constant 0 : index
    %174 = vector.load %arg5[%c0_197, %c0_198] : memref<128x128xf32, #tpu.memory_space<vmem>>, vector<128x128xf32>
    %cst_199 = arith.constant dense<0.000000e+00> : vector<88x128xf32>
    %175 = tpu.matmul %173, %174, %cst_199 {dimension_numbers = #tpu.dot_dimension_numbers<[1], [0], [0], [1], [0, 0, 1, 1], [], []>} : vector<88x128xf32>, vector<128x128xf32>, vector<88x128xf32> -> vector<88x128xf32>
    %c3_200 = arith.constant 3 : index
    %c0_201 = arith.constant 0 : index
    %176 = vector.load %arg10[%c3_200, %c0_201] : memref<104x128xf32, #tpu.memory_space<vmem>>, vector<88x128xf32>
    %c0_202 = arith.constant 0 : index
    %c0_203 = arith.constant 0 : index
    %c0_204 = arith.constant 0 : index
    %177 = vector.load %arg6[%c0_202, %c0_203, %c0_204] : memref<7x128x128xf32, #tpu.memory_space<vmem>>, vector<1x128x128xf32>
    %178 = vector.shape_cast %177 : vector<1x128x128xf32> to vector<128x128xf32>
    %cst_205 = arith.constant dense<0.000000e+00> : vector<88x128xf32>
    %179 = tpu.matmul %176, %178, %cst_205 {dimension_numbers = #tpu.dot_dimension_numbers<[1], [0], [0], [1], [0, 0, 1, 1], [], []>} : vector<88x128xf32>, vector<128x128xf32>, vector<88x128xf32> -> vector<88x128xf32>
    %c4_206 = arith.constant 4 : index
    %c0_207 = arith.constant 0 : index
    %180 = vector.load %arg10[%c4_206, %c0_207] : memref<104x128xf32, #tpu.memory_space<vmem>>, vector<88x128xf32>
    %c1_208 = arith.constant 1 : index
    %c0_209 = arith.constant 0 : index
    %c0_210 = arith.constant 0 : index
    %181 = vector.load %arg6[%c1_208, %c0_209, %c0_210] : memref<7x128x128xf32, #tpu.memory_space<vmem>>, vector<1x128x128xf32>
    %182 = vector.shape_cast %181 : vector<1x128x128xf32> to vector<128x128xf32>
    %cst_211 = arith.constant dense<0.000000e+00> : vector<88x128xf32>
    %183 = tpu.matmul %180, %182, %cst_211 {dimension_numbers = #tpu.dot_dimension_numbers<[1], [0], [0], [1], [0, 0, 1, 1], [], []>} : vector<88x128xf32>, vector<128x128xf32>, vector<88x128xf32> -> vector<88x128xf32>
    %184 = arith.addf %179, %183 : vector<88x128xf32>
    %c7_212 = arith.constant 7 : index
    %c0_213 = arith.constant 0 : index
    %185 = vector.load %arg10[%c7_212, %c0_213] : memref<104x128xf32, #tpu.memory_space<vmem>>, vector<88x128xf32>
    %c2_214 = arith.constant 2 : index
    %c0_215 = arith.constant 0 : index
    %c0_216 = arith.constant 0 : index
    %186 = vector.load %arg6[%c2_214, %c0_215, %c0_216] : memref<7x128x128xf32, #tpu.memory_space<vmem>>, vector<1x128x128xf32>
    %187 = vector.shape_cast %186 : vector<1x128x128xf32> to vector<128x128xf32>
    %cst_217 = arith.constant dense<0.000000e+00> : vector<88x128xf32>
    %188 = tpu.matmul %185, %187, %cst_217 {dimension_numbers = #tpu.dot_dimension_numbers<[1], [0], [0], [1], [0, 0, 1, 1], [], []>} : vector<88x128xf32>, vector<128x128xf32>, vector<88x128xf32> -> vector<88x128xf32>
    %189 = arith.addf %184, %188 : vector<88x128xf32>
    %c8_218 = arith.constant 8 : index
    %c0_219 = arith.constant 0 : index
    %190 = vector.load %arg10[%c8_218, %c0_219] : memref<104x128xf32, #tpu.memory_space<vmem>>, vector<88x128xf32>
    %c3_220 = arith.constant 3 : index
    %c0_221 = arith.constant 0 : index
    %c0_222 = arith.constant 0 : index
    %191 = vector.load %arg6[%c3_220, %c0_221, %c0_222] : memref<7x128x128xf32, #tpu.memory_space<vmem>>, vector<1x128x128xf32>
    %192 = vector.shape_cast %191 : vector<1x128x128xf32> to vector<128x128xf32>
    %cst_223 = arith.constant dense<0.000000e+00> : vector<88x128xf32>
    %193 = tpu.matmul %190, %192, %cst_223 {dimension_numbers = #tpu.dot_dimension_numbers<[1], [0], [0], [1], [0, 0, 1, 1], [], []>} : vector<88x128xf32>, vector<128x128xf32>, vector<88x128xf32> -> vector<88x128xf32>
    %194 = arith.addf %189, %193 : vector<88x128xf32>
    %c9_224 = arith.constant 9 : index
    %c0_225 = arith.constant 0 : index
    %195 = vector.load %arg10[%c9_224, %c0_225] : memref<104x128xf32, #tpu.memory_space<vmem>>, vector<88x128xf32>
    %c4_226 = arith.constant 4 : index
    %c0_227 = arith.constant 0 : index
    %c0_228 = arith.constant 0 : index
    %196 = vector.load %arg6[%c4_226, %c0_227, %c0_228] : memref<7x128x128xf32, #tpu.memory_space<vmem>>, vector<1x128x128xf32>
    %197 = vector.shape_cast %196 : vector<1x128x128xf32> to vector<128x128xf32>
    %cst_229 = arith.constant dense<0.000000e+00> : vector<88x128xf32>
    %198 = tpu.matmul %195, %197, %cst_229 {dimension_numbers = #tpu.dot_dimension_numbers<[1], [0], [0], [1], [0, 0, 1, 1], [], []>} : vector<88x128xf32>, vector<128x128xf32>, vector<88x128xf32> -> vector<88x128xf32>
    %199 = arith.addf %194, %198 : vector<88x128xf32>
    %c12_230 = arith.constant 12 : index
    %c0_231 = arith.constant 0 : index
    %200 = vector.load %arg10[%c12_230, %c0_231] : memref<104x128xf32, #tpu.memory_space<vmem>>, vector<88x128xf32>
    %c5_232 = arith.constant 5 : index
    %c0_233 = arith.constant 0 : index
    %c0_234 = arith.constant 0 : index
    %201 = vector.load %arg6[%c5_232, %c0_233, %c0_234] : memref<7x128x128xf32, #tpu.memory_space<vmem>>, vector<1x128x128xf32>
    %202 = vector.shape_cast %201 : vector<1x128x128xf32> to vector<128x128xf32>
    %cst_235 = arith.constant dense<0.000000e+00> : vector<88x128xf32>
    %203 = tpu.matmul %200, %202, %cst_235 {dimension_numbers = #tpu.dot_dimension_numbers<[1], [0], [0], [1], [0, 0, 1, 1], [], []>} : vector<88x128xf32>, vector<128x128xf32>, vector<88x128xf32> -> vector<88x128xf32>
    %204 = arith.addf %199, %203 : vector<88x128xf32>
    %c13_236 = arith.constant 13 : index
    %c0_237 = arith.constant 0 : index
    %205 = vector.load %arg10[%c13_236, %c0_237] : memref<104x128xf32, #tpu.memory_space<vmem>>, vector<88x128xf32>
    %c6_238 = arith.constant 6 : index
    %c0_239 = arith.constant 0 : index
    %c0_240 = arith.constant 0 : index
    %206 = vector.load %arg6[%c6_238, %c0_239, %c0_240] : memref<7x128x128xf32, #tpu.memory_space<vmem>>, vector<1x128x128xf32>
    %207 = vector.shape_cast %206 : vector<1x128x128xf32> to vector<128x128xf32>
    %cst_241 = arith.constant dense<0.000000e+00> : vector<88x128xf32>
    %208 = tpu.matmul %205, %207, %cst_241 {dimension_numbers = #tpu.dot_dimension_numbers<[1], [0], [0], [1], [0, 0, 1, 1], [], []>} : vector<88x128xf32>, vector<128x128xf32>, vector<88x128xf32> -> vector<88x128xf32>
    %209 = arith.addf %204, %208 : vector<88x128xf32>
    %c0_242 = arith.constant 0 : index
    %c0_243 = arith.constant 0 : index
    %210 = vector.load %arg11[%c0_242, %c0_243] : memref<88x128xf32, #tpu.memory_space<vmem>>, vector<88x128xf32>
    %c0_244 = arith.constant 0 : index
    %c0_245 = arith.constant 0 : index
    %211 = vector.load %arg12[%c0_244, %c0_245] : memref<88x128xf32, #tpu.memory_space<vmem>>, vector<88x128xf32>
    %212 = vector.broadcast %154 : vector<1x128xf32> to vector<88x128xf32>
    %213 = arith.mulf %210, %212 : vector<88x128xf32>
    %214 = vector.broadcast %164 : vector<1x128xf32> to vector<88x128xf32>
    %215 = arith.addf %213, %214 : vector<88x128xf32>
    %216 = vector.broadcast %156 : vector<1x128xf32> to vector<88x128xf32>
    %217 = arith.mulf %175, %216 : vector<88x128xf32>
    %218 = vector.broadcast %166 : vector<1x128xf32> to vector<88x128xf32>
    %219 = arith.addf %217, %218 : vector<88x128xf32>
    %220 = arith.addf %215, %219 : vector<88x128xf32>
    %221 = arith.negf %220 : vector<88x128xf32>
    %222 = math.exp %221 : vector<88x128xf32>
    %cst_246 = arith.constant 1.000000e+00 : f32
    %223 = vector.broadcast %cst_246 : f32 to vector<88x128xf32>
    %224 = arith.addf %223, %222 : vector<88x128xf32>
    %225 = arith.divf %223, %224 : vector<88x128xf32>
    %226 = vector.broadcast %158 : vector<1x128xf32> to vector<88x128xf32>
    %227 = arith.mulf %211, %226 : vector<88x128xf32>
    %228 = vector.broadcast %168 : vector<1x128xf32> to vector<88x128xf32>
    %229 = arith.addf %227, %228 : vector<88x128xf32>
    %230 = vector.broadcast %160 : vector<1x128xf32> to vector<88x128xf32>
    %231 = arith.mulf %209, %230 : vector<88x128xf32>
    %232 = vector.broadcast %170 : vector<1x128xf32> to vector<88x128xf32>
    %233 = arith.addf %231, %232 : vector<88x128xf32>
    %234 = arith.mulf %233, %225 : vector<88x128xf32>
    %235 = vector.broadcast %162 : vector<1x128xf32> to vector<88x128xf32>
    %236 = arith.mulf %234, %235 : vector<88x128xf32>
    %237 = arith.addf %229, %236 : vector<88x128xf32>
    %238 = vector.broadcast %172 : vector<1x128xf32> to vector<88x128xf32>
    %239 = arith.addf %237, %238 : vector<88x128xf32>
    %cst_247 = arith.constant 0.000000e+00 : f32
    %240 = vector.broadcast %cst_247 : f32 to vector<88x128xf32>
    %241 = arith.maximumf %239, %240 : vector<88x128xf32>
    %242 = arith.mulf %241, %0 : vector<88x128xf32>
    %c8_248 = arith.constant 8 : index
    %c0_249 = arith.constant 0 : index
    %243 = vector.load %arg10[%c8_248, %c0_249] : memref<104x128xf32, #tpu.memory_space<vmem>>, vector<88x128xf32>
    tpu.vector_store %arg10[%c8_248, %c0_249], %242 {strides = array<i32>} : memref<104x128xf32, #tpu.memory_space<vmem>>, vector<88x128xf32>,
    %c8_250 = arith.constant 8 : index
    %c0_251 = arith.constant 0 : index
    %244 = vector.load %arg10[%c8_250, %c0_251] : memref<104x128xf32, #tpu.memory_space<vmem>>, vector<88x128xf32>
    %c0_252 = arith.constant 0 : index
    %c0_253 = arith.constant 0 : index
    %c0_254 = arith.constant 0 : index
    %245 = vector.load %arg9[%c0_252, %c0_253, %c0_254] : memref<1x88x128xf32, #tpu.memory_space<vmem>>, vector<1x88x128xf32>
    %246 = vector.shape_cast %245 : vector<1x88x128xf32> to vector<88x128xf32>
    %247 = vector.shape_cast %244 : vector<88x128xf32> to vector<1x88x128xf32>
    tpu.vector_store %arg9[%c0_252, %c0_253, %c0_254], %247 {strides = array<i32>} : memref<1x88x128xf32, #tpu.memory_space<vmem>>, vector<1x88x128xf32>,
    return
  }
  func.func @transform_0(%arg0: i32) -> (i32, i32, i32) {
    %c0_i32 = arith.constant 0 : i32
    %c0_i32_0 = arith.constant 0 : i32
    %c0_i32_1 = arith.constant 0 : i32
    return %arg0, %c0_i32, %c0_i32_0 : i32, i32, i32
  }
  func.func @transform_1(%arg0: i32) -> (i32, i32) {
    %c0_i32 = arith.constant 0 : i32
    %c0_i32_0 = arith.constant 0 : i32
    %c0_i32_1 = arith.constant 0 : i32
    return %c0_i32, %c0_i32_0 : i32, i32
  }
  func.func @transform_2(%arg0: i32) -> (i32, i32) {
    %c0_i32 = arith.constant 0 : i32
    %c0_i32_0 = arith.constant 0 : i32
    %c0_i32_1 = arith.constant 0 : i32
    return %c0_i32, %c0_i32_0 : i32, i32
  }
  func.func @transform_3(%arg0: i32) -> (i32, i32, i32) {
    %c0_i32 = arith.constant 0 : i32
    %c0_i32_0 = arith.constant 0 : i32
    %c0_i32_1 = arith.constant 0 : i32
    %c0_i32_2 = arith.constant 0 : i32
    return %c0_i32, %c0_i32_0, %c0_i32_1 : i32, i32, i32
  }
  func.func @transform_4(%arg0: i32) -> (i32, i32) {
    %c0_i32 = arith.constant 0 : i32
    %c0_i32_0 = arith.constant 0 : i32
    %c0_i32_1 = arith.constant 0 : i32
    return %c0_i32, %c0_i32_0 : i32, i32
  }
  func.func @transform_5(%arg0: i32) -> (i32, i32, i32) {
    %c0_i32 = arith.constant 0 : i32
    %c0_i32_0 = arith.constant 0 : i32
    %c0_i32_1 = arith.constant 0 : i32
    %c0_i32_2 = arith.constant 0 : i32
    return %c0_i32, %c0_i32_0, %c0_i32_1 : i32, i32, i32
  }
  func.func @transform_6(%arg0: i32) -> (i32, i32) {
    %c0_i32 = arith.constant 0 : i32
    %c0_i32_0 = arith.constant 0 : i32
    %c0_i32_1 = arith.constant 0 : i32
    return %c0_i32, %c0_i32_0 : i32, i32
  }
  func.func @transform_7(%arg0: i32) -> (i32, i32, i32, i32) {
    %c0_i32 = arith.constant 0 : i32
    %c0_i32_0 = arith.constant 0 : i32
    %c0_i32_1 = arith.constant 0 : i32
    %c0_i32_2 = arith.constant 0 : i32
    %c0_i32_3 = arith.constant 0 : i32
    return %c0_i32, %c0_i32_0, %c0_i32_1, %c0_i32_2 : i32, i32, i32, i32
  }
  func.func @transform_8(%arg0: i32) -> (i32, i32, i32) {
    %c0_i32 = arith.constant 0 : i32
    %c0_i32_0 = arith.constant 0 : i32
    %c0_i32_1 = arith.constant 0 : i32
    return %arg0, %c0_i32, %c0_i32_0 : i32, i32, i32
  }
}

</mosaic_0001>

<bundles_post_ra>
// kernel: tpu_custom_call.1
= control target key start
LH: loop header
LB: loop body
LE: loop exit
PB: predicated region body
PF: predicated region fallthrough
CT: control target
= control target key end

     0   :  { %s6026_s0 = inlined_call_operand.hbm [shape: f32[2,104,128], index: 0, kind: input, shape index: {}]   ;;  %s6027_s1 = inlined_call_operand.hbm [shape: f32[88,128], index: 1, kind: input, shape index: {}]   ;;  %s6028_s2 = inlined_call_operand.hbm [shape: f32[128,128], index: 2, kind: input, shape index: {}]   ;;  %s6029_s3 = inlined_call_operand.hbm [shape: f32[7,128,128], index: 3, kind: input, shape index: {}]   ;;  %s6030_s4 = inlined_call_operand.hbm [shape: f32[128,128], index: 4, kind: input, shape index: {}]   ;;  %s6031_s5 = inlined_call_operand.hbm [shape: f32[7,128,128], index: 5, kind: input, shape index: {}]   ;;  %s6032_s6 = inlined_call_operand.vmem [shape: f32[2,128], index: 6, kind: input, shape index: {}]   ;;  %s6033_s7 = inlined_call_operand.hbm [shape: f32[2,5,2,128], index: 7, kind: input, shape index: {}]   ;;  %s6034_s8 = inlined_call_operand.hbm [shape: f32[2,88,128], index: 8, kind: output, shape index: {}]  }
   0x1   :  { %6067 = sst [smem:[#allocation58_spill]] %s6027_s1 }
   0x2   :  { %6068 = sst [smem:[#allocation59_spill]] %s6028_s2 }
   0x3   :  { %6069 = sst [smem:[#allocation60_spill]] %s6029_s3 }
   0x4   :  { %6070 = sst [smem:[#allocation61_spill]] %s6030_s4 }
   0x5   :  { %13 = vsyncpa [#allocation6], 0 }
   0x6   :  { %15 = vsyncpa [#allocation6 + $0x1], 0 }
   0x7   :  { %16 = vsyncpa [#allocation9], 0 }
   0x8   :  { %17 = vsyncpa [#allocation12], 0 }
   0x9   :  { %18 = vsyncpa [#allocation15], 0 }
   0xa   :  { %19 = vsyncpa [#allocation7], 0 }
   0xb   :  { %21 = vsyncpa [#allocation7 + $0x1], 0  ;;  %s4200_s27 = smov 0   ;;  %s4202_s28 = smov 0  }
   0xc   :  { %s4204_s29 = smov 0   ;;  %s4206_s30 = smov 0  }
   0xd LB: > { %s6071_s1 = sld [smem:[#allocation58_spill]]  ;;  %s4224_s12 = sadd.s32 4294967295, %s4140_s30   ;;  %s4140_s30 = sphi %s4206_s30, %s6213_s30   ;;  %s4136_s29 = sphi %s4204_s29, %s6212_s29   ;;  %s4132_s28 = sphi %s4202_s28, %s6211_s28   ;;  %s4128_s27 = sphi %s4200_s27, %s6210_s27  }
   0xe   : > { %p3554_p0 = scmp.ge.s32.totalorder %s4140_s30, 1  ;;  %p48_p1 = scmp.eq.s32.totalorder %s4224_s12, 0 }
   0xf   : > { %p231_p2 = scmp.lt.s32.totalorder %s4140_s30, 3  ;;  %s4142_s14 = smov [#allocation8]  }
  0x10   : > { %s244_s15 = sshll.u32 %s4142_s14, 4  ;;  %s6073_s3 = sld [smem:[#allocation60_spill]]  ;;  %s245_s15 = int_to_ptr.vmem [resolvable:$true] %s244_s15 }
  0x11   : > { %p4229_p3 = pnand %p3554_p0, %p231_p2  ;;  %s298_s22 = sshll.u32 %s6031_s5, 4  ;;  %s299_s22 = int_to_ptr.hbm [resolvable:$true] %s298_s22 }
  0x12   : > { %s4143_s23 = smov [#allocation11]   ;;  %s6035_s25 = smov 128  }
  0x13   : > { %s242_s11 = sshll.u32 %s6071_s1, 4  ;;  %p3628_p4 = pneg %p4229_p3  ;;  %s243_s11 = int_to_ptr.hbm [resolvable:$true] %s242_s11 }
  0x14   : > { %s272_s24 = sshll.u32 %s4143_s23, 4  ;;  %s6036_s26 = smov 8   ;;  %s273_s24 = int_to_ptr.vmem [resolvable:$true] %s272_s24 }
  0x15   : > { %p4241_p6 = pnand %p3628_p4, %p48_p1  ;;  %s6075_s2 = sld [smem:[#allocation59_spill]] }
  0x16   : > { %s270_s18 = sshll.u32 %s6073_s3, 4  ;;  %s4146_s16 = smov [#allocation14]   ;;  %s271_s18 = int_to_ptr.hbm [resolvable:$true] %s270_s18 }
  0x17   : > { %3631 = dma.hbm_to_vmem [thread:$0]  (!%p4241_p6), %s243_s11, 1408, %s245_s15, [#allocation9], %s6035_s25, %s6035_s25, %s6036_s26  }
  0x18   : > { %3637 = dma.hbm_to_vmem [thread:$0]  (!%p4241_p6), %s271_s18, 14336, %s273_s24, [#allocation12], %s6035_s25, %s6035_s25, %s6036_s26  }
  0x19   : > { %s300_s17 = sshll.u32 %s4146_s16, 4  ;;  %s4147_s11 = smov [#allocation10]   ;;  %s301_s17 = int_to_ptr.vmem [resolvable:$true] %s300_s17 }
  0x1a   : > { %3643 = dma.hbm_to_vmem [thread:$0]  (!%p4241_p6), %s299_s22, 14336, %s301_s17, [#allocation15], %s6035_s25, %s6035_s25, %s6036_s26  }
  0x1b   : > { %s256_s14 = sshll.u32 %s6075_s2, 4  ;;  %s258_s15 = sshll.u32 %s4147_s11, 4  ;;  %s257_s14 = int_to_ptr.hbm [resolvable:$true] %s256_s14  ;;  %s259_s15 = int_to_ptr.vmem [resolvable:$true] %s258_s15 }
  0x1c   : > { %s6076_s4 = sld [smem:[#allocation61_spill]]  ;;  %s315_s22 = sshll.u32 %s6033_s7, 4  ;;  %s316_s22 = int_to_ptr.hbm [resolvable:$true] %s315_s22 }
  0x1d   : > { %3634 = dma.hbm_to_vmem [thread:$0]  (!%p4241_p6), %s257_s14, 2048, %s259_s15, [#allocation9], %s6035_s25, %s6035_s25, %s6036_s26  }
  0x1e   : > { %s4148_s9 = smov [#allocation13]   ;;  %s4149_s14 = smov [#allocation16]  }
  0x1f   : > { %s286_s10 = sshll.u32 %s4148_s9, 4  ;;  %s317_s16 = sshll.u32 %s4149_s14, 4  ;;  %s287_s10 = int_to_ptr.vmem [resolvable:$true] %s286_s10  ;;  %s318_s16 = int_to_ptr.vmem [resolvable:$true] %s317_s16 }
  0x20   : > { %s4150_s17 = smov 32   ;;  %s4151_s11 = smov 2  }
  0x21   : > { %3646 = dma.hbm_to_vmem [thread:$0]  (!%p4241_p6), %s316_s22, 320, %s318_s16, [#allocation15], %s4150_s17, %s4150_s17, %s4151_s11  }
  0x22   : > { %s284_s18 = sshll.u32 %s6076_s4, 4  ;;  %s3553_s15 = sadd.s32 4294967294, %s4140_s30   ;;  %s285_s18 = int_to_ptr.hbm [resolvable:$true] %s284_s18 }
  0x23   : > { %3640 = dma.hbm_to_vmem [thread:$0]  (!%p4241_p6), %s285_s18, 2048, %s287_s10, [#allocation12], %s6035_s25, %s6035_s25, %s6036_s26  }
  0x24   : > { %s4286_s20 = sadd.s32 1, %s4140_s30   ;;  %s34_s23 = sadd.s32 1, %s4136_s29 }
  0x25   : > { %s31_s21 = ssub.s32 %s4140_s30, %s4286_s20  ;;  %p41_p8 = scmp.ne.s32.totalorder %s4136_s29, %s4132_s28 }
  0x26   : > { %p32_p7 = scmp.eq.s32.totalorder %s31_s21, 0  ;;  %p42_p9 = scmp.eq.s32.totalorder %s4140_s30, 0 }
  0x27   : > { %p47_p10 = scmp.ne.s32.totalorder %s4132_s28, %s4128_s27  ;;  %p218_p13 = scmp.eq.s32.totalorder %s4224_s12, 1 }
  0x28   : > { %s4297_s18 = scalar_select %p32_p7, %s4136_s29, %s34_s23  }
  0x29   : > { %p43_p11 = por %p42_p9, %p41_p8  ;;  %p4301_p12 = por %p48_p1, %p47_p10 }
  0x2a   : > { %p224_p0 = scmp.eq.s32.totalorder %s3553_s15, 1  ;;  %p3661_p2 = scmp.lt.s32.totalorder %s4140_s30, 2 }
  0x2b   : > { %s331_s19 = sand.u32 1, %s4136_s29   ;;  %p4308_p4 = por %p218_p13, %p41_p8 }
  0x2c   : > { %p4312_p6 = por %p224_p0, %p47_p10  ;;  %s3595_s10 = smul.u32 104, %s331_s19 }
  0x2d   : > { %s3596_s14 = smul.u32 104, %s4140_s30  ;;  %p4317_p7 = pnand %p3661_p2, %p43_p11 }
  0x2e   : > { %s335_s21 = scalar_lea.vmem [#allocation5], %s3595_s10  ;;  %s332_s26 = scalar_lea.sflag [#allocation6], %s331_s19 }
  0x2f   : > { %s340_s15 = scalar_lea.hbm %s6026_s0, %s3596_s14  ;;  %s343_s23 = sshll.u32 %s335_s21, 4  ;;  %s344_s23 = int_to_ptr.vmem [resolvable:$true] %s343_s23 }
  0x30   : > { %s341_s25 = sshll.u32 %s340_s15, 4  ;;  %p4036_p9 = pneg %p4317_p7  ;;  %s342_s25 = int_to_ptr.hbm [resolvable:$true] %s341_s25 }
  0x31   : > { %s4032_s1 = sshra.s32 %s342_s25, 4  ;;  %s4039_s17 = scalar_lea.hbm %s6026_s0, 208  ;;  %s4033_s1 = int_to_ptr.hbm [resolvable:$true] %s4032_s1 }
  0x32   : > { %s4034_s2 = scalar_lea.hbm %s4033_s1, 104  ;;  %p4040_p13 = scmp.lt.s32.totalorder %s4033_s1, %s6026_s0 }
  0x33   : > { %p4035_p8 = scmp.ne.s32.totalorder %s4033_s1, %s4034_s2  ;;  %p4041_p0 = scmp.lt.s32.totalorder %s4039_s17, %s4034_s2 }
  0x35   : > { %p4037_p10 = pnand %p4036_p9, %p4035_p8  ;;  %p4042_p2 = por %p4041_p0, %p4040_p13 }
  0x37   : > { %p4038_p11 = pneg %p4037_p10 }
  0x39   : > { %p4043_p5 = pnand %p4042_p2, %p4038_p11 }
  0x3b   : > { %4046 = shalt.err (!%p4043_p5)
}
  0x3c   : > { %s6081_s19 = smov 8   ;;  %s6082_s10 = smov 128  }
  0x3d   : > { %3650 = dma.hbm_to_vmem [thread:$0]  (!%p4317_p7), %s342_s25, 1664, %s344_s23, %s332_s26, %s6082_s10, %s6082_s10, %s6081_s19  }
  0x3e   : > { %355 = sbr.rel (%p4229_p3) target bundleno = 928 (0x3a0), region = 52 }
  0x43   : > { %s4340_s3 = sand.u32 1, %s4132_s28  }
  0x44   : > { %s3597_s1 = smul.u32 104, %s4340_s3  ;;  %s358_s2 = scalar_lea.sflag [#allocation6], %s4340_s3 }
  0x46   : > { %s4344_s4 = scalar_lea.vmem [#allocation5], %s3597_s1 }
  0x47   : > { %4107 = dma.done.wait (%p4301_p12), %s358_s2, 1664  }
  0x48   : > { %4109 = vsyncadd (%p4301_p12), %s358_s2, 4294965632 }
  0x49   : > { %4111 = dma.done.wait (%p48_p1), [#allocation9], 3456  }
  0x4a   : > { %4113 = vsyncadd (%p48_p1), [#allocation9], 4294963840 }
  0x4b   : > { %4115 = dma.done.wait (%p48_p1), [#allocation12], 16384  }
  0x4c   : > { %4117 = vsyncadd (%p48_p1), [#allocation12], 4294950912 }
  0x4d   : > { %4119 = dma.done.wait (%p48_p1), [#allocation15], 14656  }
  0x4e   : > { %4121 = vsyncadd (%p48_p1), [#allocation15], 4294952640  ;;  %v462_v0 = vld [vmem:[#allocation10 + $0x78] sm:$0xff]  ;;  %v461_v2 = vld [vmem:[#allocation10 + $0x70] sm:$0xff]  ;;  %s3598_s16 = smul.u32 88, %s4340_s3  ;;  %s3408_s19 = scalar_lea.sflag [#allocation7], %s4340_s3 }
  0x4f   : > { %v550_v1 = vld [vmem:[#allocation11 + $0x78] sm:$0xff]  ;;  %463 = vmatpush.msra.mxu0 %v462_v0  ;;  %v549_v4 = vld [vmem:[#allocation11 + $0x70] sm:$0xff]  ;;  %v460_v6 = vld [vmem:[#allocation10 + $0x68] sm:$0xff]  ;;  %s3599_s21 = smul.u32 88, %s4224_s12  ;;  %s4082_s13 = scalar_lea.hbm %s6034_s8, 176 }
  0x50   : > { %629 = vmatpush.msra.mxu2 %v550_v1  ;;  %v578_v3 = vld [vmem:[#allocation11 + $0xf8] sm:$0xff]  ;;  %v577_v7 = vld [vmem:[#allocation11 + $0xf0] sm:$0xff]  ;;  %v548_v8 = vld [vmem:[#allocation11 + $0x68] sm:$0xff]  ;;  %s5751_s15 = scalar_lea.vmem [#allocation17], %s3598_s16 }
  0x51   : > { %v706_v5 = vld [vmem:[#allocation11 + $0x178] sm:$0xff]  ;;  %579 = vmatpush.msra.mxu1 %v578_v3  ;;  %464 = vmatpush.msra.mxu0 %v461_v2  ;;  %v705_v9 = vld [vmem:[#allocation11 + $0x170] sm:$0xff]  ;;  %v576_v10 = vld [vmem:[#allocation11 + $0xe8] sm:$0xff]  ;;  %s3419_s11 = scalar_lea.hbm %s6034_s8, %s3599_s21  ;;  %s3420_s14 = sshll.u32 %s5751_s15, 4  ;;  %s3421_s14 = int_to_ptr.vmem [resolvable:$true] %s3420_s14 }
  0x52   : > { %707 = vmatpush.msra.mxu3 %v706_v5  ;;  %630 = vmatpush.msra.mxu2 %v549_v4  ;;  %v459_v11 = vld [vmem:[#allocation10 + $0x60] sm:$0xff]  ;;  %v704_v13 = vld [vmem:[#allocation11 + $0x168] sm:$0xff]  ;;  %v458_v16 = vld [vmem:[#allocation10 + $0x58] sm:$0xff]  ;;  %s3422_s12 = sshll.u32 %s3419_s11, 4  ;;  %s3423_s12 = int_to_ptr.hbm [resolvable:$true] %s3422_s12 }
  0x53   : > { %580 = vmatpush.msra.mxu1 %v577_v7  ;;  %v547_v12 = vld [vmem:[#allocation11 + $0x60] sm:$0xff]  ;;  %465 = vmatpush.msra.mxu0 %v460_v6  ;;  %v546_v17 = vld [vmem:[#allocation11 + $0x58] sm:$0xff]  ;;  %v457_v20 = vld [vmem:[#allocation10 + $0x50] sm:$0xff]  ;;  %s4076_s10 = sshra.s32 %s3423_s12, 4  ;;  %s4077_s10 = int_to_ptr.hbm [resolvable:$true] %s4076_s10 }
  0x54   : > { %708 = vmatpush.msra.mxu3 %v705_v9  ;;  %631 = vmatpush.msra.mxu2 %v548_v8  ;;  %v575_v14 = vld [vmem:[#allocation11 + $0xe0] sm:$0xff]  ;;  %v574_v18 = vld [vmem:[#allocation11 + $0xd8] sm:$0xff]  ;;  %v545_v21 = vld [vmem:[#allocation11 + $0x50] sm:$0xff]  ;;  %s4078_s1 = scalar_lea.hbm %s4077_s10, 88  ;;  %p4083_p12 = scmp.lt.s32.totalorder %s4077_s10, %s6034_s8 }
  0x55   : > { %v703_v15 = vld [vmem:[#allocation11 + $0x160] sm:$0xff]  ;;  %581 = vmatpush.msra.mxu1 %v576_v10  ;;  %466 = vmatpush.msra.mxu0 %v459_v11  ;;  %v702_v19 = vld [vmem:[#allocation11 + $0x158] sm:$0xff]  ;;  %v573_v22 = vld [vmem:[#allocation11 + $0xd0] sm:$0xff]  ;;  %p4079_p1 = scmp.ne.s32.totalorder %s4077_s10, %s4078_s1  ;;  %p4084_p7 = scmp.lt.s32.totalorder %s4082_s13, %s4078_s1 }
  0x56   : > { %709 = vmatpush.msra.mxu3 %v704_v13  ;;  %632 = vmatpush.msra.mxu2 %v547_v12  ;;  %v701_v23 = vld [vmem:[#allocation11 + $0x150] sm:$0xff]  ;;  %v456_v24 = vld [vmem:[#allocation10 + $0x48] sm:$0xff]  ;;  %v455_v28 = vld [vmem:[#allocation10 + $0x40] sm:$0xff] }
  0x57   : > { %582 = vmatpush.msra.mxu1 %v575_v14  ;;  %467 = vmatpush.msra.mxu0 %v458_v16  ;;  %v544_v25 = vld [vmem:[#allocation11 + $0x48] sm:$0xff]  ;;  %v543_v29 = vld [vmem:[#allocation11 + $0x40] sm:$0xff]  ;;  %v454_v32 = vld [vmem:[#allocation10 + $0x38] sm:$0xff]  ;;  %p4080_p3 = pnand %p4079_p1, %p4308_p4  ;;  %p4085_p8 = por %p4084_p7, %p4083_p12 }
  0x58   : > { %710 = vmatpush.msra.mxu3 %v703_v15  ;;  %633 = vmatpush.msra.mxu2 %v546_v17  ;;  %v572_v26 = vld [vmem:[#allocation11 + $0xc8] sm:$0xff]  ;;  %v571_v30 = vld [vmem:[#allocation11 + $0xc0] sm:$0xff]  ;;  %v542_v33 = vld [vmem:[#allocation11 + $0x38] sm:$0xff] }
  0x59   : > { %583 = vmatpush.msra.mxu1 %v574_v18  ;;  %468 = vmatpush.msra.mxu0 %v457_v20  ;;  %v700_v27 = vld [vmem:[#allocation11 + $0x148] sm:$0xff]  ;;  %v699_v31 = vld [vmem:[#allocation11 + $0x140] sm:$0xff]  ;;  %v570_v34 = vld [vmem:[#allocation11 + $0xb8] sm:$0xff]  ;;  %p4081_p5 = pneg %p4080_p3 }
  0x5a   : > { %711 = vmatpush.msra.mxu3 %v702_v19  ;;  %634 = vmatpush.msra.mxu2 %v545_v21  ;;  %v698_v35 = vld [vmem:[#allocation11 + $0x138] sm:$0xff]  ;;  %v453_v36 = vld [vmem:[#allocation10 + $0x30] sm:$0xff]  ;;  %v452_v40 = vld [vmem:[#allocation10 + $0x28] sm:$0xff] }
  0x5b   : > { %584 = vmatpush.msra.mxu1 %v573_v22  ;;  %469 = vmatpush.msra.mxu0 %v456_v24  ;;  %v541_v37 = vld [vmem:[#allocation11 + $0x30] sm:$0xff]  ;;  %v540_v41 = vld [vmem:[#allocation11 + $0x28] sm:$0xff]  ;;  %v451_v44 = vld [vmem:[#allocation10 + $0x20] sm:$0xff]  ;;  %p4086_p9 = pnand %p4085_p8, %p4081_p5 }
  0x5c   : > { %712 = vmatpush.msra.mxu3 %v701_v23  ;;  %635 = vmatpush.msra.mxu2 %v544_v25  ;;  %v569_v38 = vld [vmem:[#allocation11 + $0xb0] sm:$0xff]  ;;  %v568_v42 = vld [vmem:[#allocation11 + $0xa8] sm:$0xff]  ;;  %v539_v45 = vld [vmem:[#allocation11 + $0x20] sm:$0xff] }
  0x5d   : > { %585 = vmatpush.msra.mxu1 %v572_v26  ;;  %470 = vmatpush.msra.mxu0 %v455_v28  ;;  %v697_v39 = vld [vmem:[#allocation11 + $0x130] sm:$0xff]  ;;  %v696_v43 = vld [vmem:[#allocation11 + $0x128] sm:$0xff]  ;;  %v567_v46 = vld [vmem:[#allocation11 + $0xa0] sm:$0xff] }
  0x5e   : > { %713 = vmatpush.msra.mxu3 %v700_v27  ;;  %636 = vmatpush.msra.mxu2 %v543_v29  ;;  %v695_v47 = vld [vmem:[#allocation11 + $0x120] sm:$0xff]  ;;  %v450_v48 = vld [vmem:[#allocation10 + $0x18] sm:$0xff]  ;;  %v449_v52 = vld [vmem:[#allocation10 + $0x10] sm:$0xff] }
  0x5f   : > { %586 = vmatpush.msra.mxu1 %v571_v30  ;;  %471 = vmatpush.msra.mxu0 %v454_v32  ;;  %v538_v49 = vld [vmem:[#allocation11 + $0x18] sm:$0xff]  ;;  %v537_v53 = vld [vmem:[#allocation11 + $0x10] sm:$0xff]  ;;  %v448_v56 = vld [vmem:[#allocation10 + $0x8] sm:$0xff] }
  0x60   : > { %714 = vmatpush.msra.mxu3 %v699_v31  ;;  %637 = vmatpush.msra.mxu2 %v542_v33  ;;  %v566_v50 = vld [vmem:[#allocation11 + $0x98] sm:$0xff]  ;;  %v565_v54 = vld [vmem:[#allocation11 + $0x90] sm:$0xff]  ;;  %v536_v57 = vld [vmem:[#allocation11 + $0x8] sm:$0xff] }
  0x61   : > { %587 = vmatpush.msra.mxu1 %v570_v34  ;;  %472 = vmatpush.msra.mxu0 %v453_v36  ;;  %v694_v51 = vld [vmem:[#allocation11 + $0x118] sm:$0xff]  ;;  %v693_v55 = vld [vmem:[#allocation11 + $0x110] sm:$0xff]  ;;  %v564_v58 = vld [vmem:[#allocation11 + $0x88] sm:$0xff] }
  0x62   : > { %715 = vmatpush.msra.mxu3 %v698_v35  ;;  %638 = vmatpush.msra.mxu2 %v541_v37  ;;  %v692_v59 = vld [vmem:[#allocation11 + $0x108] sm:$0xff]  ;;  %v447_v60 = vld [vmem:[#allocation10] sm:$0xff]  ;;  %v973_v0 = vld [vmem:[#allocation11 + $0x2f8] sm:$0xff] }
  0x63   : > { %588 = vmatpush.msra.mxu1 %v569_v38  ;;  %473 = vmatpush.msra.mxu0 %v452_v40  ;;  %v535_v61 = vld [vmem:[#allocation11] sm:$0xff]  ;;  %v795_v5 = vld [vmem:[#allocation11 + $0x1f8] sm:$0xff]  ;;  %v972_v8 = vld [vmem:[#allocation11 + $0x2f0] sm:$0xff] }
  0x64   : > { %716 = vmatpush.msra.mxu3 %v697_v39  ;;  %639 = vmatpush.msra.mxu2 %v540_v41  ;;  %v4363_v62 = vld [vmem:[%s4344_s4 + $0x8] sm:$0xff]  ;;  %v1062_v6 = vld [vmem:[#allocation11 + $0x378] sm:$0xff]  ;;  %v794_v9 = vld [vmem:[#allocation11 + $0x1f0] sm:$0xff] }
  0x65   : > { %589 = vmatpush.msra.mxu1 %v568_v42  ;;  %474 = vmatpush.msra.mxu0 %v451_v44  ;;  %v524_v63 = vld [vmem:[%s4344_s4 + $0x3] sm:$0xff]  ;;  %v4370_v10 = vld [vmem:[%s4344_s4 + $0x10] sm:$0xff]  ;;  %v4380_v27 = vld [vmem:[%s4344_s4 + $0x18] sm:$0xff] }
  0x66   : > { %717 = vmatpush.msra.mxu3 %v696_v43  ;;  %640 = vmatpush.msra.mxu2 %v539_v45  ;;  %v563_v1 = vld [vmem:[#allocation11 + $0x80] sm:$0xff]  ;;  %v884_v7 = vld [vmem:[#allocation11 + $0x278] sm:$0xff]  ;;  %v1061_v11 = vld [vmem:[#allocation11 + $0x370] sm:$0xff] }
  0x67   : > { %590 = vmatpush.msra.mxu1 %v567_v46  ;;  %475 = vmatpush.msra.mxu0 %v450_v48  ;;  %v691_v2 = vld [vmem:[#allocation11 + $0x100] sm:$0xff]  ;;  %v883_v12 = vld [vmem:[#allocation11 + $0x270] sm:$0xff]  ;;  %v971_v14 = vld [vmem:[#allocation11 + $0x2e8] sm:$0xff] }
  0x68   : > { %718 = vmatpush.msra.mxu3 %v695_v47  ;;  %641 = vmatpush.msra.mxu2 %v538_v49  ;;  %v551_v3 = vld [vmem:[%s4344_s4 + $0x4] sm:$0xff]  ;;  %v4374_v16 = vld [vmem:[%s4344_s4 + $0xc] sm:$0xff]  ;;  %v4384_v34 = vld [vmem:[%s4344_s4 + $0x14] sm:$0xff] }
  0x69   : > { %591 = vmatpush.msra.mxu1 %v566_v50  ;;  %476 = vmatpush.msra.mxu0 %v449_v52  ;;  %v679_v4 = vld [vmem:[%s4344_s4 + $0x7] sm:$0xff]  ;;  %v680_v20 = vld [vmem:[%s4344_s4 + $0xf] sm:$0xff]  ;;  %v681_v36 = vld [vmem:[%s4344_s4 + $0x17] sm:$0xff] }
  0x6a   : > { %719 = vmatpush.msra.mxu3 %v694_v51  ;;  %642 = vmatpush.msra.mxu2 %v537_v53  ;;  %v525_v13 = vld [vmem:[%s4344_s4 + $0xb] sm:$0xff]  ;;  %v969_v24 = vld [vmem:[#allocation11 + $0x2d8] sm:$0xff] }
  0x6b   : > { %592 = vmatpush.msra.mxu1 %v565_v54  ;;  %477 = vmatpush.msra.mxu0 %v448_v56  ;;  %v793_v15 = vld [vmem:[#allocation11 + $0x1e8] sm:$0xff]  ;;  %v970_v19 = vld [vmem:[#allocation11 + $0x2e0] sm:$0xff]  ;;  %v791_v25 = vld [vmem:[#allocation11 + $0x1d8] sm:$0xff] }
  0x6c   : > { %720 = vmatpush.msra.mxu3 %v693_v55  ;;  %643 = vmatpush.msra.mxu2 %v536_v57  ;;  %v1060_v17 = vld [vmem:[#allocation11 + $0x368] sm:$0xff]  ;;  %v792_v21 = vld [vmem:[#allocation11 + $0x1e0] sm:$0xff]  ;;  %v1058_v26 = vld [vmem:[#allocation11 + $0x358] sm:$0xff] }
  0x6d   : > { %593 = vmatpush.msra.mxu1 %v564_v58  ;;  %478 = vmatpush.msra.mxu0 %v447_v60  ;;  %v882_v18 = vld [vmem:[#allocation11 + $0x268] sm:$0xff]  ;;  %v1059_v22 = vld [vmem:[#allocation11 + $0x360] sm:$0xff]  ;;  %v880_v29 = vld [vmem:[#allocation11 + $0x258] sm:$0xff] }
  0x6e   : > { %721 = vmatpush.msra.mxu3 %v692_v59  ;;  %644 = vmatpush.msra.mxu2 %v535_v61  ;;  %v881_v23 = vld [vmem:[#allocation11 + $0x260] sm:$0xff]  ;;  %v526_v28 = vld [vmem:[%s4344_s4 + $0x13] sm:$0xff] }
  0x6f   : > { %479 = vmatmul.f32.vlgmr.msra.gmra.mxu0 %v4363_v62  ;;  %645 = vmatmul.f32.vlgmr.msra.gmra.mxu2 %v524_v63  ;;  %v968_v30 = vld [vmem:[#allocation11 + $0x2d0] sm:$0xff]  ;;  %v967_v35 = vld [vmem:[#allocation11 + $0x2c8] sm:$0xff]  ;;  %v966_v40 = vld [vmem:[#allocation11 + $0x2c0] sm:$0xff] }
  0x70   : > { %974 = vmatpush.msrb.mxu2 %v973_v0  ;;  %594 = vmatpush.msra.mxu1 %v563_v1  ;;  %v790_v31 = vld [vmem:[#allocation11 + $0x1d0] sm:$0xff]  ;;  %v789_v37 = vld [vmem:[#allocation11 + $0x1c8] sm:$0xff]  ;;  %v788_v41 = vld [vmem:[#allocation11 + $0x1c0] sm:$0xff] }
  0x71   : > { %722 = vmatpush.msra.mxu3 %v691_v2  ;;  %595 = vmatmul.f32.vlgmr.msra.gmra.mxu1 %v551_v3  ;;  %v1057_v32 = vld [vmem:[#allocation11 + $0x350] sm:$0xff]  ;;  %v1056_v38 = vld [vmem:[#allocation11 + $0x348] sm:$0xff]  ;;  %v1055_v42 = vld [vmem:[#allocation11 + $0x340] sm:$0xff] }
  0x72   : > { %723 = vmatmul.f32.vlgmr.msra.gmra.mxu3 %v679_v4  ;;  %796 = vmatpush.msrb.mxu0 %v795_v5  ;;  %v879_v33 = vld [vmem:[#allocation11 + $0x250] sm:$0xff]  ;;  %v878_v39 = vld [vmem:[#allocation11 + $0x248] sm:$0xff]  ;;  %v877_v43 = vld [vmem:[#allocation11 + $0x240] sm:$0xff] }
  0x73   : > { %1063 = vmatpush.msrb.mxu3 %v1062_v6  ;;  %885 = vmatpush.msrb.mxu1 %v884_v7  ;;  %v965_v44 = vld [vmem:[#allocation11 + $0x2b8] sm:$0xff]  ;;  %v964_v51 = vld [vmem:[#allocation11 + $0x2b0] sm:$0xff]  ;;  %v963_v56 = vld [vmem:[#allocation11 + $0x2a8] sm:$0xff] }
  0x74   : > { %975 = vmatpush.msrb.mxu2 %v972_v8  ;;  %797 = vmatpush.msrb.mxu0 %v794_v9  ;;  %v787_v45 = vld [vmem:[#allocation11 + $0x1b8] sm:$0xff]  ;;  %v786_v53 = vld [vmem:[#allocation11 + $0x1b0] sm:$0xff]  ;;  %v785_v57 = vld [vmem:[#allocation11 + $0x1a8] sm:$0xff] }
  0x75   : > { %1064 = vmatpush.msrb.mxu3 %v1061_v11  ;;  %886 = vmatpush.msrb.mxu1 %v883_v12  ;;  %v4390_v46 = vld [vmem:[%s4344_s4 + $0x20] sm:$0xff]  ;;  %v1053_v54 = vld [vmem:[#allocation11 + $0x330] sm:$0xff]  ;;  %v1052_v58 = vld [vmem:[#allocation11 + $0x328] sm:$0xff] }
  0x76   : > { %976 = vmatpush.msrb.mxu2 %v971_v14  ;;  %798 = vmatpush.msrb.mxu0 %v793_v15  ;;  %v527_v47 = vld [vmem:[%s4344_s4 + $0x1b] sm:$0xff]  ;;  %v874_v59 = vld [vmem:[#allocation11 + $0x228] sm:$0xff] }
  0x77   : > { %482 = vmatmul.f32.gmra.mxu0 %v4370_v10  ;;  %648 = vmatmul.f32.gmra.mxu2 %v525_v13  ;;  %v1054_v48 = vld [vmem:[#allocation11 + $0x338] sm:$0xff]  ;;  %v875_v55 = vld [vmem:[#allocation11 + $0x230] sm:$0xff]  ;;  %v962_v60 = vld [vmem:[#allocation11 + $0x2a0] sm:$0xff] }
  0x78   : > { %1065 = vmatpush.msrb.mxu3 %v1060_v17  ;;  %887 = vmatpush.msrb.mxu1 %v882_v18  ;;  %v876_v49 = vld [vmem:[#allocation11 + $0x238] sm:$0xff]  ;;  %v784_v61 = vld [vmem:[#allocation11 + $0x1a0] sm:$0xff]  ;;  %v4410_v9 = vld [vmem:[%s4344_s4 + $0x30] sm:$0xff] }
  0x79   : > { %598 = vmatmul.f32.gmra.mxu1 %v4374_v16  ;;  %977 = vmatpush.msrb.mxu2 %v970_v19  ;;  %v4394_v50 = vld [vmem:[%s4344_s4 + $0x1c] sm:$0xff]  ;;  %v4400_v63 = vld [vmem:[%s4344_s4 + $0x28] sm:$0xff] }
  0x7a   : > { %726 = vmatmul.f32.gmra.mxu3 %v680_v20  ;;  %799 = vmatpush.msrb.mxu0 %v792_v21  ;;  %v682_v52 = vld [vmem:[%s4344_s4 + $0x1f] sm:$0xff]  ;;  %v683_v3 = vld [vmem:[%s4344_s4 + $0x27] sm:$0xff]  ;;  %v684_v13 = vld [vmem:[%s4344_s4 + $0x2f] sm:$0xff] }
  0x7b   : > { %1066 = vmatpush.msrb.mxu3 %v1059_v22  ;;  %888 = vmatpush.msrb.mxu1 %v881_v23  ;;  %v528_v0 = vld [vmem:[%s4344_s4 + $0x23] sm:$0xff]  ;;  %v529_v11 = vld [vmem:[%s4344_s4 + $0x2b] sm:$0xff]  ;;  %v4420_v22 = vld [vmem:[%s4344_s4 + $0x38] sm:$0xff] }
  0x7c   : > { %978 = vmatpush.msrb.mxu2 %v969_v24  ;;  %800 = vmatpush.msrb.mxu0 %v791_v25  ;;  %v1051_v1 = vld [vmem:[#allocation11 + $0x320] sm:$0xff]  ;;  %v961_v5 = vld [vmem:[#allocation11 + $0x298] sm:$0xff]  ;;  %v960_v14 = vld [vmem:[#allocation11 + $0x290] sm:$0xff] }
  0x7d   : > { %1067 = vmatpush.msrb.mxu3 %v1058_v26  ;;  %889 = vmatpush.msrb.mxu1 %v880_v29  ;;  %v4404_v2 = vld [vmem:[%s4344_s4 + $0x24] sm:$0xff]  ;;  %v4414_v12 = vld [vmem:[%s4344_s4 + $0x2c] sm:$0xff]  ;;  %v4424_v24 = vld [vmem:[%s4344_s4 + $0x34] sm:$0xff] }
  0x7e   : > { %979 = vmatpush.msrb.mxu2 %v968_v30  ;;  %801 = vmatpush.msrb.mxu0 %v790_v31  ;;  %v873_v4 = vld [vmem:[#allocation11 + $0x220] sm:$0xff]  ;;  %v783_v6 = vld [vmem:[#allocation11 + $0x198] sm:$0xff]  ;;  %v782_v15 = vld [vmem:[#allocation11 + $0x190] sm:$0xff] }
  0x7f   : > { %485 = vmatmul.f32.gmra.mxu0 %v4380_v27  ;;  %651 = vmatmul.f32.gmra.mxu2 %v526_v28  ;;  %v1050_v7 = vld [vmem:[#allocation11 + $0x318] sm:$0xff]  ;;  %v1049_v17 = vld [vmem:[#allocation11 + $0x310] sm:$0xff]  ;;  %v959_v19 = vld [vmem:[#allocation11 + $0x288] sm:$0xff] }
  0x80   : > { %1068 = vmatpush.msrb.mxu3 %v1057_v32  ;;  %890 = vmatpush.msrb.mxu1 %v879_v33  ;;  %v872_v8 = vld [vmem:[#allocation11 + $0x218] sm:$0xff]  ;;  %v871_v18 = vld [vmem:[#allocation11 + $0x210] sm:$0xff]  ;;  %v781_v20 = vld [vmem:[#allocation11 + $0x188] sm:$0xff] }
  0x81   : > { %601 = vmatmul.f32.gmra.mxu1 %v4384_v34  ;;  %980 = vmatpush.msrb.mxu2 %v967_v35  ;;  %v1048_v21 = vld [vmem:[#allocation11 + $0x308] sm:$0xff]  ;;  %v958_v28 = vld [vmem:[#allocation11 + $0x280] sm:$0xff] }
  0x82   : > { %729 = vmatmul.f32.gmra.mxu3 %v681_v36  ;;  %802 = vmatpush.msrb.mxu0 %v789_v37  ;;  %v530_v23 = vld [vmem:[%s4344_s4 + $0x33] sm:$0xff]  ;;  %v780_v29 = vld [vmem:[#allocation11 + $0x180] sm:$0xff] }
  0x83   : > { %1069 = vmatpush.msrb.mxu3 %v1056_v38  ;;  %891 = vmatpush.msrb.mxu1 %v878_v39  ;;  %v685_v25 = vld [vmem:[%s4344_s4 + $0x37] sm:$0xff]  ;;  %v1047_v30 = vld [vmem:[#allocation11 + $0x300] sm:$0xff] }
  0x84   : > { %981 = vmatpush.msrb.mxu2 %v966_v40  ;;  %803 = vmatpush.msrb.mxu0 %v788_v41  ;;  %v870_v26 = vld [vmem:[#allocation11 + $0x208] sm:$0xff]  ;;  %v869_v31 = vld [vmem:[#allocation11 + $0x200] sm:$0xff] }
  0x85   : > { %1070 = vmatpush.msrb.mxu3 %v1055_v42  ;;  %892 = vmatpush.msrb.mxu1 %v877_v43  ;;  %v4430_v32 = vld [vmem:[%s4344_s4 + $0x40] sm:$0xff]  ;;  %v4440_v37 = vld [vmem:[%s4344_s4 + $0x48] sm:$0xff]  ;;  %v4450_v41 = vld [vmem:[%s4344_s4 + $0x50] sm:$0xff] }
  0x86   : > { %982 = vmatpush.msrb.mxu2 %v965_v44  ;;  %804 = vmatpush.msrb.mxu0 %v787_v45  ;;  %v531_v33 = vld [vmem:[%s4344_s4 + $0x3b] sm:$0xff]  ;;  %v532_v38 = vld [vmem:[%s4344_s4 + $0x43] sm:$0xff]  ;;  %v533_v42 = vld [vmem:[%s4344_s4 + $0x4b] sm:$0xff] }
  0x87   : > { %488 = vmatmul.f32.gmra.mxu0 %v4390_v46  ;;  %654 = vmatmul.f32.gmra.mxu2 %v527_v47  ;;  %v4434_v35 = vld [vmem:[%s4344_s4 + $0x3c] sm:$0xff]  ;;  %v4444_v39 = vld [vmem:[%s4344_s4 + $0x44] sm:$0xff]  ;;  %v4454_v43 = vld [vmem:[%s4344_s4 + $0x4c] sm:$0xff] }
  0x88   : > { %1071 = vmatpush.msrb.mxu3 %v1054_v48  ;;  %893 = vmatpush.msrb.mxu1 %v876_v49  ;;  %v686_v36 = vld [vmem:[%s4344_s4 + $0x3f] sm:$0xff]  ;;  %v687_v40 = vld [vmem:[%s4344_s4 + $0x47] sm:$0xff]  ;;  %v688_v44 = vld [vmem:[%s4344_s4 + $0x4f] sm:$0xff] }
  0x89   : > { %604 = vmatmul.f32.gmra.mxu1 %v4394_v50  ;;  %983 = vmatpush.msrb.mxu2 %v964_v51  ;;  %v4460_v45 = vld [vmem:[%s4344_s4 + $0x58] sm:$0xff]  ;;  %v857_v51 = vld [vmem:[%s4344_s4 + $0x9] sm:$0xff] }
  0x8a   : > { %732 = vmatmul.f32.gmra.mxu3 %v682_v52  ;;  %805 = vmatpush.msrb.mxu0 %v786_v53  ;;  %v534_v47 = vld [vmem:[%s4344_s4 + $0x53] sm:$0xff] }
  0x8b   : > { %1072 = vmatpush.msrb.mxu3 %v1053_v54  ;;  %894 = vmatpush.msrb.mxu1 %v875_v55  ;;  %v4464_v48 = vld [vmem:[%s4344_s4 + $0x54] sm:$0xff] }
  0x8c   : > { %984 = vmatpush.msrb.mxu2 %v963_v56  ;;  %806 = vmatpush.msrb.mxu0 %v785_v57  ;;  %v689_v49 = vld [vmem:[%s4344_s4 + $0x57] sm:$0xff]  ;;  %v1035_v52 = vld [vmem:[%s4344_s4 + $0xd] sm:$0xff] }
  0x8d   : > { %1073 = vmatpush.msrb.mxu3 %v1052_v58  ;;  %895 = vmatpush.msrb.mxu1 %v874_v59  ;;  %v858_v53 = vld [vmem:[%s4344_s4 + $0x11] sm:$0xff]  ;;  %v859_v55 = vld [vmem:[%s4344_s4 + $0x19] sm:$0xff] }
  0x8e   : > { %985 = vmatpush.msrb.mxu2 %v962_v60  ;;  %807 = vmatpush.msrb.mxu0 %v784_v61  ;;  %v1036_v54 = vld [vmem:[%s4344_s4 + $0x15] sm:$0xff] }
  0x8f   : > { %491 = vmatmul.f32.gmra.mxu0 %v4400_v63  ;;  %657 = vmatmul.f32.gmra.mxu2 %v528_v0  ;;  %v1236_v56 = vld [vmem:[#allocation13 + $0x78] sm:$0xff]  ;;  %v1235_v0 = vld [vmem:[#allocation13 + $0x70] sm:$0xff] }
  0x90   : > { %1074 = vmatpush.msrb.mxu3 %v1051_v1  ;;  %896 = vmatpush.msrb.mxu1 %v873_v4  ;;  %v1469_v57 = vld [vmem:[#allocation14 + $0x178] sm:$0xff]  ;;  %v1468_v1 = vld [vmem:[#allocation14 + $0x170] sm:$0xff]  ;;  %v1311_v4 = vld [vmem:[#allocation14 + $0x68] sm:$0xff] }
  0x91   : > { %607 = vmatmul.f32.gmra.mxu1 %v4404_v2  ;;  %986 = vmatpush.msrb.mxu2 %v961_v5  ;;  %v862_v60 = vld [vmem:[%s4344_s4 + $0x31] sm:$0xff] }
  0x92   : > { %735 = vmatmul.f32.gmra.mxu3 %v683_v3  ;;  %808 = vmatpush.msrb.mxu0 %v783_v6  ;;  %v1040_v61 = vld [vmem:[%s4344_s4 + $0x35] sm:$0xff] }
  0x93   : > { %1075 = vmatpush.msrb.mxu3 %v1050_v7  ;;  %897 = vmatpush.msrb.mxu1 %v872_v8  ;;  %v1340_v3 = vld [vmem:[#allocation14 + $0xf0] sm:$0xff] }
  0x94   : > { %987 = vmatpush.msrb.mxu2 %v960_v14  ;;  %809 = vmatpush.msrb.mxu0 %v782_v15  ;;  %v863_v8 = vld [vmem:[%s4344_s4 + $0x39] sm:$0xff] }
  0x95   : > { %1076 = vmatpush.msrb.mxu3 %v1049_v17  ;;  %898 = vmatpush.msrb.mxu1 %v871_v18  ;;  %v1310_v14 = vld [vmem:[#allocation14 + $0x60] sm:$0xff] }
  0x96   : > { %988 = vmatpush.msrb.mxu2 %v959_v19  ;;  %810 = vmatpush.msrb.mxu0 %v781_v20  ;;  %v1233_v17 = vld [vmem:[#allocation13 + $0x60] sm:$0xff] }
  0x97   : > { %494 = vmatmul.f32.gmra.mxu0 %v4410_v9  ;;  %660 = vmatmul.f32.gmra.mxu2 %v529_v11  ;;  %v1234_v11 = vld [vmem:[#allocation13 + $0x68] sm:$0xff]  ;;  %v1466_v18 = vld [vmem:[#allocation14 + $0x160] sm:$0xff] }
  0x98   : > { %1077 = vmatpush.msrb.mxu3 %v1048_v21  ;;  %899 = vmatpush.msrb.mxu1 %v870_v26  ;;  %v1232_v26 = vld [vmem:[#allocation13 + $0x58] sm:$0xff] }
  0x99   : > { %610 = vmatmul.f32.gmra.mxu1 %v4414_v12  ;;  %989 = vmatpush.msrb.mxu2 %v958_v28  ;;  %v1465_v28 = vld [vmem:[#allocation14 + $0x158] sm:$0xff] }
  0x9a   : > { %738 = vmatmul.f32.gmra.mxu3 %v684_v13  ;;  %811 = vmatpush.msrb.mxu0 %v780_v29  ;;  %v1339_v13 = vld [vmem:[#allocation14 + $0xe8] sm:$0xff]  ;;  %v1337_v29 = vld [vmem:[#allocation14 + $0xd8] sm:$0xff] }
  0x9b   : > { %1078 = vmatpush.msrb.mxu3 %v1047_v30  ;;  %900 = vmatpush.msrb.mxu1 %v869_v31  ;;  %v1308_v31 = vld [vmem:[#allocation14 + $0x50] sm:$0xff] }
  0x9c   : > { %1237 = vmatpush.msra.mxu0 %v1236_v56  ;;  %v956_v56 = vld [vmem:[%s4344_s4 + $0x5c] sm:$0xff] }
  0x9d   : > { %1470 = vmatpush.msra.mxu3 %v1469_v57 }
  0x9e   : > { %1238 = vmatpush.msra.mxu0 %v1235_v0  ;;  %v1333_v0 = vld [vmem:[#allocation14 + $0xb8] sm:$0xff] }
  0x9f   : > { %497 = vmatmul.f32.gmra.mxu0 %v4420_v22  ;;  %663 = vmatmul.f32.gmra.mxu2 %v530_v23  ;;  %v1042_v23 = vld [vmem:[%s4344_s4 + $0x45] sm:$0xff] }
  0xa0   : > { %1471 = vmatpush.msra.mxu3 %v1468_v1  ;;  %1239 = vmatpush.msra.mxu0 %v1234_v11  ;;  %v1304_v1 = vld [vmem:[#allocation14 + $0x30] sm:$0xff] }
  0xa1   : > { %613 = vmatmul.f32.gmra.mxu1 %v4424_v24 }
  0xa2   : > { %741 = vmatmul.f32.gmra.mxu3 %v685_v25  ;;  %1240 = vmatpush.msra.mxu0 %v1233_v17  ;;  %v1309_v25 = vld [vmem:[#allocation14 + $0x58] sm:$0xff]  ;;  %v1459_v17 = vld [vmem:[#allocation14 + $0x128] sm:$0xff] }
  0xa4   : > { %1241 = vmatpush.msra.mxu0 %v1232_v26  ;;  %v1302_v26 = vld [vmem:[#allocation14 + $0x20] sm:$0xff] }
  0xa7   : > { %500 = vmatmul.f32.gmra.mxu0 %v4430_v32  ;;  %666 = vmatmul.f32.gmra.mxu2 %v531_v33 }
  0xa9   : > { %616 = vmatmul.f32.gmra.mxu1 %v4434_v35 }
  0xaa   : > { %744 = vmatmul.f32.gmra.mxu3 %v686_v36  ;;  %v865_v36 = vld [vmem:[%s4344_s4 + $0x49] sm:$0xff] }
  0xaf   : > { %503 = vmatmul.f32.gmra.mxu0 %v4440_v37  ;;  %669 = vmatmul.f32.gmra.mxu2 %v532_v38  ;;  %v1043_v38 = vld [vmem:[%s4344_s4 + $0x4d] sm:$0xff] }
  0xb1   : > { %619 = vmatmul.f32.gmra.mxu1 %v4444_v39 }
  0xb2   : > { %747 = vmatmul.f32.gmra.mxu3 %v687_v40  ;;  %v1464_v40 = vld [vmem:[#allocation14 + $0x150] sm:$0xff] }
  0xb7   : > { %506 = vmatmul.f32.gmra.mxu0 %v4450_v41  ;;  %672 = vmatmul.f32.gmra.mxu2 %v533_v42  ;;  %v1336_v42 = vld [vmem:[#allocation14 + $0xd0] sm:$0xff] }
  0xb9   : > { %622 = vmatmul.f32.gmra.mxu1 %v4454_v43 }
  0xba   : > { %750 = vmatmul.f32.gmra.mxu3 %v688_v44  ;;  %v1307_v44 = vld [vmem:[#allocation14 + $0x48] sm:$0xff] }
  0xbf   : > { %509 = vmatmul.f32.gmra.mxu0 %v4460_v45  ;;  %675 = vmatmul.f32.gmra.mxu2 %v534_v47 }
  0xc1   : > { %625 = vmatmul.f32.gmra.mxu1 %v4464_v48 }
  0xc2   : > { %753 = vmatmul.f32.gmra.mxu3 %v689_v49  ;;  %v1230_v49 = vld [vmem:[#allocation13 + $0x48] sm:$0xff] }
  0xc7   : > { %812 = vmatmul.f32.vlgmr.msrb.gmra.mxu0 %v4363_v62  ;;  %990 = vmatmul.f32.vlgmr.msrb.gmra.mxu2 %v4374_v16  ;;  %v1037_v62 = vld [vmem:[%s4344_s4 + $0x1d] sm:$0xff] }
  0xc8   : > { %v860_v16 = vld [vmem:[%s4344_s4 + $0x21] sm:$0xff] }
  0xc9   : > { %901 = vmatmul.f32.vlgmr.msrb.gmra.mxu1 %v857_v51  ;;  %v1463_v51 = vld [vmem:[#allocation14 + $0x148] sm:$0xff] }
  0xca   : > { %1079 = vmatmul.f32.vlgmr.msrb.gmra.mxu3 %v1035_v52 }
  0xcf   : > { %815 = vmatmul.f32.gmra.mxu0 %v4370_v10  ;;  %993 = vmatmul.f32.gmra.mxu2 %v4384_v34  ;;  %v1038_v10 = vld [vmem:[%s4344_s4 + $0x25] sm:$0xff] }
  0xd0   : > { %v861_v34 = vld [vmem:[%s4344_s4 + $0x29] sm:$0xff] }
  0xd1   : > { %904 = vmatmul.f32.gmra.mxu1 %v858_v53  ;;  %v866_v53 = vld [vmem:[%s4344_s4 + $0x51] sm:$0xff] }
  0xd2   : > { %1082 = vmatmul.f32.gmra.mxu3 %v1036_v54  ;;  %v1044_v54 = vld [vmem:[%s4344_s4 + $0x55] sm:$0xff] }
  0xd7   : > { %818 = vmatmul.f32.gmra.mxu0 %v4380_v27  ;;  %996 = vmatmul.f32.gmra.mxu2 %v4394_v50  ;;  %v1039_v27 = vld [vmem:[%s4344_s4 + $0x2d] sm:$0xff]  ;;  %v1313_v50 = vld [vmem:[#allocation14 + $0x78] sm:$0xff] }
  0xd8   : > { %1392 = vmatpush.msra.mxu2 %v1313_v50  ;;  %v1305_v50 = vld [vmem:[#allocation14 + $0x38] sm:$0xff] }
  0xd9   : > { %907 = vmatmul.f32.gmra.mxu1 %v859_v55  ;;  %v1335_v55 = vld [vmem:[#allocation14 + $0xc8] sm:$0xff] }
  0xda   : > { %1085 = vmatmul.f32.gmra.mxu3 %v1037_v62  ;;  %v1306_v62 = vld [vmem:[#allocation14 + $0x40] sm:$0xff] }
  0xdf   : > { %821 = vmatmul.f32.gmra.mxu0 %v4390_v46  ;;  %999 = vmatmul.f32.gmra.mxu2 %v4404_v2  ;;  %v1341_v46 = vld [vmem:[#allocation14 + $0xf8] sm:$0xff] }
  0xe0   : > { %1342 = vmatpush.msra.mxu1 %v1341_v46  ;;  %v867_v46 = vld [vmem:[%s4344_s4 + $0x59] sm:$0xff] }
  0xe1   : > { %910 = vmatmul.f32.gmra.mxu1 %v860_v16  ;;  %v1229_v16 = vld [vmem:[#allocation13 + $0x40] sm:$0xff] }
  0xe2   : > { %1088 = vmatmul.f32.gmra.mxu3 %v1038_v10  ;;  %1343 = vmatpush.msra.mxu1 %v1340_v3  ;;  %v1462_v10 = vld [vmem:[#allocation14 + $0x140] sm:$0xff] }
  0xe4   : > { %1344 = vmatpush.msra.mxu1 %v1339_v13  ;;  %v1303_v13 = vld [vmem:[#allocation14 + $0x28] sm:$0xff] }
  0xe7   : > { %824 = vmatmul.f32.gmra.mxu0 %v4400_v63  ;;  %1002 = vmatmul.f32.gmra.mxu2 %v4414_v12  ;;  %v1312_v63 = vld [vmem:[#allocation14 + $0x70] sm:$0xff]  ;;  %v1467_v12 = vld [vmem:[#allocation14 + $0x168] sm:$0xff] }
  0xe8   : > { %1393 = vmatpush.msra.mxu2 %v1312_v63  ;;  %1472 = vmatpush.msra.mxu3 %v1467_v12  ;;  %v1461_v63 = vld [vmem:[#allocation14 + $0x138] sm:$0xff]  ;;  %v1332_v12 = vld [vmem:[#allocation14 + $0xb0] sm:$0xff] }
  0xe9   : > { %913 = vmatmul.f32.gmra.mxu1 %v861_v34 }
  0xea   : > { %1091 = vmatmul.f32.gmra.mxu3 %v1039_v27  ;;  %1394 = vmatpush.msra.mxu2 %v1311_v4  ;;  %v1334_v27 = vld [vmem:[#allocation14 + $0xc0] sm:$0xff]  ;;  %v1227_v4 = vld [vmem:[#allocation13 + $0x30] sm:$0xff] }
  0xeb   : > { %1473 = vmatpush.msra.mxu3 %v1466_v18 }
  0xec   : > { %v4489_v58 = vpop.f32.mrf.mxu0  ;;  %1395 = vmatpush.msra.mxu2 %v1310_v14  ;;  %v1226_v14 = vld [vmem:[#allocation13 + $0x28] sm:$0xff] }
  0xed   : > { %6083 = vst [vmem:[#allocation23_spill] sm:$0xff] %v4489_v58  ;;  %1474 = vmatpush.msra.mxu3 %v1465_v28  ;;  %v1225_v28 = vld [vmem:[#allocation13 + $0x20] sm:$0xff] }
  0xee   : > { %v4491_v59 = vpop.f32.mrf.mxu1  ;;  %1396 = vmatpush.msra.mxu2 %v1309_v25 }
  0xef   : > { %827 = vmatmul.f32.gmra.mxu0 %v4410_v9  ;;  %1005 = vmatmul.f32.gmra.mxu2 %v4424_v24  ;;  %v1041_v9 = vld [vmem:[%s4344_s4 + $0x3d] sm:$0xff] }
  0xf0   : > { %v1338_v24 = vld [vmem:[#allocation14 + $0xe0] sm:$0xff]  ;;  %1397 = vmatpush.msra.mxu2 %v1308_v31  ;;  %1475 = vmatpush.msra.mxu3 %v1464_v40  ;;  %v1457_v40 = vld [vmem:[#allocation14 + $0x118] sm:$0xff] }
  0xf1   : > { %916 = vmatmul.f32.gmra.mxu1 %v862_v60  ;;  %v1045_v60 = vld [vmem:[%s4344_s4 + $0x5d] sm:$0xff] }
  0xf2   : > { %1094 = vmatmul.f32.gmra.mxu3 %v1040_v61  ;;  %v4497_v2 = vpop.f32.mrf.mxu2  ;;  %1345 = vmatpush.msra.mxu1 %v1338_v24  ;;  %v1228_v61 = vld [vmem:[#allocation13 + $0x38] sm:$0xff]  ;;  %v1330_v31 = vld [vmem:[#allocation14 + $0xa0] sm:$0xff] }
  0xf3   : > { %1398 = vmatpush.msra.mxu2 %v1307_v44  ;;  %1476 = vmatpush.msra.mxu3 %v1463_v51 }
  0xf4   : > { %v4499_v5 = vpop.f32.mrf.mxu0  ;;  %1346 = vmatpush.msra.mxu1 %v1337_v29  ;;  %v1458_v29 = vld [vmem:[#allocation14 + $0x120] sm:$0xff] }
  0xf5   : > { %6084 = vst [vmem:[#allocation24_spill] sm:$0xff] %v4499_v5  ;;  %v4501_v6 = vpop.f32.mrf.mxu3  ;;  %1399 = vmatpush.msra.mxu2 %v1306_v62  ;;  %1477 = vmatpush.msra.mxu3 %v1462_v10  ;;  %v1221_v10 = vld [vmem:[#allocation13] sm:$0xff] }
  0xf6   : > { %v4503_v7 = vpop.f32.mrf.mxu1  ;;  %1347 = vmatpush.msra.mxu1 %v1336_v42 }
  0xf7   : > { %830 = vmatmul.f32.gmra.mxu0 %v4420_v22  ;;  %1008 = vmatmul.f32.gmra.mxu2 %v4434_v35  ;;  %v864_v22 = vld [vmem:[%s4344_s4 + $0x41] sm:$0xff] }
  0xf8   : > { %1348 = vmatpush.msra.mxu1 %v1335_v55  ;;  %1400 = vmatpush.msra.mxu2 %v1305_v50  ;;  %v1222_v55 = vld [vmem:[#allocation13 + $0x8] sm:$0xff]  ;;  %v1300_v50 = vld [vmem:[#allocation14 + $0x10] sm:$0xff] }
  0xf9   : > { %919 = vmatmul.f32.gmra.mxu1 %v863_v8  ;;  %1478 = vmatpush.msra.mxu3 %v1461_v63  ;;  %v1460_v8 = vld [vmem:[#allocation14 + $0x130] sm:$0xff] }
  0xfa   : > { %1097 = vmatmul.f32.gmra.mxu3 %v1041_v9  ;;  %v4509_v15 = vpop.f32.mrf.mxu2  ;;  %1349 = vmatpush.msra.mxu1 %v1334_v27  ;;  %v1329_v27 = vld [vmem:[#allocation14 + $0x98] sm:$0xff] }
  0xfb   : > { %1401 = vmatpush.msra.mxu2 %v1304_v1  ;;  %1479 = vmatpush.msra.mxu3 %v1460_v8  ;;  %v1455_v1 = vld [vmem:[#allocation14 + $0x108] sm:$0xff] }
  0xfc   : > { %v4511_v19 = vpop.f32.mrf.mxu0  ;;  %1350 = vmatpush.msra.mxu1 %v1333_v0  ;;  %v1299_v0 = vld [vmem:[#allocation14 + $0x8] sm:$0xff] }
  0xfd   : > { %6085 = vst [vmem:[#allocation25_spill] sm:$0xff] %v4511_v19  ;;  %v4513_v20 = vpop.f32.mrf.mxu3  ;;  %1402 = vmatpush.msra.mxu2 %v1303_v13  ;;  %1480 = vmatpush.msra.mxu3 %v1459_v17  ;;  %v1298_v13 = vld [vmem:[#allocation14] sm:$0xff] }
  0xfe   : > { %v4515_v21 = vpop.f32.mrf.mxu1  ;;  %1351 = vmatpush.msra.mxu1 %v1332_v12  ;;  %v1326_v17 = vld [vmem:[#allocation14 + $0x80] sm:$0xff] }
  0xff   : > { %833 = vmatmul.f32.gmra.mxu0 %v4430_v32  ;;  %1011 = vmatmul.f32.gmra.mxu2 %v4444_v39  ;;  %v1231_v39 = vld [vmem:[#allocation13 + $0x50] sm:$0xff] }
 0x100   : > { %1242 = vmatpush.msra.mxu0 %v1231_v39  ;;  %1403 = vmatpush.msra.mxu2 %v1302_v26  ;;  %v1224_v39 = vld [vmem:[#allocation13 + $0x18] sm:$0xff] }
 0x101   : > { %922 = vmatmul.f32.gmra.mxu1 %v864_v22  ;;  %v1331_v22 = vld [vmem:[#allocation14 + $0xa8] sm:$0xff]  ;;  %1481 = vmatpush.msra.mxu3 %v1458_v29 }
 0x102   : > { %1100 = vmatmul.f32.gmra.mxu3 %v1042_v23  ;;  %v4521_v30 = vpop.f32.mrf.mxu2  ;;  %1243 = vmatpush.msra.mxu0 %v1230_v49 }
 0x103   : > { %1352 = vmatpush.msra.mxu1 %v1331_v22  ;;  %1482 = vmatpush.msra.mxu3 %v1457_v40  ;;  %v647_v22 = vadd.f32 %v4497_v2, %v4491_v59  ;;  %v650_v40 = vadd.f32 %v4509_v15, %v4503_v7  ;;  %v1636_v59 = vld [vmem:[#allocation14 + $0x278] sm:$0xff] }
 0x104   : > { %v4523_v32 = vpop.f32.mrf.mxu0  ;;  %1244 = vmatpush.msra.mxu0 %v1229_v16 }
 0x105   : > { %6086 = vst [vmem:[#allocation26_spill] sm:$0xff] %v4523_v32  ;;  %v4525_v33 = vpop.f32.mrf.mxu3  ;;  %1353 = vmatpush.msra.mxu1 %v1330_v31 }
 0x106   : > { %v4527_v35 = vpop.f32.mrf.mxu1  ;;  %1245 = vmatpush.msra.mxu0 %v1228_v61 }
 0x107   : > { %836 = vmatmul.f32.gmra.mxu0 %v4440_v37  ;;  %1014 = vmatmul.f32.gmra.mxu2 %v4454_v43 }
 0x108   : > { %1246 = vmatpush.msra.mxu0 %v1227_v4  ;;  %1354 = vmatpush.msra.mxu1 %v1329_v27  ;;  %v1327_v4 = vld [vmem:[#allocation14 + $0x88] sm:$0xff] }
 0x109   : > { %925 = vmatmul.f32.gmra.mxu1 %v865_v36  ;;  %v1301_v36 = vld [vmem:[#allocation14 + $0x18] sm:$0xff] }
 0x10a   : > { %1103 = vmatmul.f32.gmra.mxu3 %v1043_v38  ;;  %v4533_v47 = vpop.f32.mrf.mxu2  ;;  %1247 = vmatpush.msra.mxu0 %v1226_v14  ;;  %v1454_v14 = vld [vmem:[#allocation14 + $0x100] sm:$0xff] }
 0x10b   : > { %1404 = vmatpush.msra.mxu2 %v1301_v36 }
 0x10c   : > { %v4535_v52 = vpop.f32.mrf.mxu0  ;;  %1248 = vmatpush.msra.mxu0 %v1225_v28  ;;  %v757_v28 = vadd.f32 %v4501_v6, %v647_v22  ;;  %v758_v6 = vadd.f32 %v4513_v20, %v650_v40  ;;  %v653_v20 = vadd.f32 %v4521_v30, %v4515_v21 }
 0x10d   : > { %6087 = vst [vmem:[#allocation27_spill] sm:$0xff] %v4535_v52  ;;  %v4537_v37 = vpop.f32.mrf.mxu3  ;;  %1405 = vmatpush.msra.mxu2 %v1300_v50 }
 0x10e   : > { %v4539_v43 = vpop.f32.mrf.mxu1  ;;  %1249 = vmatpush.msra.mxu0 %v1224_v39  ;;  %v759_v40 = vadd.f32 %v4525_v33, %v653_v20  ;;  %v1722_v20 = vld [vmem:[#allocation14 + $0x2e0] sm:$0xff] }
 0x10f   : > { %839 = vmatmul.f32.gmra.mxu0 %v4450_v41  ;;  %1017 = vmatmul.f32.gmra.mxu2 %v4464_v48 }
 0x110   : > { %1406 = vmatpush.msra.mxu2 %v1299_v0  ;;  %v4617_v0 = vld [vmem:[%s6032_s6 + $0x1] ss:$0 sm:$0xff] }
 0x111   : > { %928 = vmatmul.f32.gmra.mxu1 %v866_v53  ;;  %v1223_v53 = vld [vmem:[#allocation13 + $0x10] sm:$0xff] }
 0x112   : > { %1106 = vmatmul.f32.gmra.mxu3 %v1044_v54  ;;  %v4545_v34 = vpop.f32.mrf.mxu2  ;;  %1250 = vmatpush.msra.mxu0 %v1223_v53  ;;  %v1725_v53 = vld [vmem:[#allocation14 + $0x2f8] sm:$0xff] }
 0x113   : > { %1407 = vmatpush.msra.mxu2 %v1298_v13  ;;  %v1724_v13 = vld [vmem:[#allocation14 + $0x2f0] sm:$0xff] }
 0x114   : > { %v4547_v41 = vpop.f32.mrf.mxu0  ;;  %1251 = vmatpush.msra.mxu0 %v1222_v55  ;;  %v1547_v55 = vld [vmem:[#allocation14 + $0x1f8] sm:$0xff] }
 0x115   : > { %6088 = vst [vmem:[#allocation28_spill] sm:$0xff] %v4547_v41  ;;  %v4550_v48 = vpop.f32.mrf.mxu3  ;;  %1726 = vmatpush.msrb.mxu2 %v1725_v53  ;;  %v425_v53 = vld [vmem:[#allocation8] sm:$0xff] }
 0x116   : > { %v4552_v57 = vpop.f32.mrf.mxu1  ;;  %1252 = vmatpush.msra.mxu0 %v1221_v10  ;;  %v1814_v10 = vld [vmem:[#allocation14 + $0x378] sm:$0xff] }
 0x117   : > { %842 = vmatmul.f32.gmra.mxu0 %v4460_v45  ;;  %1020 = vmatmul.f32.gmra.mxu2 %v956_v56  ;;  %v1456_v56 = vld [vmem:[#allocation14 + $0x110] sm:$0xff] }
 0x118   : > { %1483 = vmatpush.msra.mxu3 %v1456_v56  ;;  %1548 = vmatpush.msrb.mxu0 %v1547_v55 }
 0x119   : > { %931 = vmatmul.f32.gmra.mxu1 %v867_v46  ;;  %v4152_v46 = vmov 0.0   ;;  %1727 = vmatpush.msrb.mxu2 %v1724_v13  ;;  %v1811_v13 = vld [vmem:[#allocation14 + $0x360] sm:$0xff] }
 0x11a   : > { %1109 = vmatmul.f32.gmra.mxu3 %v1045_v60  ;;  %v4557_v3 = vpop.f32.mrf.mxu2  ;;  %1135 = vst [vmem:[#allocation2] sm:$0xff] %v4152_v46  ;;  %v1328_v60 = vld [vmem:[#allocation14 + $0x90] sm:$0xff] }
 0x11b   : > { %1136 = vst [vmem:[#allocation2 + $0x60] sm:$0xff] %v4152_v46  ;;  %1355 = vmatpush.msra.mxu1 %v1328_v60  ;;  %1484 = vmatpush.msra.mxu3 %v1455_v1  ;;  %v4610_v46 = vld [vmem:[%s6032_s6] ss:$0 sm:$0xff] }
 0x11c   : > { %v4559_v9 = vpop.f32.mrf.mxu0 }
 0x11d   : > { %6089 = vst [vmem:[#allocation29_spill] sm:$0xff] %v4559_v9  ;;  %v4561_v45 = vpop.f32.mrf.mxu3  ;;  %1356 = vmatpush.msra.mxu1 %v1327_v4  ;;  %1485 = vmatpush.msra.mxu3 %v1454_v14  ;;  %v1546_v14 = vld [vmem:[#allocation14 + $0x1f0] sm:$0xff] }
 0x11e   : > { %v4563_v11 = vpop.f32.mrf.mxu1  ;;  %1549 = vmatpush.msrb.mxu0 %v1546_v14 }
 0x11f   : > { %1357 = vmatpush.msra.mxu1 %v1326_v17  ;;  %1815 = vmatpush.msrb.mxu3 %v1814_v10  ;;  %v1813_v17 = vld [vmem:[#allocation14 + $0x370] sm:$0xff] }
 0x121   : > { %1637 = vmatpush.msrb.mxu1 %v1636_v59  ;;  %1816 = vmatpush.msrb.mxu3 %v1813_v17 }
 0x122   : > { %v4565_v18 = vpop.f32.mrf.mxu2 }
 0x124   : > { %v4567_v23 = vpop.f32.mrf.mxu0 }
 0x125   : > { %6090 = vst [vmem:[#allocation30_spill] sm:$0xff] %v4567_v23  ;;  %v4569_v24 = vpop.f32.mrf.mxu3 }
 0x126   : > { %v4571_v25 = vpop.f32.mrf.mxu1 }
 0x12a   : > { %v4573_v38 = vpop.f32.mrf.mxu2 }
 0x12c   : > { %v4575_v42 = vpop.f32.mrf.mxu0 }
 0x12d   : > { %6091 = vst [vmem:[#allocation31_spill] sm:$0xff] %v4575_v42  ;;  %v4577_v44 = vpop.f32.mrf.mxu3 }
 0x12e   : > { %v4579_v49 = vpop.f32.mrf.mxu1 }
 0x132   : > { %v4581_v51 = vpop.f32.mrf.mxu2 }
 0x134   : > { %v4583_v54 = vpop.f32.mrf.mxu0 }
 0x135   : > { %6092 = vst [vmem:[#allocation32_spill] sm:$0xff] %v4583_v54  ;;  %v4585_v62 = vpop.f32.mrf.mxu3 }
 0x136   : > { %v4587_v16 = vpop.f32.mrf.mxu1 }
 0x13a   : > { %v4589_v61 = vpop.f32.mrf.mxu2 }
 0x13c   : > { %v4591_v63 = vpop.f32.mrf.mxu0 }
 0x13d   : > { %6093 = vst [vmem:[#allocation33_spill] sm:$0xff] %v4591_v63  ;;  %v4593_v8 = vpop.f32.mrf.mxu3 }
 0x13e   : > { %v4595_v12 = vpop.f32.mrf.mxu1 }
 0x142   : > { %v4599_v26 = vpop.f32.mrf.mxu2 }
 0x144   : > { %v813_v29 = vpop.f32.mrf.mxu0 }
 0x145   : > { %v4602_v31 = vpop.f32.mrf.mxu3  ;;  %v846_v36 = vadd.f32 %v813_v29, %v757_v28  ;;  %v1635_v28 = vld [vmem:[#allocation14 + $0x270] sm:$0xff]  ;;  %v1723_v29 = vld [vmem:[#allocation14 + $0x2e8] sm:$0xff] }
 0x146   : > { %v902_v39 = vpop.f32.mrf.mxu1  ;;  %1638 = vmatpush.msrb.mxu1 %v1635_v28  ;;  %1728 = vmatpush.msrb.mxu2 %v1723_v29 }
 0x147   : > { %v935_v27 = vadd.f32 %v902_v39, %v846_v36 }
 0x148   : > { %1729 = vmatpush.msrb.mxu2 %v1722_v20 }
 0x14a   : > { %v991_v2 = vpop.f32.mrf.mxu2 }
 0x14b   : > { %v1024_v50 = vadd.f32 %v991_v2, %v935_v27 }
 0x14c   : > { %v816_v56 = vpop.f32.mrf.mxu0 }
 0x14d   : > { %v847_v7 = vadd.f32 %v816_v56, %v758_v6  ;;  %v1080_v15 = vpop.f32.mrf.mxu3  ;;  %v1545_v56 = vld [vmem:[#allocation14 + $0x1e8] sm:$0xff] }
 0x14e   : > { %v4612_v60 = vadd.f32 %v1080_v15, %v1024_v50  ;;  %v905_v1 = vpop.f32.mrf.mxu1  ;;  %v656_v50 = vadd.f32 %v4533_v47, %v4527_v35  ;;  %v1634_v15 = vld [vmem:[#allocation14 + $0x268] sm:$0xff]  ;;  %1550 = vmatpush.msrb.mxu0 %v1545_v56  ;;  %v426_v47 = vld [vmem:[#allocation8 + $0x8] sm:$0xff] }
 0x14f   : > { %v936_v22 = vadd.f32 %v905_v1, %v847_v7  ;;  %v1812_v7 = vld [vmem:[#allocation14 + $0x368] sm:$0xff]  ;;  %1639 = vmatpush.msrb.mxu1 %v1634_v15  ;;  %v1632_v15 = vld [vmem:[#allocation14 + $0x258] sm:$0xff] }
 0x150   : > { %6094 = vst [vmem:[#allocation34_spill] sm:$0xff] %v4612_v60  ;;  %v1139_v4 = vmul.f32 %v4610_v46, %v4612_v60  ;;  %1817 = vmatpush.msrb.mxu3 %v1812_v7  ;;  %v760_v35 = vadd.f32 %v4537_v37, %v656_v50  ;;  %v1721_v50 = vld [vmem:[#allocation14 + $0x2d8] sm:$0xff] }
 0x151   : > { %v1810_v7 = vld [vmem:[#allocation14 + $0x358] sm:$0xff]  ;;  %1730 = vmatpush.msrb.mxu2 %v1721_v50 }
 0x152   : > { %v1152_v36 = vadd.f32 %v4617_v0, %v1139_v4  ;;  %v994_v39 = vpop.f32.mrf.mxu2  ;;  %v1544_v4 = vld [vmem:[#allocation14 + $0x1e0] sm:$0xff]  ;;  %1818 = vmatpush.msrb.mxu3 %v1811_v13 }
 0x153   : > { %v1025_v21 = vadd.f32 %v994_v39, %v936_v22  ;;  %1551 = vmatpush.msrb.mxu0 %v1544_v4  ;;  %v427_v4 = vld [vmem:[#allocation8 + $0x10] sm:$0xff] }
 0x154   : > { %v1163_v30 = vmax.f32 %v1152_v36, 0.0  ;;  %v819_v55 = vpop.f32.mrf.mxu0  ;;  %1819 = vmatpush.msrb.mxu3 %v1810_v7  ;;  %v428_v7 = vld [vmem:[#allocation8 + $0x18] sm:$0xff] }
 0x155   : > { %v848_v10 = vadd.f32 %v819_v55, %v759_v40  ;;  %v1083_v27 = vpop.f32.mrf.mxu3 }
 0x156   : > { %v4625_v59 = vmul.f32 %v1163_v30, %v425_v53  ;;  %v4627_v2 = vadd.f32 %v1083_v27, %v1025_v21  ;;  %v908_v6 = vpop.f32.mrf.mxu1  ;;  %v659_v30 = vadd.f32 %v4545_v34, %v4539_v43  ;;  %v1720_v43 = vld [vmem:[#allocation14 + $0x2d0] sm:$0xff] }
 0x157   : > { %v937_v1 = vadd.f32 %v908_v6, %v848_v10  ;;  %v1633_v6 = vld [vmem:[#allocation14 + $0x260] sm:$0xff]  ;;  %1731 = vmatpush.msrb.mxu2 %v1720_v43 }
 0x158   : > { %6095 = vst [vmem:[#allocation35_spill] sm:$0xff] %v4627_v2  ;;  %v1140_v33 = vmul.f32 %v4610_v46, %v4627_v2  ;;  %1253 = vmatmul.f32.vlgmr.msra.gmra.mxu0 %v4625_v59  ;;  %1640 = vmatpush.msrb.mxu1 %v1633_v6  ;;  %v761_v20 = vadd.f32 %v4550_v48, %v659_v30  ;;  %v1808_v6 = vld [vmem:[#allocation14 + $0x348] sm:$0xff] }
 0x159   : > { %1185 = vst [vmem:[#allocation2 + $0x8] sm:$0xff] %v4625_v59 }
 0x15a   : > { %v1153_v14 = vadd.f32 %v4617_v0, %v1140_v33  ;;  %v997_v17 = vpop.f32.mrf.mxu2  ;;  %v1543_v33 = vld [vmem:[#allocation14 + $0x1d8] sm:$0xff]  ;;  %1641 = vmatpush.msrb.mxu1 %v1632_v15 }
 0x15b   : > { %v1026_v22 = vadd.f32 %v997_v17, %v937_v1  ;;  %1552 = vmatpush.msrb.mxu0 %v1543_v33 }
 0x15c   : > { %v1164_v28 = vmax.f32 %v1153_v14, 0.0  ;;  %v822_v29 = vpop.f32.mrf.mxu0 }
 0x15d   : > { %v849_v36 = vadd.f32 %v822_v29, %v760_v35  ;;  %v1086_v39 = vpop.f32.mrf.mxu3 }
 0x15e   : > { %v4637_v40 = vmul.f32 %v1164_v28, %v426_v47  ;;  %v4639_v53 = vadd.f32 %v1086_v39, %v1026_v22  ;;  %v911_v21 = vpop.f32.mrf.mxu1 }
 0x15f   : > { %v938_v56 = vadd.f32 %v911_v21, %v849_v36  ;;  %v662_v36 = vadd.f32 %v4557_v3, %v4552_v57  ;;  %v1719_v57 = vld [vmem:[#allocation14 + $0x2c8] sm:$0xff] }
 0x160   : > { %6096 = vst [vmem:[#allocation36_spill] sm:$0xff] %v4639_v53  ;;  %v1314_v55 = vld [vmem:[#allocation2 + $0x4] sm:$0xff]  ;;  %v1141_v37 = vmul.f32 %v4610_v46, %v4639_v53  ;;  %1256 = vmatmul.f32.gmra.mxu0 %v4637_v40  ;;  %v1541_v3 = vld [vmem:[#allocation14 + $0x1c8] sm:$0xff]  ;;  %1732 = vmatpush.msrb.mxu2 %v1719_v57 }
 0x161   : > { %v1287_v10 = vld [vmem:[#allocation2 + $0x3] sm:$0xff]  ;;  %1186 = vst [vmem:[#allocation2 + $0x10] sm:$0xff] %v4637_v40  ;;  %1358 = vmatmul.f32.vlgmr.msra.gmra.mxu1 %v1314_v55  ;;  %v429_v57 = vld [vmem:[#allocation8 + $0x20] sm:$0xff] }
 0x162   : > { %v1442_v27 = vld [vmem:[#allocation2 + $0x7] sm:$0xff]  ;;  %1408 = vmatmul.f32.vlgmr.msra.gmra.mxu2 %v1287_v10  ;;  %v1154_v34 = vadd.f32 %v4617_v0, %v1141_v37  ;;  %v1000_v1 = vpop.f32.mrf.mxu2 }
 0x163   : > { %1486 = vmatmul.f32.vlgmr.msra.gmra.mxu3 %v1442_v27  ;;  %v1027_v13 = vadd.f32 %v1000_v1, %v938_v56  ;;  %v1542_v55 = vld [vmem:[#allocation14 + $0x1d0] sm:$0xff]  ;;  %v762_v56 = vadd.f32 %v4561_v45, %v662_v36  ;;  %v1630_v36 = vld [vmem:[#allocation14 + $0x248] sm:$0xff] }
 0x164   : > { %v1165_v14 = vmax.f32 %v1154_v34, 0.0  ;;  %v825_v17 = vpop.f32.mrf.mxu0  ;;  %v1809_v10 = vld [vmem:[#allocation14 + $0x350] sm:$0xff]  ;;  %1553 = vmatpush.msrb.mxu0 %v1542_v55  ;;  %v1717_v55 = vld [vmem:[#allocation14 + $0x2b8] sm:$0xff] }
 0x165   : > { %v850_v35 = vadd.f32 %v825_v17, %v761_v20  ;;  %v1089_v47 = vpop.f32.mrf.mxu3  ;;  %v1631_v27 = vld [vmem:[#allocation14 + $0x250] sm:$0xff]  ;;  %1820 = vmatpush.msrb.mxu3 %v1809_v10  ;;  %v665_v17 = vadd.f32 %v4565_v18, %v4563_v11  ;;  %v1807_v11 = vld [vmem:[#allocation14 + $0x340] sm:$0xff] }
 0x166   : > { %v4649_v22 = vmul.f32 %v1165_v14, %v427_v4  ;;  %v4651_v28 = vadd.f32 %v1089_v47, %v1027_v13  ;;  %v914_v29 = vpop.f32.mrf.mxu1  ;;  %1642 = vmatpush.msrb.mxu1 %v1631_v27  ;;  %1554 = vmatpush.msrb.mxu0 %v1541_v3  ;;  %v1629_v18 = vld [vmem:[#allocation14 + $0x240] sm:$0xff] }
 0x167   : > { %v939_v37 = vadd.f32 %v914_v29, %v850_v35  ;;  %1821 = vmatpush.msrb.mxu3 %v1808_v6 }
 0x168   : > { %6097 = vst [vmem:[#allocation37_spill] sm:$0xff] %v4651_v28  ;;  %v4655_v39 = vld [vmem:[#allocation2 + $0xc] sm:$0xff]  ;;  %v1142_v30 = vmul.f32 %v4610_v46, %v4651_v28  ;;  %1259 = vmatmul.f32.gmra.mxu0 %v4649_v22  ;;  %1643 = vmatpush.msrb.mxu1 %v1630_v36  ;;  %v1805_v36 = vld [vmem:[#allocation14 + $0x330] sm:$0xff] }
 0x169   : > { %v1288_v48 = vld [vmem:[#allocation2 + $0xb] sm:$0xff]  ;;  %1187 = vst [vmem:[#allocation2 + $0x18] sm:$0xff] %v4649_v22  ;;  %1361 = vmatmul.f32.gmra.mxu1 %v4655_v39  ;;  %1822 = vmatpush.msrb.mxu3 %v1807_v11  ;;  %v430_v11 = vld [vmem:[#allocation8 + $0x28] sm:$0xff] }
 0x16a   : > { %v1443_v21 = vld [vmem:[#allocation2 + $0xf] sm:$0xff]  ;;  %1411 = vmatmul.f32.gmra.mxu2 %v1288_v48  ;;  %v1155_v50 = vadd.f32 %v4617_v0, %v1142_v30  ;;  %v1003_v33 = vpop.f32.mrf.mxu2  ;;  %1644 = vmatpush.msrb.mxu1 %v1629_v18 }
 0x16b   : > { %1489 = vmatmul.f32.gmra.mxu3 %v1443_v21  ;;  %v1028_v15 = vadd.f32 %v1003_v33, %v939_v37  ;;  %v1718_v48 = vld [vmem:[#allocation14 + $0x2c0] sm:$0xff]  ;;  %v763_v37 = vadd.f32 %v4569_v24, %v665_v17  ;;  %v1539_v17 = vld [vmem:[#allocation14 + $0x1b8] sm:$0xff] }
 0x16c   : > { %v1166_v43 = vmax.f32 %v1155_v50, 0.0  ;;  %v828_v34 = vpop.f32.mrf.mxu0  ;;  %v1540_v21 = vld [vmem:[#allocation14 + $0x1c0] sm:$0xff]  ;;  %1733 = vmatpush.msrb.mxu2 %v1718_v48 }
 0x16d   : > { %v851_v1 = vadd.f32 %v828_v34, %v762_v56  ;;  %v1092_v20 = vpop.f32.mrf.mxu3  ;;  %1555 = vmatpush.msrb.mxu0 %v1540_v21  ;;  %v668_v34 = vadd.f32 %v4573_v38, %v4571_v25  ;;  %v1716_v25 = vld [vmem:[#allocation14 + $0x2b0] sm:$0xff] }
 0x16e   : > { %v4664_v4 = vmul.f32 %v1166_v43, %v428_v7  ;;  %v4666_v13 = vadd.f32 %v1092_v20, %v1028_v15  ;;  %v917_v14 = vpop.f32.mrf.mxu1  ;;  %1734 = vmatpush.msrb.mxu2 %v1717_v55  ;;  %v1538_v38 = vld [vmem:[#allocation14 + $0x1b0] sm:$0xff] }
 0x16f   : > { %v940_v30 = vadd.f32 %v917_v14, %v851_v1  ;;  %1556 = vmatpush.msrb.mxu0 %v1539_v17 }
 0x170   : > { %6098 = vst [vmem:[#allocation38_spill] sm:$0xff] %v4666_v13  ;;  %v4670_v35 = vld [vmem:[#allocation2 + $0x14] sm:$0xff]  ;;  %v1143_v29 = vmul.f32 %v4610_v46, %v4666_v13  ;;  %1262 = vmatmul.f32.gmra.mxu0 %v4664_v4  ;;  %1735 = vmatpush.msrb.mxu2 %v1716_v25 }
 0x171   : > { %v1289_v45 = vld [vmem:[#allocation2 + $0x13] sm:$0xff]  ;;  %1188 = vst [vmem:[#allocation2 + $0x20] sm:$0xff] %v4664_v4  ;;  %1364 = vmatmul.f32.gmra.mxu1 %v4670_v35  ;;  %1557 = vmatpush.msrb.mxu0 %v1538_v38 }
 0x172   : > { %v1444_v47 = vld [vmem:[#allocation2 + $0x17] sm:$0xff]  ;;  %1414 = vmatmul.f32.gmra.mxu2 %v1289_v45  ;;  %v1156_v10 = vadd.f32 %v4617_v0, %v1143_v29  ;;  %v1006_v27 = vpop.f32.mrf.mxu2  ;;  %v1806_v45 = vld [vmem:[#allocation14 + $0x338] sm:$0xff] }
 0x173   : > { %1492 = vmatmul.f32.gmra.mxu3 %v1444_v47  ;;  %v1029_v3 = vadd.f32 %v1006_v27, %v940_v30  ;;  %v1628_v47 = vld [vmem:[#allocation14 + $0x238] sm:$0xff]  ;;  %v764_v30 = vadd.f32 %v4577_v44, %v668_v34  ;;  %v1627_v34 = vld [vmem:[#allocation14 + $0x230] sm:$0xff] }
 0x174   : > { %v1167_v6 = vmax.f32 %v1156_v10, 0.0  ;;  %v831_v50 = vpop.f32.mrf.mxu0  ;;  %1823 = vmatpush.msrb.mxu3 %v1806_v45  ;;  %1645 = vmatpush.msrb.mxu1 %v1628_v47 }
 0x175   : > { %v852_v33 = vadd.f32 %v831_v50, %v763_v37  ;;  %v1095_v56 = vpop.f32.mrf.mxu3  ;;  %v671_v50 = vadd.f32 %v4581_v51, %v4579_v49  ;;  %v1804_v49 = vld [vmem:[#allocation14 + $0x328] sm:$0xff] }
 0x176   : > { %v4679_v7 = vmul.f32 %v1167_v6, %v429_v57  ;;  %v4681_v15 = vadd.f32 %v1095_v56, %v1029_v3  ;;  %v920_v43 = vpop.f32.mrf.mxu1  ;;  %1824 = vmatpush.msrb.mxu3 %v1805_v36  ;;  %v1626_v51 = vld [vmem:[#allocation14 + $0x228] sm:$0xff]  ;;  %1646 = vmatpush.msrb.mxu1 %v1627_v34 }
 0x177   : > { %v941_v29 = vadd.f32 %v920_v43, %v852_v33  ;;  %v765_v47 = vadd.f32 %v4585_v62, %v671_v50  ;;  %v1536_v50 = vld [vmem:[#allocation14 + $0x1a0] sm:$0xff] }
 0x178   : > { %6099 = vst [vmem:[#allocation39_spill] sm:$0xff] %v4681_v15  ;;  %v4685_v1 = vld [vmem:[#allocation2 + $0x1c] sm:$0xff]  ;;  %v1144_v14 = vmul.f32 %v4610_v46, %v4681_v15  ;;  %1265 = vmatmul.f32.gmra.mxu0 %v4679_v7  ;;  %1825 = vmatpush.msrb.mxu3 %v1804_v49 }
 0x179   : > { %v1290_v24 = vld [vmem:[#allocation2 + $0x1b] sm:$0xff]  ;;  %1189 = vst [vmem:[#allocation2 + $0x28] sm:$0xff] %v4679_v7  ;;  %1367 = vmatmul.f32.gmra.mxu1 %v4685_v1 }
 0x17a   : > { %v1445_v20 = vld [vmem:[#allocation2 + $0x1f] sm:$0xff]  ;;  %1417 = vmatmul.f32.gmra.mxu2 %v1290_v24  ;;  %v1157_v48 = vadd.f32 %v4617_v0, %v1144_v14  ;;  %v1009_v21 = vpop.f32.mrf.mxu2  ;;  %1647 = vmatpush.msrb.mxu1 %v1626_v51  ;;  %v432_v51 = vld [vmem:[#allocation8 + $0x38] sm:$0xff] }
 0x17b   : > { %1495 = vmatmul.f32.gmra.mxu3 %v1445_v20  ;;  %v1030_v18 = vadd.f32 %v1009_v21, %v941_v29  ;;  %v1715_v24 = vld [vmem:[#allocation14 + $0x2a8] sm:$0xff]  ;;  %v431_v29 = vld [vmem:[#allocation8 + $0x30] sm:$0xff] }
 0x17c   : > { %v1168_v55 = vmax.f32 %v1157_v48, 0.0  ;;  %v834_v10 = vpop.f32.mrf.mxu0  ;;  %v1537_v20 = vld [vmem:[#allocation14 + $0x1a8] sm:$0xff]  ;;  %1736 = vmatpush.msrb.mxu2 %v1715_v24 }
 0x17d   : > { %v853_v27 = vadd.f32 %v834_v10, %v764_v30  ;;  %v1098_v37 = vpop.f32.mrf.mxu3  ;;  %1558 = vmatpush.msrb.mxu0 %v1537_v20  ;;  %v1802_v20 = vld [vmem:[#allocation14 + $0x318] sm:$0xff] }
 0x17e   : > { %v4694_v57 = vmul.f32 %v1168_v55, %v430_v11  ;;  %v4696_v3 = vadd.f32 %v1098_v37, %v1030_v18  ;;  %v923_v6 = vpop.f32.mrf.mxu1  ;;  %v674_v55 = vadd.f32 %v4589_v61, %v4587_v16  ;;  %v1625_v16 = vld [vmem:[#allocation14 + $0x220] sm:$0xff]  ;;  %v1713_v61 = vld [vmem:[#allocation14 + $0x298] sm:$0xff] }
 0x17f   : > { %v942_v14 = vadd.f32 %v923_v6, %v853_v27  ;;  %v1714_v6 = vld [vmem:[#allocation14 + $0x2a0] sm:$0xff]  ;;  %1559 = vmatpush.msrb.mxu0 %v1536_v50  ;;  %1648 = vmatpush.msrb.mxu1 %v1625_v16  ;;  %v1800_v16 = vld [vmem:[#allocation14 + $0x308] sm:$0xff] }
 0x180   : > { %6100 = vst [vmem:[#allocation40_spill] sm:$0xff] %v4696_v3  ;;  %v4700_v33 = vld [vmem:[#allocation2 + $0x24] sm:$0xff]  ;;  %v1145_v43 = vmul.f32 %v4610_v46, %v4696_v3  ;;  %1268 = vmatmul.f32.gmra.mxu0 %v4694_v57  ;;  %1737 = vmatpush.msrb.mxu2 %v1714_v6  ;;  %v766_v49 = vadd.f32 %v4593_v8, %v674_v55  ;;  %v1711_v55 = vld [vmem:[#allocation14 + $0x288] sm:$0xff] }
 0x181   : > { %v1291_v44 = vld [vmem:[#allocation2 + $0x23] sm:$0xff]  ;;  %1190 = vst [vmem:[#allocation2 + $0x30] sm:$0xff] %v4694_v57  ;;  %1370 = vmatmul.f32.gmra.mxu1 %v4700_v33 }
 0x182   : > { %v1446_v56 = vld [vmem:[#allocation2 + $0x27] sm:$0xff]  ;;  %1420 = vmatmul.f32.gmra.mxu2 %v1291_v44  ;;  %v1158_v17 = vadd.f32 %v4617_v0, %v1145_v43  ;;  %v1012_v45 = vpop.f32.mrf.mxu2  ;;  %v1803_v44 = vld [vmem:[#allocation14 + $0x320] sm:$0xff] }
 0x183   : > { %1498 = vmatmul.f32.gmra.mxu3 %v1446_v56  ;;  %v1031_v25 = vadd.f32 %v1012_v45, %v942_v14  ;;  %v1535_v43 = vld [vmem:[#allocation14 + $0x198] sm:$0xff]  ;;  %v1712_v45 = vld [vmem:[#allocation14 + $0x290] sm:$0xff]  ;;  %1738 = vmatpush.msrb.mxu2 %v1713_v61 }
 0x184   : > { %v1169_v38 = vmax.f32 %v1158_v17, 0.0  ;;  %v837_v36 = vpop.f32.mrf.mxu0  ;;  %v1624_v14 = vld [vmem:[#allocation14 + $0x218] sm:$0xff]  ;;  %1826 = vmatpush.msrb.mxu3 %v1803_v44  ;;  %1560 = vmatpush.msrb.mxu0 %v1535_v43  ;;  %v1532_v43 = vld [vmem:[#allocation14 + $0x180] sm:$0xff] }
 0x185   : > { %v854_v48 = vadd.f32 %v837_v36, %v765_v47  ;;  %v1101_v21 = vpop.f32.mrf.mxu3  ;;  %v1534_v47 = vld [vmem:[#allocation14 + $0x190] sm:$0xff]  ;;  %1649 = vmatpush.msrb.mxu1 %v1624_v14  ;;  %1739 = vmatpush.msrb.mxu2 %v1712_v45  ;;  %v1621_v14 = vld [vmem:[#allocation14 + $0x200] sm:$0xff] }
 0x186   : > { %v4709_v30 = vmul.f32 %v1169_v38, %v431_v29  ;;  %v4711_v11 = vadd.f32 %v1101_v21, %v1031_v25  ;;  %v926_v18 = vpop.f32.mrf.mxu1  ;;  %v1801_v38 = vld [vmem:[#allocation14 + $0x310] sm:$0xff]  ;;  %1827 = vmatpush.msrb.mxu3 %v1802_v20  ;;  %1561 = vmatpush.msrb.mxu0 %v1534_v47  ;;  %v1799_v20 = vld [vmem:[#allocation14 + $0x300] sm:$0xff] }
 0x187   : > { %v943_v56 = vadd.f32 %v926_v18, %v854_v48  ;;  %v1623_v36 = vld [vmem:[#allocation14 + $0x210] sm:$0xff]  ;;  %1740 = vmatpush.msrb.mxu2 %v1711_v55 }
 0x188   : > { %6101 = vst [vmem:[#allocation41_spill] sm:$0xff] %v4711_v11  ;;  %v4715_v10 = vld [vmem:[#allocation2 + $0x2c] sm:$0xff]  ;;  %v1146_v37 = vmul.f32 %v4610_v46, %v4711_v11  ;;  %1271 = vmatmul.f32.gmra.mxu0 %v4709_v30  ;;  %1828 = vmatpush.msrb.mxu3 %v1801_v38  ;;  %v2324_v11 = vld [vmem:[#allocation13 + $0x28] sm:$0xff] }
 0x189   : > { %v1292_v62 = vld [vmem:[#allocation2 + $0x2b] sm:$0xff]  ;;  %1191 = vst [vmem:[#allocation2 + $0x38] sm:$0xff] %v4709_v30  ;;  %1373 = vmatmul.f32.gmra.mxu1 %v4715_v10 }
 0x18a   : > { %v1447_v27 = vld [vmem:[#allocation2 + $0x2f] sm:$0xff]  ;;  %1423 = vmatmul.f32.gmra.mxu2 %v1292_v62  ;;  %v1159_v34 = vadd.f32 %v4617_v0, %v1146_v37  ;;  %v1015_v24 = vpop.f32.mrf.mxu2  ;;  %v677_v37 = vadd.f32 %v4599_v26, %v4595_v12  ;;  %1650 = vmatpush.msrb.mxu1 %v1623_v36  ;;  %v1622_v12 = vld [vmem:[#allocation14 + $0x208] sm:$0xff] }
 0x18b   : > { %1501 = vmatmul.f32.gmra.mxu3 %v1447_v27  ;;  %v1032_v17 = vadd.f32 %v1015_v24, %v943_v56  ;;  %v1533_v27 = vld [vmem:[#allocation14 + $0x188] sm:$0xff]  ;;  %v1710_v26 = vld [vmem:[#allocation14 + $0x280] sm:$0xff] }
 0x18c   : > { %v1170_v29 = vmax.f32 %v1159_v34, 0.0  ;;  %v840_v25 = vpop.f32.mrf.mxu0  ;;  %1562 = vmatpush.msrb.mxu0 %v1533_v27  ;;  %1829 = vmatpush.msrb.mxu3 %v1800_v16 }
 0x18d   : > { %v855_v48 = vadd.f32 %v840_v25, %v766_v49  ;;  %v1104_v21 = vpop.f32.mrf.mxu3  ;;  %v767_v49 = vadd.f32 %v4602_v31, %v677_v37  ;;  %1651 = vmatpush.msrb.mxu1 %v1622_v12  ;;  %1741 = vmatpush.msrb.mxu2 %v1710_v26 }
 0x18e   : > { %v4724_v18 = vmul.f32 %v1170_v29, %v432_v51  ;;  %v4726_v62 = vadd.f32 %v1104_v21, %v1032_v17  ;;  %v929_v8 = vpop.f32.mrf.mxu1  ;;  %v433_v51 = vld [vmem:[#allocation8 + $0x40] sm:$0xff]  ;;  %1563 = vmatpush.msrb.mxu0 %v1532_v43  ;;  %1830 = vmatpush.msrb.mxu3 %v1799_v20 }
 0x18f   : > { %v944_v61 = vadd.f32 %v929_v8, %v855_v48  ;;  %1652 = vmatpush.msrb.mxu1 %v1621_v14 }
 0x190   : > { %6102 = vst [vmem:[#allocation42_spill] sm:$0xff] %v4726_v62  ;;  %v4730_v6 = vld [vmem:[#allocation2 + $0x34] sm:$0xff]  ;;  %v1147_v56 = vmul.f32 %v4610_v46, %v4726_v62  ;;  %1274 = vmatmul.f32.gmra.mxu0 %v4724_v18 }
 0x191   : > { %v1293_v50 = vld [vmem:[#allocation2 + $0x33] sm:$0xff]  ;;  %1192 = vst [vmem:[#allocation2 + $0x40] sm:$0xff] %v4724_v18  ;;  %1376 = vmatmul.f32.gmra.mxu1 %v4730_v6 }
 0x192   : > { %v1448_v44 = vld [vmem:[#allocation2 + $0x37] sm:$0xff]  ;;  %1426 = vmatmul.f32.gmra.mxu2 %v1293_v50  ;;  %v1160_v34 = vadd.f32 %v4617_v0, %v1147_v56  ;;  %v1018_v24 = vpop.f32.mrf.mxu2 }
 0x193   : > { %1504 = vmatmul.f32.gmra.mxu3 %v1448_v44  ;;  %v1033_v17 = vadd.f32 %v1018_v24, %v944_v61  ;;  %v434_v44 = vld [vmem:[#allocation8 + $0x48] sm:$0xff] }
 0x194   : > { %v1171_v45 = vmax.f32 %v1160_v34, 0.0  ;;  %v843_v47 = vpop.f32.mrf.mxu0 }
 0x195   : > { %v856_v29 = vadd.f32 %v843_v47, %v767_v49  ;;  %v1107_v25 = vpop.f32.mrf.mxu3  ;;  %v435_v49 = vld [vmem:[#allocation8 + $0x50] sm:$0xff] }
 0x196   : > { %v4739_v38 = vmul.f32 %v1171_v45, %v433_v51  ;;  %v4741_v36 = vadd.f32 %v1107_v25, %v1033_v17  ;;  %v932_v48 = vpop.f32.mrf.mxu1 }
 0x197   : > { %v945_v27 = vadd.f32 %v932_v48, %v856_v29  ;;  %v1609_v48 = vld [vmem:[#allocation2 + $0x9] sm:$0xff] }
 0x198   : > { %6103 = vst [vmem:[#allocation43_spill] sm:$0xff] %v4741_v36  ;;  %v4743_v21 = vld [vmem:[#allocation2 + $0x3c] sm:$0xff]  ;;  %v1148_v55 = vmul.f32 %v4610_v46, %v4741_v36  ;;  %1277 = vmatmul.f32.gmra.mxu0 %v4739_v38 }
 0x199   : > { %v1294_v31 = vld [vmem:[#allocation2 + $0x3b] sm:$0xff]  ;;  %1193 = vst [vmem:[#allocation2 + $0x48] sm:$0xff] %v4739_v38  ;;  %1379 = vmatmul.f32.gmra.mxu1 %v4743_v21 }
 0x19a   : > { %v1449_v8 = vld [vmem:[#allocation2 + $0x3f] sm:$0xff]  ;;  %1429 = vmatmul.f32.gmra.mxu2 %v1294_v31  ;;  %v1161_v37 = vadd.f32 %v4617_v0, %v1148_v55  ;;  %v1021_v50 = vpop.f32.mrf.mxu2  ;;  %v1787_v31 = vld [vmem:[#allocation2 + $0xd] sm:$0xff]  ;;  %v1788_v55 = vld [vmem:[#allocation2 + $0x15] sm:$0xff] }
 0x19b   : > { %1507 = vmatmul.f32.gmra.mxu3 %v1449_v8  ;;  %v1034_v56 = vadd.f32 %v1021_v50, %v945_v27  ;;  %v1610_v8 = vld [vmem:[#allocation2 + $0x11] sm:$0xff]  ;;  %v1611_v27 = vld [vmem:[#allocation2 + $0x19] sm:$0xff] }
 0x19c   : > { %v1172_v16 = vmax.f32 %v1161_v37, 0.0  ;;  %v1613_v37 = vld [vmem:[#allocation2 + $0x29] sm:$0xff]  ;;  %v1614_v50 = vld [vmem:[#allocation2 + $0x31] sm:$0xff]  ;;  %v2556_v36 = vld [vmem:[#allocation14 + $0x130] sm:$0xff] }
 0x19d   : > { %v1110_v61 = vpop.f32.mrf.mxu3 }
 0x19e   : > { %v4751_v12 = vmul.f32 %v1172_v16, %v434_v44  ;;  %v4753_v26 = vadd.f32 %v1110_v61, %v1034_v56  ;;  %v1793_v16 = vld [vmem:[#allocation2 + $0x3d] sm:$0xff]  ;;  %v2411_v61 = vld [vmem:[#allocation14 + $0x78] sm:$0xff] }
 0x19f   : > { %2489 = vmatpush.msra.mxu2 %v2411_v61 }
 0x1a0   : > { %6104 = vst [vmem:[#allocation44_spill] sm:$0xff] %v4753_v26  ;;  %v4755_v43 = vld [vmem:[#allocation2 + $0x44] sm:$0xff]  ;;  %v1149_v20 = vmul.f32 %v4610_v46, %v4753_v26  ;;  %1280 = vmatmul.f32.gmra.mxu0 %v4751_v12 }
 0x1a1   : > { %v1295_v34 = vld [vmem:[#allocation2 + $0x43] sm:$0xff]  ;;  %1194 = vst [vmem:[#allocation2 + $0x50] sm:$0xff] %v4751_v12  ;;  %1382 = vmatmul.f32.gmra.mxu1 %v4755_v43 }
 0x1a2   : > { %v1450_v24 = vld [vmem:[#allocation2 + $0x47] sm:$0xff]  ;;  %1432 = vmatmul.f32.gmra.mxu2 %v1295_v34  ;;  %v1162_v14 = vadd.f32 %v4617_v0, %v1149_v20 }
 0x1a3   : > { %1510 = vmatmul.f32.gmra.mxu3 %v1450_v24  ;;  %v2334_v34 = vld [vmem:[#allocation13 + $0x78] sm:$0xff] }
 0x1a4   : > { %v1173_v51 = vmax.f32 %v1162_v14, 0.0  ;;  %2335 = vmatpush.msra.mxu0 %v2334_v34  ;;  %v2407_v34 = vld [vmem:[#allocation14 + $0x58] sm:$0xff] }
 0x1a6   : > { %v4763_v17 = vmul.f32 %v1173_v51, %v435_v49  ;;  %v1794_v51 = vld [vmem:[#allocation2 + $0x45] sm:$0xff] }
 0x1a8   : > { %v4765_v45 = vld [vmem:[#allocation2 + $0x4c] sm:$0xff]  ;;  %1195 = vst [vmem:[#allocation2 + $0x58] sm:$0xff] %v4763_v17  ;;  %1283 = vmatmul.f32.gmra.mxu0 %v4763_v17 }
 0x1a9   : > { %v1296_v47 = vld [vmem:[#allocation2 + $0x4b] sm:$0xff]  ;;  %1385 = vmatmul.f32.gmra.mxu1 %v4765_v45 }
 0x1aa   : > { %v1451_v29 = vld [vmem:[#allocation2 + $0x4f] sm:$0xff]  ;;  %1435 = vmatmul.f32.gmra.mxu2 %v1296_v47  ;;  %v2410_v47 = vld [vmem:[#allocation14 + $0x70] sm:$0xff] }
 0x1ab   : > { %1513 = vmatmul.f32.gmra.mxu3 %v1451_v29  ;;  %v2564_v29 = vld [vmem:[#allocation14 + $0x170] sm:$0xff]  ;;  %2490 = vmatpush.msra.mxu2 %v2410_v47 }
 0x1af   : > { %v4770_v46 = vld [vmem:[#allocation2 + $0x54] sm:$0xff] }
 0x1b0   : > { %v1297_v25 = vld [vmem:[#allocation2 + $0x53] sm:$0xff]  ;;  %1564 = vmatmul.f32.vlgmr.msrb.gmra.mxu0 %v4625_v59  ;;  %v1789_v59 = vld [vmem:[#allocation2 + $0x1d] sm:$0xff] }
 0x1b1   : > { %v1452_v0 = vld [vmem:[#allocation2 + $0x57] sm:$0xff]  ;;  %1388 = vmatmul.f32.gmra.mxu1 %v4770_v46 }
 0x1b2   : > { %1438 = vmatmul.f32.gmra.mxu2 %v1297_v25  ;;  %v2437_v25 = vld [vmem:[#allocation14 + $0xf0] sm:$0xff]  ;;  %v1796_v61 = vld [vmem:[#allocation2 + $0x55] sm:$0xff] }
 0x1b3   : > { %1516 = vmatmul.f32.gmra.mxu3 %v1452_v0  ;;  %v2409_v0 = vld [vmem:[#allocation14 + $0x68] sm:$0xff] }
 0x1b4   : > { %2491 = vmatpush.msra.mxu2 %v2409_v0  ;;  %v1619_v0 = vld [vmem:[#allocation2 + $0x59] sm:$0xff] }
 0x1b8   : > { %1567 = vmatmul.f32.gmra.mxu0 %v4637_v40  ;;  %v1790_v40 = vld [vmem:[#allocation2 + $0x25] sm:$0xff] }
 0x1b9   : > { %1653 = vmatmul.f32.vlgmr.msrb.gmra.mxu1 %v1609_v48 }
 0x1ba   : > { %1742 = vmatmul.f32.vlgmr.msrb.gmra.mxu2 %v4655_v39  ;;  %v1612_v39 = vld [vmem:[#allocation2 + $0x21] sm:$0xff] }
 0x1bb   : > { %1831 = vmatmul.f32.vlgmr.msrb.gmra.mxu3 %v1787_v31 }
 0x1c0   : > { %1570 = vmatmul.f32.gmra.mxu0 %v4649_v22  ;;  %v1791_v22 = vld [vmem:[#allocation2 + $0x2d] sm:$0xff] }
 0x1c1   : > { %1656 = vmatmul.f32.gmra.mxu1 %v1610_v8 }
 0x1c2   : > { %1745 = vmatmul.f32.gmra.mxu2 %v4670_v35 }
 0x1c3   : > { %1834 = vmatmul.f32.gmra.mxu3 %v1788_v55  ;;  %v1617_v55 = vld [vmem:[#allocation2 + $0x49] sm:$0xff] }
 0x1c8   : > { %1573 = vmatmul.f32.gmra.mxu0 %v4664_v4 }
 0x1c9   : > { %1659 = vmatmul.f32.gmra.mxu1 %v1611_v27  ;;  %v1795_v27 = vld [vmem:[#allocation2 + $0x4d] sm:$0xff] }
 0x1ca   : > { %1748 = vmatmul.f32.gmra.mxu2 %v4685_v1 }
 0x1cb   : > { %1837 = vmatmul.f32.gmra.mxu3 %v1789_v59  ;;  %v2563_v59 = vld [vmem:[#allocation14 + $0x168] sm:$0xff] }
 0x1d0   : > { %1576 = vmatmul.f32.gmra.mxu0 %v4679_v7 }
 0x1d1   : > { %1662 = vmatmul.f32.gmra.mxu1 %v1612_v39  ;;  %v2436_v39 = vld [vmem:[#allocation14 + $0xe8] sm:$0xff] }
 0x1d2   : > { %1751 = vmatmul.f32.gmra.mxu2 %v4700_v33  ;;  %v1792_v33 = vld [vmem:[#allocation2 + $0x35] sm:$0xff] }
 0x1d3   : > { %1840 = vmatmul.f32.gmra.mxu3 %v1790_v40  ;;  %v2408_v40 = vld [vmem:[#allocation14 + $0x60] sm:$0xff] }
 0x1d4   : > { %2492 = vmatpush.msra.mxu2 %v2408_v40  ;;  %v2405_v40 = vld [vmem:[#allocation14 + $0x48] sm:$0xff] }
 0x1d5   : > { %v4782_v35 = vpop.f32.mrf.mxu0 }
 0x1d6   : > { %2493 = vmatpush.msra.mxu2 %v2407_v34 }
 0x1d8   : > { %1579 = vmatmul.f32.gmra.mxu0 %v4694_v57  ;;  %v1615_v57 = vld [vmem:[#allocation2 + $0x39] sm:$0xff] }
 0x1d9   : > { %1665 = vmatmul.f32.gmra.mxu1 %v1613_v37  ;;  %v2331_v37 = vld [vmem:[#allocation13 + $0x60] sm:$0xff] }
 0x1da   : > { %1754 = vmatmul.f32.gmra.mxu2 %v4715_v10 }
 0x1db   : > { %1843 = vmatmul.f32.gmra.mxu3 %v1791_v22  ;;  %v2562_v22 = vld [vmem:[#allocation14 + $0x160] sm:$0xff] }
 0x1dd   : > { %v4788_v4 = vpop.f32.mrf.mxu0 }
 0x1de   : > { %v4786_v1 = vpop.f32.mrf.mxu1 }
 0x1e0   : > { %1582 = vmatmul.f32.gmra.mxu0 %v4709_v30  ;;  %v2438_v30 = vld [vmem:[#allocation14 + $0xf8] sm:$0xff] }
 0x1e1   : > { %1668 = vmatmul.f32.gmra.mxu1 %v1614_v50 }
 0x1e2   : > { %1757 = vmatmul.f32.gmra.mxu2 %v4730_v6  ;;  %v2565_v6 = vld [vmem:[#allocation14 + $0x178] sm:$0xff]  ;;  %2439 = vmatpush.msra.mxu1 %v2438_v30 }
 0x1e3   : > { %1846 = vmatmul.f32.gmra.mxu3 %v1792_v33  ;;  %v2561_v30 = vld [vmem:[#allocation14 + $0x158] sm:$0xff] }
 0x1e4   : > { %2566 = vmatpush.msra.mxu3 %v2565_v6  ;;  %2440 = vmatpush.msra.mxu1 %v2437_v25  ;;  %v2330_v6 = vld [vmem:[#allocation13 + $0x58] sm:$0xff]  ;;  %v4840_v25 = vld [vmem:[#allocation16 + $0x2] ss:$0 sm:$0xff] }
 0x1e5   : > { %v4792_v7 = vpop.f32.mrf.mxu2  ;;  %v4798_v56 = vpop.f32.mrf.mxu0 }
 0x1e6   : > { %v4794_v44 = vpop.f32.mrf.mxu3  ;;  %v4796_v10 = vpop.f32.mrf.mxu1  ;;  %2567 = vmatpush.msra.mxu3 %v2564_v29  ;;  %2441 = vmatpush.msra.mxu1 %v2436_v39  ;;  %v4838_v29 = vld [vmem:[#allocation16] ss:$0 sm:$0xff]  ;;  %v2433_v39 = vld [vmem:[#allocation14 + $0xd0] sm:$0xff] }
 0x1e7   : > { %v1899_v34 = vmul.f32 %v4838_v29, %v4489_v58 }
 0x1e8   : > { %1585 = vmatmul.f32.gmra.mxu0 %v4724_v18  ;;  %v2333_v18 = vld [vmem:[#allocation13 + $0x70] sm:$0xff]  ;;  %2568 = vmatpush.msra.mxu3 %v2563_v59 }
 0x1e9   : > { %1671 = vmatmul.f32.gmra.mxu1 %v1615_v57  ;;  %2336 = vmatpush.msra.mxu0 %v2333_v18  ;;  %v2560_v59 = vld [vmem:[#allocation14 + $0x150] sm:$0xff] }
 0x1ea   : > { %1760 = vmatmul.f32.gmra.mxu2 %v4743_v21  ;;  %v1616_v21 = vld [vmem:[#allocation2 + $0x41] sm:$0xff]  ;;  %2569 = vmatpush.msra.mxu3 %v2562_v22  ;;  %v2559_v22 = vld [vmem:[#allocation14 + $0x148] sm:$0xff] }
 0x1eb   : > { %1849 = vmatmul.f32.gmra.mxu3 %v1793_v16  ;;  %v1618_v16 = vld [vmem:[#allocation2 + $0x51] sm:$0xff] }
 0x1ec   : > { %2570 = vmatpush.msra.mxu3 %v2561_v30 }
 0x1ed   : > { %v4802_v24 = vpop.f32.mrf.mxu2  ;;  %v4808_v49 = vpop.f32.mrf.mxu0 }
 0x1ee   : > { %v4804_v20 = vpop.f32.mrf.mxu3  ;;  %v4806_v14 = vpop.f32.mrf.mxu1  ;;  %2571 = vmatpush.msra.mxu3 %v2560_v59  ;;  %v2558_v59 = vld [vmem:[#allocation14 + $0x140] sm:$0xff] }
 0x1f0   : > { %1588 = vmatmul.f32.gmra.mxu0 %v4739_v38  ;;  %v2332_v38 = vld [vmem:[#allocation13 + $0x68] sm:$0xff]  ;;  %2572 = vmatpush.msra.mxu3 %v2559_v22  ;;  %v1924_v22 = vmul.f32 %v4840_v25, %v4788_v4 }
 0x1f1   : > { %1674 = vmatmul.f32.gmra.mxu1 %v1616_v21  ;;  %2337 = vmatpush.msra.mxu0 %v2332_v38  ;;  %v2434_v21 = vld [vmem:[#allocation14 + $0xd8] sm:$0xff]  ;;  %v2329_v38 = vld [vmem:[#allocation13 + $0x50] sm:$0xff] }
 0x1f2   : > { %1763 = vmatmul.f32.gmra.mxu2 %v4755_v43  ;;  %2573 = vmatpush.msra.mxu3 %v2558_v59  ;;  %v2430_v59 = vld [vmem:[#allocation14 + $0xb8] sm:$0xff] }
 0x1f3   : > { %1852 = vmatmul.f32.gmra.mxu3 %v1794_v51  ;;  %2338 = vmatpush.msra.mxu0 %v2331_v37  ;;  %v2406_v51 = vld [vmem:[#allocation14 + $0x50] sm:$0xff]  ;;  %v2328_v37 = vld [vmem:[#allocation13 + $0x48] sm:$0xff] }
 0x1f4   : > { %2494 = vmatpush.msra.mxu2 %v2406_v51 }
 0x1f5   : > { %v4812_v48 = vpop.f32.mrf.mxu2  ;;  %v4818_v43 = vpop.f32.mrf.mxu0  ;;  %2339 = vmatpush.msra.mxu0 %v2330_v6  ;;  %v4852_v6 = vld [vmem:[#allocation16 + $0x1] ss:$0 sm:$0xff] }
 0x1f6   : > { %v4814_v31 = vpop.f32.mrf.mxu3  ;;  %v4816_v8 = vpop.f32.mrf.mxu1  ;;  %2495 = vmatpush.msra.mxu2 %v2405_v40  ;;  %v2403_v40 = vld [vmem:[#allocation14 + $0x38] sm:$0xff] }
 0x1f7   : > { %2340 = vmatpush.msra.mxu0 %v2329_v38  ;;  %v2327_v38 = vld [vmem:[#allocation13 + $0x40] sm:$0xff] }
 0x1f8   : > { %1591 = vmatmul.f32.gmra.mxu0 %v4751_v12  ;;  %v2435_v12 = vld [vmem:[#allocation14 + $0xe0] sm:$0xff] }
 0x1f9   : > { %1677 = vmatmul.f32.gmra.mxu1 %v1617_v55  ;;  %v1708_v55 = vld [vmem:[#allocation2 + $0x5c] sm:$0xff]  ;;  %2341 = vmatpush.msra.mxu0 %v2328_v37 }
 0x1fa   : > { %1766 = vmatmul.f32.gmra.mxu2 %v4765_v45  ;;  %2442 = vmatpush.msra.mxu1 %v2435_v12 }
 0x1fb   : > { %1855 = vmatmul.f32.gmra.mxu3 %v1795_v27  ;;  %v1797_v27 = vld [vmem:[#allocation2 + $0x5d] sm:$0xff]  ;;  %2342 = vmatpush.msra.mxu0 %v2327_v38  ;;  %v2557_v38 = vld [vmem:[#allocation14 + $0x138] sm:$0xff] }
 0x1fc   : > { %2443 = vmatpush.msra.mxu1 %v2434_v21  ;;  %2574 = vmatpush.msra.mxu3 %v2557_v38 }
 0x1fd   : > { %v4822_v50 = vpop.f32.mrf.mxu2  ;;  %v4828_v57 = vpop.f32.mrf.mxu0 }
 0x1fe   : > { %v4824_v33 = vpop.f32.mrf.mxu3  ;;  %v4826_v45 = vpop.f32.mrf.mxu1  ;;  %2444 = vmatpush.msra.mxu1 %v2433_v39  ;;  %v2431_v39 = vld [vmem:[#allocation14 + $0xc0] sm:$0xff]  ;;  %2575 = vmatpush.msra.mxu3 %v2556_v36  ;;  %v1902_v36 = vmul.f32 %v4838_v29, %v4523_v32 }
 0x200   : > { %1594 = vmatmul.f32.gmra.mxu0 %v4763_v17 }
 0x201   : > { %1680 = vmatmul.f32.gmra.mxu1 %v1618_v16  ;;  %v1923_v16 = vmul.f32 %v4840_v25, %v4782_v35 }
 0x202   : > { %1769 = vmatmul.f32.gmra.mxu2 %v4770_v46 }
 0x203   : > { %1858 = vmatmul.f32.gmra.mxu3 %v1796_v61  ;;  %v4846_v61 = vld [vmem:[#allocation16 + $0x3] ss:$0 sm:$0xff] }
 0x204   : > { %v1935_v35 = vadd.f32 %v4846_v61, %v1923_v16  ;;  %v1900_v16 = vmul.f32 %v4838_v29, %v4499_v5  ;;  %v1936_v26 = vadd.f32 %v4846_v61, %v1924_v22  ;;  %v2325_v5 = vld [vmem:[#allocation13 + $0x30] sm:$0xff]  ;;  %v2401_v22 = vld [vmem:[#allocation14 + $0x28] sm:$0xff] }
 0x205   : > { %v4832_v47 = vpop.f32.mrf.mxu2  ;;  %v4842_v17 = vpop.f32.mrf.mxu0 }
 0x206   : > { %v4834_v18 = vpop.f32.mrf.mxu3  ;;  %v4836_v46 = vpop.f32.mrf.mxu1  ;;  %v1912_v4 = vadd.f32 %v4852_v6, %v1900_v16  ;;  %v1901_v16 = vmul.f32 %v4838_v29, %v4511_v19 }
 0x208   : > { %v1947_v62 = vadd.f32 %v1936_v26, %v1912_v4 }
 0x209   : > { %1683 = vmatmul.f32.gmra.mxu1 %v1619_v0  ;;  %v1911_v0 = vadd.f32 %v4852_v6, %v1899_v34 }
 0x20a   : > { %1772 = vmatmul.f32.gmra.mxu2 %v1708_v55  ;;  %v2432_v55 = vld [vmem:[#allocation14 + $0xc8] sm:$0xff]  ;;  %v3571_v4 = vmul.f32 -1.442695, %v1947_v62 }
 0x20b   : > { %1861 = vmatmul.f32.gmra.mxu3 %v1797_v27  ;;  %v2404_v27 = vld [vmem:[#allocation14 + $0x40] sm:$0xff]  ;;  %2445 = vmatpush.msra.mxu1 %v2432_v55  ;;  %v1946_v37 = vadd.f32 %v1935_v35, %v1911_v0  ;;  %v2326_v0 = vld [vmem:[#allocation13 + $0x38] sm:$0xff] }
 0x20c   : > { %2496 = vmatpush.msra.mxu2 %v2404_v27  ;;  %2343 = vmatpush.msra.mxu0 %v2326_v0 }
 0x20d   : > { %v4848_v12 = vpop.f32.mrf.mxu2  ;;  %v4859_v51 = vpop.f32.mrf.mxu0  ;;  %2446 = vmatpush.msra.mxu1 %v2431_v39  ;;  %v3570_v27 = vmul.f32 -1.442695, %v1946_v37  ;;  %v1925_v39 = vmul.f32 %v4840_v25, %v4798_v56  ;;  %v2429_v37 = vld [vmem:[#allocation14 + $0xb0] sm:$0xff]  ;;  %v2555_v56 = vld [vmem:[#allocation14 + $0x128] sm:$0xff] }
 0x20e   : > { %v4854_v30 = vpop.f32.mrf.mxu3  ;;  %v4856_v21 = vpop.f32.mrf.mxu1  ;;  %2497 = vmatpush.msra.mxu2 %v2403_v40  ;;  %v2402_v40 = vld [vmem:[#allocation14 + $0x30] sm:$0xff]  ;;  %2344 = vmatpush.msra.mxu0 %v2325_v5  ;;  %v1926_v5 = vmul.f32 %v4840_v25, %v4808_v49 }
 0x20f   : > { %3736 = vpow2.f32 %v3570_v27  ;;  %2447 = vmatpush.msra.mxu1 %v2430_v59  ;;  %v1937_v27 = vadd.f32 %v4846_v61, %v1925_v39  ;;  %2576 = vmatpush.msra.mxu3 %v2555_v56  ;;  %v1913_v59 = vadd.f32 %v4852_v6, %v1901_v16 }
 0x210   : > { %2498 = vmatpush.msra.mxu2 %v2402_v40  ;;  %2345 = vmatpush.msra.mxu0 %v2324_v11  ;;  %3738 = vpow2.f32 %v3571_v4 }
 0x211   : > { %2448 = vmatpush.msra.mxu1 %v2429_v37  ;;  %v1948_v19 = vadd.f32 %v1937_v27, %v1913_v59  ;;  %v1914_v27 = vadd.f32 %v4852_v6, %v1902_v36  ;;  %v1927_v59 = vmul.f32 %v4840_v25, %v4818_v43  ;;  %v2322_v43 = vld [vmem:[#allocation13 + $0x18] sm:$0xff] }
 0x212   : > { %2499 = vmatpush.msra.mxu2 %v2401_v22  ;;  %v1938_v22 = vadd.f32 %v4846_v61, %v1926_v5 }
 0x213   : > { %v3572_v62 = vmul.f32 -1.442695, %v1948_v19 }
 0x214   : > { %v1949_v4 = vadd.f32 %v1938_v22, %v1914_v27 }
 0x215   : > { %v4864_v58 = vpop.f32.mrf.mxu2  ;;  %v4873_v35 = vpop.f32.mrf.mxu0 }
 0x216   : > { %v4868_v34 = vpop.f32.mrf.mxu3  ;;  %v4870_v55 = vpop.f32.mrf.mxu1  ;;  %v3573_v36 = vmul.f32 -1.442695, %v1949_v4  ;;  %v1906_v4 = vmul.f32 %v4838_v29, %v4567_v23  ;;  %v1908_v23 = vmul.f32 %v4838_v29, %v4583_v54 }
 0x217   : > { %6105 = vst [vmem:[#allocation45_spill] sm:$0xff] %v4870_v55  ;;  %v3737_v40 = vpop.eup %3736  ;;  %v1410_v55 = vadd.f32 %v4792_v7, %v4786_v1  ;;  %v2319_v7 = vld [vmem:[#allocation13] sm:$0xff] }
 0x218   : > { %v4894_v37 = vadd.f32 1.0, %v3737_v40  ;;  %v3739_v49 = vpop.eup %3738  ;;  %v1903_v40 = vmul.f32 %v4838_v29, %v4535_v52 }
 0x219   : > { %v4911_v19 = vadd.f32 1.0, %v3739_v49  ;;  %v1904_v49 = vmul.f32 %v4838_v29, %v4547_v41  ;;  %v1928_v41 = vmul.f32 %v4840_v25, %v4828_v57 }
 0x21a   : > { %3740 = vrcp.f32 %v4894_v37  ;;  %v1915_v52 = vadd.f32 %v4852_v6, %v1903_v40  ;;  %v1907_v40 = vmul.f32 %v4838_v29, %v4575_v42  ;;  %v2398_v42 = vld [vmem:[#allocation14 + $0x10] sm:$0xff]  ;;  %vm2006_vm1 = vweird.f32 %v4894_v37 }
 0x21b   : > { %3742 = vpow2.f32 %v3572_v62  ;;  %v1916_v57 = vadd.f32 %v4852_v6, %v1904_v49  ;;  %v4964_v49 = vadd.f32 %v4852_v6, %v1908_v23  ;;  %vm2021_vm4 = vweird.f32 %v4911_v19 }
 0x21c   : > { %3744 = vrcp.f32 %v4911_v19 }
 0x21d   : > { %v4880_v3 = vpop.f32.mrf.mxu2  ;;  %v4887_v38 = vpop.f32.mrf.mxu0  ;;  %3746 = vpow2.f32 %v3573_v36 }
 0x21e   : > { %6106 = vst [vmem:[#allocation46_spill] sm:$0xff] %v4880_v3  ;;  %v4882_v0 = vpop.f32.mrf.mxu3  ;;  %v4885_v26 = vpop.f32.mrf.mxu1  ;;  %v4938_v3 = vld [vmem:[#allocation16 + $0x4] ss:$0 sm:$0xff] }
 0x21f   : > { %6107 = vst [vmem:[#allocation47_spill] sm:$0xff] %v4882_v0  ;;  %v2321_v0 = vld [vmem:[#allocation13 + $0x10] sm:$0xff]  ;;  %v2169_v23 = vmul.f32 %v4938_v3, %v4639_v53  ;;  %v2171_v53 = vmul.f32 %v4938_v3, %v4666_v13  ;;  %v2424_v13 = vld [vmem:[#allocation14 + $0x88] sm:$0xff] }
 0x220   : > { %6108 = vst [vmem:[#allocation48_spill] sm:$0xff] %v4885_v26  ;;  %v2399_v26 = vld [vmem:[#allocation14 + $0x18] sm:$0xff] }
 0x225   : > { %v4896_v39 = vpop.f32.mrf.mxu2  ;;  %v4903_v16 = vpop.f32.mrf.mxu0 }
 0x226   : > { %6109 = vst [vmem:[#allocation49_spill] sm:$0xff] %v4896_v39  ;;  %v4898_v11 = vpop.f32.mrf.mxu3  ;;  %v4901_v56 = vpop.f32.mrf.mxu1  ;;  %v1939_v39 = vadd.f32 %v4846_v61, %v1927_v59  ;;  %v2428_v59 = vld [vmem:[#allocation14 + $0xa8] sm:$0xff] }
 0x227   : > { %6110 = vst [vmem:[#allocation50_spill] sm:$0xff] %v4898_v11  ;;  %v4917_v11 = vpop.eup %3740  ;;  %2449 = vmatpush.msra.mxu1 %v2428_v59 }
 0x228   : > { %6111 = vst [vmem:[#allocation51_spill] sm:$0xff] %v4901_v56  ;;  %v2323_v56 = vld [vmem:[#allocation13 + $0x20] sm:$0xff]  ;;  %v3743_v27 = vpop.eup %3742  ;;  %vm2007_vm0 = vweird.f32 %v4917_v11 }
 0x229   : > { %2346 = vmatpush.msra.mxu0 %v2323_v56  ;;  %v2002_v56 = vmul.f32 %v4917_v11, %v4894_v37  ;;  %v4942_v15 = vadd.f32 1.0, %v3743_v27  ;;  %vm5025_vm2 = vmor %vm2006_vm1, %vm2007_vm0 }
 0x22b   : > { %2347 = vmatpush.msra.mxu0 %v2322_v43  ;;  %v1950_v43 = vadd.f32 %v1939_v39, %v1915_v52  ;;  %v2320_v52 = vld [vmem:[#allocation13 + $0x8] sm:$0xff]  ;;  %v2003_v1 = vsub.f32 1.0, %v2002_v56  ;;  %v4968_v56 = vld [vmem:[#allocation16 + $0x5] ss:$0 sm:$0xff]  ;;  %3748 = vrcp.f32 %v4942_v15  ;;  %vm2036_vm8 = vweird.f32 %v4942_v15 }
 0x22c   : > { %6117 = vst [vmem:[#allocation57_spill] sm:$0xff] %v4968_v56 }
 0x22d   : > { %v4913_v5 = vpop.f32.mrf.mxu2  ;;  %v1565_v22 = vpop.f32.mrf.mxu0  ;;  %2348 = vmatpush.msra.mxu0 %v2321_v0  ;;  %v4957_v0 = vadd.f32 %v4852_v6, %v1906_v4  ;;  %v2004_v54 = vmul.f32 %v4917_v11, %v2003_v1 }
 0x22e   : > { %6112 = vst [vmem:[#allocation52_spill] sm:$0xff] %v4913_v5  ;;  %v4915_v32 = vpop.f32.mrf.mxu3  ;;  %v4920_v62 = vpop.f32.mrf.mxu1  ;;  %v2554_v5 = vld [vmem:[#allocation14 + $0x120] sm:$0xff] }
 0x22f   : > { %6113 = vst [vmem:[#allocation53_spill] sm:$0xff] %v4915_v32  ;;  %v1905_v32 = vmul.f32 %v4838_v29, %v4559_v9  ;;  %v2427_v9 = vld [vmem:[#allocation14 + $0xa0] sm:$0xff]  ;;  %2577 = vmatpush.msra.mxu3 %v2554_v5  ;;  %2349 = vmatpush.msra.mxu0 %v2320_v52  ;;  %v4954_v5 = vpop.eup %3744  ;;  %v1520_v52 = vadd.f32 %v4794_v44, %v1410_v55 }
 0x230   : > { %6114 = vst [vmem:[#allocation54_spill] sm:$0xff] %v4920_v62  ;;  %v2400_v62 = vld [vmem:[#allocation14 + $0x20] sm:$0xff]  ;;  %2450 = vmatpush.msra.mxu1 %v2427_v9  ;;  %v4960_v9 = vadd.f32 %v4852_v6, %v1907_v40  ;;  %v2553_v40 = vld [vmem:[#allocation14 + $0x118] sm:$0xff]  ;;  %vm2022_vm6 = vweird.f32 %v4954_v5 }
 0x231   : > { %2500 = vmatpush.msra.mxu2 %v2400_v62  ;;  %v4948_v36 = vadd.f32 %v4852_v6, %v1905_v32  ;;  %v1909_v62 = vmul.f32 %v4838_v29, %v4591_v63  ;;  %v1940_v32 = vadd.f32 %v4846_v61, %v1928_v41  ;;  %v2167_v29 = vmul.f32 %v4938_v3, %v4612_v60  ;;  %v2426_v63 = vld [vmem:[#allocation14 + $0x98] sm:$0xff]  ;;  %vm5067_vm7 = vmor %vm2021_vm4, %vm2022_vm6 }
 0x232   : > { %2350 = vmatpush.msra.mxu0 %v2319_v7  ;;  %v2168_v41 = vmul.f32 %v4938_v3, %v4627_v2  ;;  %v2170_v60 = vmul.f32 %v4938_v3, %v4651_v28  ;;  %2578 = vmatpush.msra.mxu3 %v2553_v40  ;;  %v1598_v55 = vadd.f32 %v1565_v22, %v1520_v52  ;;  %v2425_v2 = vld [vmem:[#allocation14 + $0x90] sm:$0xff]  ;;  %v2397_v52 = vld [vmem:[#allocation14 + $0x8] sm:$0xff] }
 0x233   : > { %2501 = vmatpush.msra.mxu2 %v2399_v26  ;;  %v3574_v26 = vmul.f32 -1.442695, %v1950_v43  ;;  %v3747_v43 = vpop.eup %3746  ;;  %2451 = vmatpush.msra.mxu1 %v2426_v63  ;;  %v4981_v44 = vadd.f32 %v4852_v6, %v1909_v62  ;;  %v2017_v7 = vmul.f32 %v4954_v5, %v4911_v19  ;;  %v1929_v63 = vmul.f32 %v4840_v25, %v4842_v17  ;;  %v2551_v40 = vld [vmem:[#allocation14 + $0x108] sm:$0xff] }
 0x234   : > { %v4991_v6 = vadd.f32 %v4968_v56, %v2167_v29  ;;  %v1413_v22 = vadd.f32 %v4802_v24, %v4796_v10  ;;  %v4995_v62 = vadd.f32 1.0, %v3747_v43  ;;  %v5001_v17 = vadd.f32 %v4968_v56, %v2169_v23  ;;  %v5007_v10 = vld [vmem:[#allocation16 + $0x6] ss:$0 sm:$0xff] }
 0x235   : > { %v4944_v39 = vpop.f32.mrf.mxu2  ;;  %v4972_v4 = vpop.f32.mrf.mxu0  ;;  %3750 = vpow2.f32 %v3574_v26  ;;  %2502 = vmatpush.msra.mxu2 %v2398_v42  ;;  %2452 = vmatpush.msra.mxu1 %v2425_v2  ;;  %v5004_v42 = vadd.f32 %v4968_v56, %v2170_v60  ;;  %v2012_v26 = vand.u32 2147483648, %v4894_v37  ;;  %v2018_v29 = vsub.f32 1.0, %v2017_v7  ;;  %v2396_v43 = vld [vmem:[#allocation14] sm:$0xff] }
 0x236   : > { %6115 = vst [vmem:[#allocation55_spill] sm:$0xff] %v4944_v39  ;;  %v4952_v59 = vpop.f32.mrf.mxu3  ;;  %v1654_v27 = vpop.f32.mrf.mxu1  ;;  %v1951_v39 = vadd.f32 %v1940_v32, %v1916_v57  ;;  %v4998_v57 = vadd.f32 %v4968_v56, %v2168_v41  ;;  %v2550_v60 = vld [vmem:[#allocation14 + $0x100] sm:$0xff]  ;;  %v5014_v23 = vadd.f32 %v4968_v56, %v2171_v53  ;;  %3752 = vrcp.f32 %v4995_v62 }
 0x237   : > { %6116 = vst [vmem:[#allocation56_spill] sm:$0xff] %v4952_v59  ;;  %v2552_v59 = vld [vmem:[#allocation14 + $0x110] sm:$0xff]  ;;  %v1687_v1 = vadd.f32 %v1654_v27, %v1598_v55  ;;  %2503 = vmatpush.msra.mxu2 %v2397_v52  ;;  %v5009_v2 = vpop.eup %3748  ;;  %v2005_v27 = vadd.f32 %v4917_v11, %v2004_v54  ;;  %2453 = vmatpush.msra.mxu1 %v2424_v13  ;;  %v2423_v41 = vld [vmem:[#allocation14 + $0x80] sm:$0xff]  ;;  %v2010_v13 = vand.u32 2147483647, %v4894_v37  ;;  %vm2051_vm11 = vweird.f32 %v4995_v62 }
 0x238   : > { %2579 = vmatpush.msra.mxu3 %v2552_v59  ;;  %v3575_v55 = vmul.f32 -1.442695, %v1951_v39  ;;  %v1941_v52 = vadd.f32 %v4846_v61, %v1929_v63  ;;  %v1521_v54 = vadd.f32 %v4804_v20, %v1413_v22  ;;  %v2013_v63 = vor.u32 1.1754944e-38, %v2012_v26 }
 0x239   : > { %2504 = vmatpush.msra.mxu2 %v2396_v43  ;;  %2454 = vmatpush.msra.mxu1 %v2423_v41  ;;  %v2025_v43 = vand.u32 2147483647, %v4911_v19  ;;  %v2027_v20 = vand.u32 2147483648, %v4911_v19  ;;  %v2032_v22 = vmul.f32 %v5009_v2, %v4942_v15  ;;  %v2009_v37 = vsel %vm5025_vm2, %v4917_v11, %v2005_v27  ;;  %v5047_v27 = vld [vmem:[#allocation16 + $0x8] ss:$0 sm:$0xff] }
 0x23a   : > { %2580 = vmatpush.msra.mxu3 %v2551_v40  ;;  %v1416_v26 = vadd.f32 %v4812_v48, %v4806_v14  ;;  %3754 = vpow2.f32 %v3575_v55  ;;  %v1952_v41 = vadd.f32 %v1941_v52, %v4948_v36  ;;  %v1930_v28 = vmul.f32 %v4840_v25, %v4859_v51 }
 0x23b   : > { %v3751_v53 = vpop.eup %3750  ;;  %vm2011_vm3 = vcmp.eq.f32.partialorder %v2010_v13, 8.507059e+37  ;;  %vm5050_vm5 = vcmp.eq.f32.partialorder %v2025_v43, 8.507059e+37  ;;  %v2033_v48 = vsub.f32 1.0, %v2032_v22  ;;  %v2028_v39 = vor.u32 1.1754944e-38, %v2027_v20  ;;  %v5062_v22 = vld [vmem:[#allocation16 + $0x9] ss:$0 sm:$0xff] }
 0x23c   : > { %2581 = vmatpush.msra.mxu3 %v2550_v60  ;;  %v2019_v60 = vmul.f32 %v4954_v5, %v2018_v29  ;;  %v5044_v56 = vadd.f32 1.0, %v3751_v53  ;;  %v5054_v36 = vpop.eup %3752  ;;  %v3576_v13 = vmul.f32 -1.442695, %v1952_v41  ;;  %v1942_v53 = vadd.f32 %v4846_v61, %v1930_v28 }
 0x23d   : > { %v1743_v59 = vpop.f32.mrf.mxu2  ;;  %v2034_v28 = vmul.f32 %v5009_v2, %v2033_v48  ;;  %v2042_v20 = vand.u32 2147483648, %v4942_v15  ;;  %v1419_v48 = vadd.f32 %v4822_v50, %v4816_v8  ;;  %vm2037_vm10 = vweird.f32 %v5009_v2 }
 0x23e   : > { %v1776_v24 = vadd.f32 %v1743_v59, %v1687_v1  ;;  %v1832_v32 = vpop.f32.mrf.mxu3  ;;  %v1657_v40 = vpop.f32.mrf.mxu1  ;;  %v5021_v1 = vld [vmem:[#allocation16 + $0x7] ss:$0 sm:$0xff]  ;;  %v2020_v52 = vadd.f32 %v4954_v5, %v2019_v60  ;;  %3756 = vrcp.f32 %v5044_v56  ;;  %vm5111_vm12 = vmor %vm2036_vm8, %vm2037_vm10  ;;  %vm2052_vm13 = vweird.f32 %v5054_v36 }
 0x23f   : > { %v1571_v59 = vpop.f32.mrf.mxu0  ;;  %3758 = vpow2.f32 %v3576_v13  ;;  %vm5158_vm15 = vmor %vm2051_vm11, %vm2052_vm13  ;;  %vm2066_vm1 = vweird.f32 %v5044_v56 }
 0x240   : > { %v1865_v7 = vadd.f32 %v1832_v32, %v1776_v24  ;;  %v1599_v32 = vadd.f32 %v4972_v4, %v1521_v54  ;;  %v2014_v4 = vsel %vm2011_vm3, %v2013_v63, %v2009_v37  ;;  %v3755_v60 = vpop.eup %3754 }
 0x242   : > { %v2191_v24 = vmul.f32 %v5007_v10, %v1865_v7  ;;  %v1688_v7 = vadd.f32 %v1657_v40, %v1599_v32  ;;  %v1522_v40 = vadd.f32 %v4814_v31, %v1416_v26  ;;  %v2047_v26 = vmul.f32 %v5054_v36, %v4995_v62 }
 0x244   : > { %v2203_v11 = vadd.f32 %v5021_v1, %v2191_v24  ;;  %v2040_v24 = vand.u32 2147483647, %v4942_v15  ;;  %v5098_v13 = vpop.eup %3756 }
 0x245   : > { %v1746_v54 = vpop.f32.mrf.mxu2  ;;  %vm2067_vm0 = vweird.f32 %v5098_v13 }
 0x246   : > { %v2214_v51 = vmul.f32 %v2203_v11, %v2014_v4  ;;  %v1777_v29 = vadd.f32 %v1746_v54, %v1688_v7  ;;  %v1835_v55 = vpop.f32.mrf.mxu3  ;;  %v1660_v63 = vpop.f32.mrf.mxu1  ;;  %v2024_v11 = vsel %vm5067_vm7, %v4954_v5, %v2020_v52  ;;  %v1600_v7 = vadd.f32 %v1571_v59, %v1522_v40  ;;  %v2818_v4 = vld [vmem:[#allocation14 + $0x2f8] sm:$0xff]  ;;  %vm5201_vm2 = vmor %vm2066_vm1, %vm2067_vm0 }
 0x247   : > { %v1574_v32 = vpop.f32.mrf.mxu0  ;;  %v2642_v54 = vld [vmem:[#allocation14 + $0x1f8] sm:$0xff]  ;;  %2819 = vmatpush.msrb.mxu2 %v2818_v4  ;;  %vm5090_vm9 = vcmp.eq.f32.partialorder %v2040_v24, 8.507059e+37  ;;  %v2029_v8 = vsel %vm5050_vm5, %v2028_v39, %v2024_v11  ;;  %v2043_v24 = vor.u32 1.1754944e-38, %v2042_v20  ;;  %v3824_v39 = vld [vmem:[#allocation8] sm:$0xff] }
 0x248   : > { %v2226_v43 = vmul.f32 %v5047_v27, %v2214_v51  ;;  %v1866_v37 = vadd.f32 %v1835_v55, %v1777_v29  ;;  %v2906_v51 = vld [vmem:[#allocation14 + $0x378] sm:$0xff]  ;;  %v1953_v29 = vadd.f32 %v1942_v53, %v4957_v0  ;;  %v1931_v55 = vmul.f32 %v4840_v25, %v4873_v35  ;;  %2643 = vmatpush.msrb.mxu0 %v2642_v54 }
 0x249   : > { %v1689_v52 = vadd.f32 %v1660_v63, %v1600_v7  ;;  %2907 = vmatpush.msrb.mxu3 %v2906_v51  ;;  %v2035_v35 = vadd.f32 %v5009_v2, %v2034_v28  ;;  %v2048_v0 = vsub.f32 1.0, %v2047_v26  ;;  %v2055_v54 = vand.u32 2147483647, %v4995_v62 }
 0x24a   : > { %v2237_v41 = vadd.f32 %v2226_v43, %v4991_v6  ;;  %v2192_v19 = vmul.f32 %v5007_v10, %v1866_v37  ;;  %v5086_v6 = vadd.f32 1.0, %v3755_v60  ;;  %v1523_v60 = vadd.f32 %v4824_v33, %v1419_v48  ;;  %v3825_v33 = vld [vmem:[#allocation8 + $0x8] sm:$0xff] }
 0x24b   : > { %v3577_v31 = vmul.f32 -1.442695, %v1953_v29  ;;  %v2039_v7 = vsel %vm5111_vm12, %v5009_v2, %v2035_v35  ;;  %v2049_v4 = vmul.f32 %v5054_v36, %v2048_v0  ;;  %v2062_v51 = vmul.f32 %v5098_v13, %v5044_v56  ;;  %v2817_v2 = vld [vmem:[#allocation14 + $0x2f0] sm:$0xff] }
 0x24c   : > { %v2249_v5 = vadd.f32 %v5062_v22, %v2237_v41  ;;  %v2204_v59 = vadd.f32 %v5021_v1, %v2192_v19  ;;  %v1943_v41 = vadd.f32 %v4846_v61, %v1931_v55  ;;  %3760 = vrcp.f32 %v5086_v6  ;;  %v3759_v19 = vpop.eup %3758  ;;  %2820 = vmatpush.msrb.mxu2 %v2817_v2 }
 0x24d   : > { %v1749_v50 = vpop.f32.mrf.mxu2  ;;  %v1601_v29 = vadd.f32 %v1574_v32, %v1523_v60  ;;  %v2057_v55 = vand.u32 2147483648, %v4995_v62  ;;  %3762 = vpow2.f32 %v3577_v31  ;;  %v2729_v32 = vld [vmem:[#allocation14 + $0x270] sm:$0xff]  ;;  %v5134_v35 = vadd.f32 1.0, %v3759_v19 }
 0x24e   : > { %v2260_v53 = vmax.f32 %v2249_v5, 0.0  ;;  %v2215_v43 = vmul.f32 %v2204_v59, %v2029_v8  ;;  %v1778_v37 = vadd.f32 %v1749_v50, %v1689_v52  ;;  %v1838_v63 = vpop.f32.mrf.mxu3  ;;  %v1663_v14 = vpop.f32.mrf.mxu1  ;;  %v2730_v5 = vld [vmem:[#allocation14 + $0x278] sm:$0xff]  ;;  %v2641_v59 = vld [vmem:[#allocation14 + $0x1f0] sm:$0xff]  ;;  %v1422_v52 = vadd.f32 %v4832_v47, %v4826_v45 }
 0x24f   : > { %v5115_v20 = vpop.f32.mrf.mxu0  ;;  %v1954_v8 = vadd.f32 %v1943_v41, %v4960_v9  ;;  %v1932_v50 = vmul.f32 %v4840_v25, %v4887_v38  ;;  %2731 = vmatpush.msrb.mxu1 %v2730_v5  ;;  %2644 = vmatpush.msrb.mxu0 %v2641_v59  ;;  %v2044_v45 = vsel %vm5090_vm9, %v2043_v24, %v2039_v7  ;;  %v2063_v38 = vsub.f32 1.0, %v2062_v51 }
 0x250   : > { %v5104_v28 = vmul.f32 %v3824_v39, %v2260_v53  ;;  %v2227_v26 = vmul.f32 %v5047_v27, %v2215_v43  ;;  %v1867_v11 = vadd.f32 %v1838_v63, %v1778_v37  ;;  %v1690_v43 = vadd.f32 %v1663_v14, %v1601_v29 }
 0x251   : > { %v2050_v9 = vadd.f32 %v5054_v36, %v2049_v4  ;;  %2732 = vmatpush.msrb.mxu1 %v2729_v32  ;;  %vm5144_vm14 = vcmp.eq.f32.partialorder %v2055_v54, 8.507059e+37  ;;  %v1524_v40 = vadd.f32 %v4834_v18, %v1422_v52  ;;  %v3578_v24 = vmul.f32 -1.442695, %v1954_v8 }
 0x252   : > { %2282 = vst [vmem:[#allocation2 + $0x8] sm:$0xff] %v5104_v28  ;;  %v2238_v15 = vadd.f32 %v2227_v26, %v4998_v57  ;;  %v2193_v48 = vmul.f32 %v5007_v10, %v1867_v11  ;;  %2351 = vmatmul.f32.vlgmr.msra.gmra.mxu0 %v5104_v28  ;;  %v2905_v57 = vld [vmem:[#allocation14 + $0x370] sm:$0xff]  ;;  %v5142_v37 = vpop.eup %3760  ;;  %v1944_v39 = vadd.f32 %v4846_v61, %v1932_v50  ;;  %v2058_v26 = vor.u32 1.1754944e-38, %v2057_v55  ;;  %v2640_v50 = vld [vmem:[#allocation14 + $0x1e8] sm:$0xff] }
 0x253   : > { %2908 = vmatpush.msrb.mxu3 %v2905_v57  ;;  %3764 = vrcp.f32 %v5134_v35  ;;  %v3763_v51 = vpop.eup %3762  ;;  %v2064_v5 = vmul.f32 %v5098_v13, %v2063_v38  ;;  %v2070_v2 = vand.u32 2147483647, %v5044_v56  ;;  %v2077_v62 = vmul.f32 %v5142_v37, %v5086_v6  ;;  %v2904_v57 = vld [vmem:[#allocation14 + $0x368] sm:$0xff]  ;;  %2645 = vmatpush.msrb.mxu0 %v2640_v50 }
 0x254   : > { %v2250_v0 = vadd.f32 %v5062_v22, %v2238_v15  ;;  %v2205_v53 = vadd.f32 %v5021_v1, %v2193_v48  ;;  %v2054_v15 = vsel %vm5158_vm15, %v5054_v36, %v2050_v9  ;;  %v1602_v8 = vadd.f32 %v5115_v20, %v1524_v40  ;;  %v2816_v36 = vld [vmem:[#allocation14 + $0x2e8] sm:$0xff] }
 0x255   : > { %v1752_v47 = vpop.f32.mrf.mxu2  ;;  %v1425_v32 = vadd.f32 %v4848_v12, %v4836_v46  ;;  %3766 = vpow2.f32 %v3578_v24  ;;  %v5181_v20 = vadd.f32 1.0, %v3763_v51  ;;  %2821 = vmatpush.msrb.mxu2 %v2816_v36  ;;  %v2059_v46 = vsel %vm5144_vm14, %v2058_v26, %v2054_v15  ;;  %2909 = vmatpush.msrb.mxu3 %v2904_v57  ;;  %v3826_v26 = vld [vmem:[#allocation8 + $0x10] sm:$0xff] }
 0x256   : > { %v2261_v63 = vmax.f32 %v2250_v0, 0.0  ;;  %v2216_v60 = vmul.f32 %v2205_v53, %v2044_v45  ;;  %v1779_v31 = vadd.f32 %v1752_v47, %v1690_v43  ;;  %v1841_v41 = vpop.f32.mrf.mxu3  ;;  %v1666_v11 = vpop.f32.mrf.mxu1  ;;  %v1955_v0 = vadd.f32 %v1944_v39, %v4964_v49  ;;  %v2815_v43 = vld [vmem:[#allocation14 + $0x2e0] sm:$0xff]  ;;  %v2638_v57 = vld [vmem:[#allocation14 + $0x1d8] sm:$0xff] }
 0x257   : > { %v5162_v18 = vpop.f32.mrf.mxu0  ;;  %v1933_v53 = vmul.f32 %v4840_v25, %v4903_v16  ;;  %v1691_v9 = vadd.f32 %v1666_v11, %v1602_v8  ;;  %v2065_v25 = vadd.f32 %v5098_v13, %v2064_v5  ;;  %v2078_v16 = vsub.f32 1.0, %v2077_v62  ;;  %2822 = vmatpush.msrb.mxu2 %v2815_v43 }
 0x258   : > { %v5151_v19 = vmul.f32 %v3825_v33, %v2261_v63  ;;  %v2228_v7 = vmul.f32 %v5047_v27, %v2216_v60  ;;  %v1868_v4 = vadd.f32 %v1841_v41, %v1779_v31  ;;  %v1525_v41 = vadd.f32 %v4854_v30, %v1425_v32  ;;  %v2902_v32 = vld [vmem:[#allocation14 + $0x358] sm:$0xff] }
 0x259   : > { %v2412_v48 = vld [vmem:[#allocation2 + $0x4] sm:$0xff]  ;;  %v5189_v49 = vpop.eup %3764  ;;  %v3579_v14 = vmul.f32 -1.442695, %v1955_v0  ;;  %v1945_v40 = vadd.f32 %v4846_v61, %v1933_v53  ;;  %v2072_v24 = vand.u32 2147483648, %v5044_v56  ;;  %3768 = vrcp.f32 %v5181_v20 }
 0x25a   : > { %v2385_v29 = vld [vmem:[#allocation2 + $0x3] sm:$0xff]  ;;  %2283 = vst [vmem:[#allocation2 + $0x10] sm:$0xff] %v5151_v19  ;;  %v2239_v59 = vadd.f32 %v2228_v7, %v5001_v17  ;;  %v2194_v52 = vmul.f32 %v5007_v10, %v1868_v4  ;;  %2455 = vmatmul.f32.vlgmr.msra.gmra.mxu1 %v2412_v48  ;;  %2354 = vmatmul.f32.gmra.mxu0 %v5151_v19  ;;  %v2728_v17 = vld [vmem:[#allocation14 + $0x268] sm:$0xff]  ;;  %vm5210_vm3 = vcmp.eq.f32.partialorder %v2070_v2, 8.507059e+37  ;;  %v2639_v2 = vld [vmem:[#allocation14 + $0x1e0] sm:$0xff]  ;;  %vm2082_vm4 = vweird.f32 %v5142_v37 }
 0x25b   : > { %v2539_v55 = vld [vmem:[#allocation2 + $0x7] sm:$0xff]  ;;  %2505 = vmatmul.f32.vlgmr.msra.gmra.mxu2 %v2385_v29  ;;  %2733 = vmatpush.msrb.mxu1 %v2728_v17  ;;  %v3767_v61 = vpop.eup %3766  ;;  %v2069_v56 = vsel %vm5201_vm2, %v5098_v13, %v2065_v25  ;;  %v2079_v29 = vmul.f32 %v5142_v37, %v2078_v16  ;;  %v1603_v13 = vadd.f32 %v5162_v18, %v1525_v41  ;;  %3770 = vpow2.f32 %v3579_v14  ;;  %v3827_v41 = vld [vmem:[#allocation8 + $0x18] sm:$0xff] }
 0x25c   : > { %2582 = vmatmul.f32.vlgmr.msra.gmra.mxu3 %v2539_v55  ;;  %v2251_v45 = vadd.f32 %v5062_v22, %v2239_v59  ;;  %v2206_v47 = vadd.f32 %v5021_v1, %v2194_v52  ;;  %v2092_v55 = vmul.f32 %v5189_v49, %v5134_v35  ;;  %v2903_v59 = vld [vmem:[#allocation14 + $0x360] sm:$0xff]  ;;  %v1428_v8 = vadd.f32 %v4864_v58, %v4856_v21  ;;  %v2726_v58 = vld [vmem:[#allocation14 + $0x258] sm:$0xff] }
 0x25d   : > { %v1755_v12 = vpop.f32.mrf.mxu2  ;;  %v2727_v52 = vld [vmem:[#allocation14 + $0x260] sm:$0xff]  ;;  %v1956_v36 = vadd.f32 %v1945_v40, %v4981_v44  ;;  %v2073_v50 = vor.u32 1.1754944e-38, %v2072_v24  ;;  %v5228_v18 = vadd.f32 1.0, %v3767_v61  ;;  %2646 = vmatpush.msrb.mxu0 %v2639_v2  ;;  %2910 = vmatpush.msrb.mxu3 %v2903_v59  ;;  %v2080_v43 = vadd.f32 %v5142_v37, %v2079_v29 }
 0x25e   : > { %v2262_v38 = vmax.f32 %v2251_v45, 0.0  ;;  %v2217_v63 = vmul.f32 %v2206_v47, %v2059_v46  ;;  %v1780_v60 = vadd.f32 %v1755_v12, %v1691_v9  ;;  %v1844_v31 = vpop.f32.mrf.mxu3  ;;  %v1669_v39 = vpop.f32.mrf.mxu1  ;;  %v2093_v45 = vsub.f32 1.0, %v2092_v55  ;;  %2734 = vmatpush.msrb.mxu1 %v2727_v52  ;;  %v6140_v2 = vld [vmem:[#allocation46_spill] sm:$0xff] }
 0x25f   : > { %v5205_v30 = vpop.f32.mrf.mxu0  ;;  %v1692_v17 = vadd.f32 %v1669_v39, %v1603_v13  ;;  %v2074_v21 = vsel %vm5210_vm3, %v2073_v50, %v2069_v56  ;;  %v5236_v47 = vpop.eup %3768  ;;  %vm2081_vm5 = vweird.f32 %v5086_v6  ;;  %2647 = vmatpush.msrb.mxu0 %v2638_v57  ;;  %2911 = vmatpush.msrb.mxu3 %v2902_v32  ;;  %v1526_v16 = vadd.f32 %v4868_v34, %v1428_v8  ;;  %v6139_v13 = vld [vmem:[#allocation45_spill] sm:$0xff]  ;;  %v2812_v8 = vld [vmem:[#allocation14 + $0x2c8] sm:$0xff] }
 0x260   : > { %v5196_v11 = vmul.f32 %v3826_v26, %v2262_v38  ;;  %v2229_v33 = vmul.f32 %v5047_v27, %v2217_v63  ;;  %v1869_v7 = vadd.f32 %v1844_v31, %v1780_v60  ;;  %v3580_v38 = vmul.f32 -1.442695, %v1956_v36  ;;  %2735 = vmatpush.msrb.mxu1 %v2726_v58  ;;  %vm5248_vm6 = vmor %vm2081_vm5, %vm2082_vm4  ;;  %v6138_v26 = vld [vmem:[#allocation39_spill] sm:$0xff]  ;;  %v6141_v58 = vld [vmem:[#allocation57_spill] sm:$0xff] }
 0x261   : > { %v5214_v51 = vld [vmem:[#allocation2 + $0xc] sm:$0xff]  ;;  %v2085_v63 = vand.u32 2147483647, %v5086_v6  ;;  %v2087_v60 = vand.u32 2147483648, %v5086_v6  ;;  %3772 = vrcp.f32 %v5228_v18  ;;  %v3771_v34 = vpop.eup %3770  ;;  %v2172_v6 = vmul.f32 %v4938_v3, %v6138_v26  ;;  %v6145_v39 = vld [vmem:[#allocation40_spill] sm:$0xff] }
 0x262   : > { %v2386_v15 = vld [vmem:[#allocation2 + $0xb] sm:$0xff]  ;;  %2284 = vst [vmem:[#allocation2 + $0x18] sm:$0xff] %v5196_v11  ;;  %v2240_v5 = vadd.f32 %v2229_v33, %v5004_v42  ;;  %v2195_v62 = vmul.f32 %v5007_v10, %v1869_v7  ;;  %2458 = vmatmul.f32.gmra.mxu1 %v5214_v51  ;;  %2357 = vmatmul.f32.gmra.mxu0 %v5196_v11  ;;  %3774 = vpow2.f32 %v3580_v38  ;;  %v5270_v36 = vadd.f32 1.0, %v3771_v34 }
 0x263   : > { %v2540_v48 = vld [vmem:[#allocation2 + $0xf] sm:$0xff]  ;;  %2508 = vmatmul.f32.gmra.mxu2 %v2386_v15  ;;  %v2084_v33 = vsel %vm5248_vm6, %v5142_v37, %v2080_v43  ;;  %v2094_v56 = vmul.f32 %v5189_v49, %v2093_v45  ;;  %v2107_v15 = vmul.f32 %v5236_v47, %v5181_v20  ;;  %v1604_v55 = vadd.f32 %v5205_v30, %v1526_v16  ;;  %v2813_v37 = vld [vmem:[#allocation14 + $0x2d0] sm:$0xff] }
 0x264   : > { %2585 = vmatmul.f32.gmra.mxu3 %v2540_v48  ;;  %v2814_v42 = vld [vmem:[#allocation14 + $0x2d8] sm:$0xff]  ;;  %v2252_v0 = vadd.f32 %v5062_v22, %v2240_v5  ;;  %v2207_v53 = vadd.f32 %v5021_v1, %v2195_v62  ;;  %v2637_v5 = vld [vmem:[#allocation14 + $0x1d0] sm:$0xff]  ;;  %v1431_v59 = vadd.f32 %v6140_v2, %v6139_v13  ;;  %vm2086_vm7 = vcmp.eq.f32.partialorder %v2085_v63, 8.507059e+37  ;;  %v3828_v63 = vld [vmem:[#allocation8 + $0x20] sm:$0xff] }
 0x265   : > { %v1758_v44 = vpop.f32.mrf.mxu2  ;;  %2823 = vmatpush.msrb.mxu2 %v2814_v42  ;;  %v2901_v62 = vld [vmem:[#allocation14 + $0x350] sm:$0xff]  ;;  %v2088_v52 = vor.u32 1.1754944e-38, %v2087_v60  ;;  %2648 = vmatpush.msrb.mxu0 %v2637_v5  ;;  %vm2097_vm8 = vweird.f32 %v5189_v49  ;;  %vm2096_vm9 = vweird.f32 %v5134_v35  ;;  %v2102_v16 = vand.u32 2147483648, %v5134_v35 }
 0x266   : > { %v2263_v9 = vmax.f32 %v2252_v0, 0.0  ;;  %v2218_v46 = vmul.f32 %v2207_v53, %v2074_v21  ;;  %v1781_v12 = vadd.f32 %v1758_v44, %v1692_v17  ;;  %v1847_v25 = vpop.f32.mrf.mxu3  ;;  %v1672_v31 = vpop.f32.mrf.mxu1  ;;  %v2095_v0 = vadd.f32 %v5189_v49, %v2094_v56  ;;  %2912 = vmatpush.msrb.mxu3 %v2901_v62  ;;  %vm5289_vm10 = vmor %vm2096_vm9, %vm2097_vm8  ;;  %v6146_v5 = vld [vmem:[#allocation48_spill] sm:$0xff]  ;;  %v6147_v62 = vld [vmem:[#allocation49_spill] sm:$0xff] }
 0x267   : > { %v1586_v54 = vpop.f32.mrf.mxu0  ;;  %v1693_v42 = vadd.f32 %v1672_v31, %v1604_v55  ;;  %2824 = vmatpush.msrb.mxu2 %v2813_v37  ;;  %v2089_v57 = vsel %vm2086_vm7, %v2088_v52, %v2084_v33  ;;  %v2108_v53 = vsub.f32 1.0, %v2107_v15  ;;  %v5276_v17 = vpop.eup %3772  ;;  %v2184_v21 = vadd.f32 %v6141_v58, %v2172_v6  ;;  %v2636_v55 = vld [vmem:[#allocation14 + $0x1c8] sm:$0xff]  ;;  %v2811_v52 = vld [vmem:[#allocation14 + $0x2c0] sm:$0xff] }
 0x268   : > { %v5243_v14 = vmul.f32 %v3827_v41, %v2263_v9  ;;  %v2230_v40 = vmul.f32 %v5047_v27, %v2218_v46  ;;  %v1870_v24 = vadd.f32 %v1847_v25, %v1781_v12  ;;  %v6142_v46 = vld [vmem:[#allocation47_spill] sm:$0xff]  ;;  %v2100_v25 = vand.u32 2147483647, %v5134_v35  ;;  %2649 = vmatpush.msrb.mxu0 %v2636_v55 }
 0x269   : > { %v5257_v7 = vld [vmem:[#allocation2 + $0x14] sm:$0xff]  ;;  %2825 = vmatpush.msrb.mxu2 %v2812_v8  ;;  %v1527_v12 = vadd.f32 %v6142_v46, %v1431_v59  ;;  %3776 = vrcp.f32 %v5270_v36  ;;  %v2173_v34 = vmul.f32 %v4938_v3, %v6145_v39  ;;  %v2099_v35 = vsel %vm5289_vm10, %v5189_v49, %v2095_v0 }
 0x26a   : > { %v2387_v4 = vld [vmem:[#allocation2 + $0x13] sm:$0xff]  ;;  %2285 = vst [vmem:[#allocation2 + $0x20] sm:$0xff] %v5243_v14  ;;  %v2241_v48 = vadd.f32 %v2230_v40, %v5014_v23  ;;  %v2196_v29 = vmul.f32 %v5007_v10, %v1870_v24  ;;  %2461 = vmatmul.f32.gmra.mxu1 %v5257_v7  ;;  %2360 = vmatmul.f32.gmra.mxu0 %v5243_v14  ;;  %v2725_v23 = vld [vmem:[#allocation14 + $0x250] sm:$0xff]  ;;  %v3775_v24 = vpop.eup %3774  ;;  %vm2101_vm11 = vcmp.eq.f32.partialorder %v2100_v25, 8.507059e+37  ;;  %v2103_v2 = vor.u32 1.1754944e-38, %v2102_v16 }
 0x26b   : > { %v2541_v61 = vld [vmem:[#allocation2 + $0x17] sm:$0xff]  ;;  %2511 = vmatmul.f32.gmra.mxu2 %v2387_v4  ;;  %2736 = vmatpush.msrb.mxu1 %v2725_v23  ;;  %v2122_v56 = vmul.f32 %v5276_v17, %v5228_v18  ;;  %v1434_v13 = vadd.f32 %v6147_v62, %v6146_v5  ;;  %vm2112_vm12 = vweird.f32 %v5236_v47  ;;  %vm2111_vm13 = vweird.f32 %v5181_v20 }
 0x26c   : > { %2588 = vmatmul.f32.gmra.mxu3 %v2541_v61  ;;  %v2253_v30 = vadd.f32 %v5062_v22, %v2241_v48  ;;  %v2208_v50 = vadd.f32 %v5021_v1, %v2196_v29  ;;  %v2109_v61 = vmul.f32 %v5236_v47, %v2108_v53  ;;  %v1605_v29 = vadd.f32 %v1586_v54, %v1527_v12  ;;  %v2900_v49 = vld [vmem:[#allocation14 + $0x348] sm:$0xff]  ;;  %v2635_v23 = vld [vmem:[#allocation14 + $0x1c0] sm:$0xff]  ;;  %vm5328_vm14 = vmor %vm2111_vm13, %vm2112_vm12 }
 0x26d   : > { %v1761_v32 = vpop.f32.mrf.mxu2  ;;  %v2724_v37 = vld [vmem:[#allocation14 + $0x248] sm:$0xff]  ;;  %v2899_v8 = vld [vmem:[#allocation14 + $0x340] sm:$0xff]  ;;  %2913 = vmatpush.msrb.mxu3 %v2900_v49  ;;  %v2123_v53 = vsub.f32 1.0, %v2122_v56  ;;  %2826 = vmatpush.msrb.mxu2 %v2811_v52  ;;  %v2115_v16 = vand.u32 2147483647, %v5181_v20  ;;  %v2634_v49 = vld [vmem:[#allocation14 + $0x1b8] sm:$0xff]  ;;  %vm2127_vm0 = vweird.f32 %v5276_v17  ;;  %vm2126_vm1 = vweird.f32 %v5228_v18 }
 0x26e   : > { %v2264_v44 = vmax.f32 %v2253_v30, 0.0  ;;  %v2219_v43 = vmul.f32 %v2208_v50, %v2089_v57  ;;  %v1782_v45 = vadd.f32 %v1761_v32, %v1693_v42  ;;  %v1850_v9 = vpop.f32.mrf.mxu3  ;;  %v1675_v38 = vpop.f32.mrf.mxu1  ;;  %v5309_v30 = vadd.f32 1.0, %v3775_v24  ;;  %2737 = vmatpush.msrb.mxu1 %v2724_v37  ;;  %2650 = vmatpush.msrb.mxu0 %v2635_v23  ;;  %v6148_v12 = vld [vmem:[#allocation50_spill] sm:$0xff]  ;;  %v6151_v37 = vld [vmem:[#allocation41_spill] sm:$0xff]  ;;  %v6152_v62 = vld [vmem:[#allocation51_spill] sm:$0xff] }
 0x26f   : > { %v1589_v59 = vpop.f32.mrf.mxu0  ;;  %v1694_v42 = vadd.f32 %v1675_v38, %v1605_v29  ;;  %v2104_v57 = vsel %vm2101_vm11, %v2103_v2, %v2099_v35  ;;  %v2110_v0 = vadd.f32 %v5236_v47, %v2109_v61  ;;  %2914 = vmatpush.msrb.mxu3 %v2899_v8  ;;  %v1528_v25 = vadd.f32 %v6148_v12, %v1434_v13  ;;  %v2723_v55 = vld [vmem:[#allocation14 + $0x240] sm:$0xff]  ;;  %v6153_v13 = vld [vmem:[#allocation52_spill] sm:$0xff]  ;;  %v2898_v23 = vld [vmem:[#allocation14 + $0x338] sm:$0xff] }
 0x270   : > { %v5284_v60 = vmul.f32 %v3828_v63, %v2264_v44  ;;  %v2231_v31 = vmul.f32 %v5047_v27, %v2219_v43  ;;  %v1871_v41 = vadd.f32 %v1850_v9, %v1782_v45  ;;  %v2185_v44 = vadd.f32 %v6141_v58, %v2173_v34  ;;  %v2722_v8 = vld [vmem:[#allocation14 + $0x238] sm:$0xff]  ;;  %2738 = vmatpush.msrb.mxu1 %v2723_v55  ;;  %vm5364_vm2 = vmor %vm2126_vm1, %vm2127_vm0 }
 0x271   : > { %v5298_v6 = vld [vmem:[#allocation2 + $0x1c] sm:$0xff]  ;;  %v2117_v38 = vand.u32 2147483648, %v5181_v20  ;;  %3778 = vrcp.f32 %v5309_v30  ;;  %v2114_v35 = vsel %vm5328_vm14, %v5236_v47, %v2110_v0  ;;  %v2124_v61 = vmul.f32 %v5276_v17, %v2123_v53  ;;  %v2810_v47 = vld [vmem:[#allocation14 + $0x2b8] sm:$0xff]  ;;  %2651 = vmatpush.msrb.mxu0 %v2634_v49  ;;  %2915 = vmatpush.msrb.mxu3 %v2898_v23 }
 0x272   : > { %v2388_v33 = vld [vmem:[#allocation2 + $0x1b] sm:$0xff]  ;;  %2286 = vst [vmem:[#allocation2 + $0x28] sm:$0xff] %v5284_v60  ;;  %v2242_v15 = vadd.f32 %v2231_v31, %v2184_v21  ;;  %v2197_v48 = vmul.f32 %v5007_v10, %v1871_v41  ;;  %2464 = vmatmul.f32.gmra.mxu1 %v5298_v6  ;;  %2363 = vmatmul.f32.gmra.mxu0 %v5284_v60  ;;  %v5315_v21 = vpop.eup %3776  ;;  %vm2116_vm15 = vcmp.eq.f32.partialorder %v2115_v16, 8.507059e+37  ;;  %v2132_v16 = vand.u32 2147483648, %v5228_v18 }
 0x273   : > { %v2542_v4 = vld [vmem:[#allocation2 + $0x1f] sm:$0xff]  ;;  %2514 = vmatmul.f32.gmra.mxu2 %v2388_v33  ;;  %v2137_v56 = vmul.f32 %v5315_v21, %v5270_v36  ;;  %v1606_v29 = vadd.f32 %v1589_v59, %v1528_v25  ;;  %v2174_v5 = vmul.f32 %v4938_v3, %v6151_v37  ;;  %v1437_v2 = vadd.f32 %v6153_v13, %v6152_v62  ;;  %v6157_v62 = vld [vmem:[#allocation42_spill] sm:$0xff] }
 0x274   : > { %2591 = vmatmul.f32.gmra.mxu3 %v2542_v4  ;;  %v2254_v54 = vadd.f32 %v5062_v22, %v2242_v15  ;;  %v2209_v50 = vadd.f32 %v5021_v1, %v2197_v48  ;;  %v3829_v31 = vld [vmem:[#allocation8 + $0x28] sm:$0xff]  ;;  %v2118_v52 = vor.u32 1.1754944e-38, %v2117_v38  ;;  %2827 = vmatpush.msrb.mxu2 %v2810_v47  ;;  %v2130_v25 = vand.u32 2147483647, %v5228_v18 }
 0x275   : > { %v1764_v32 = vpop.f32.mrf.mxu2  ;;  %v2138_v53 = vsub.f32 1.0, %v2137_v56  ;;  %2739 = vmatpush.msrb.mxu1 %v2722_v8  ;;  %v2186_v12 = vadd.f32 %v6141_v58, %v2174_v5  ;;  %v2897_v47 = vld [vmem:[#allocation14 + $0x330] sm:$0xff]  ;;  %v5381_v5 = vld [vmem:[#allocation16 + $0x4] ss:$0 sm:$0xff]  ;;  %v2133_v8 = vor.u32 1.1754944e-38, %v2132_v16  ;;  %vm2142_vm4 = vweird.f32 %v5315_v21 }
 0x276   : > { %v2265_v43 = vmax.f32 %v2254_v54, 0.0  ;;  %v2220_v45 = vmul.f32 %v2209_v50, %v2104_v57  ;;  %v1783_v9 = vadd.f32 %v1764_v32, %v1694_v42  ;;  %v1853_v46 = vpop.f32.mrf.mxu3  ;;  %v1678_v63 = vpop.f32.mrf.mxu1  ;;  %v2809_v54 = vld [vmem:[#allocation14 + $0x2b0] sm:$0xff]  ;;  %v2119_v57 = vsel %vm2116_vm15, %v2118_v52, %v2114_v35  ;;  %v6159_v52 = vld [vmem:[#allocation55_spill] sm:$0xff]  ;;  %2916 = vmatpush.msrb.mxu3 %v2897_v47 }
 0x277   : > { %v1695_v42 = vadd.f32 %v1678_v63, %v1606_v29  ;;  %v2125_v32 = vadd.f32 %v5276_v17, %v2124_v61  ;;  %v1592_v0 = vpop.f32.mrf.mxu0  ;;  %2828 = vmatpush.msrb.mxu2 %v2809_v54  ;;  %v6154_v63 = vld [vmem:[#allocation53_spill] sm:$0xff]  ;;  %v2139_v56 = vmul.f32 %v5315_v21, %v2138_v53  ;;  %v2175_v13 = vmul.f32 %v5381_v5, %v6157_v62  ;;  %v2632_v54 = vld [vmem:[#allocation14 + $0x1a8] sm:$0xff] }
 0x278   : > { %v5323_v41 = vmul.f32 %v3829_v31, %v2265_v43  ;;  %v2232_v40 = vmul.f32 %v5047_v27, %v2220_v45  ;;  %v1872_v24 = vadd.f32 %v1853_v46, %v1783_v9  ;;  %v1529_v31 = vadd.f32 %v6154_v63, %v1437_v2  ;;  %v2721_v49 = vld [vmem:[#allocation14 + $0x230] sm:$0xff]  ;;  %v6158_v2 = vld [vmem:[#allocation54_spill] sm:$0xff] }
 0x279   : > { %v5335_v20 = vld [vmem:[#allocation2 + $0x24] sm:$0xff]  ;;  %v2129_v58 = vsel %vm5364_vm2, %v5276_v17, %v2125_v32  ;;  %v1440_v23 = vadd.f32 %v6159_v52, %v6158_v2  ;;  %vm2131_vm3 = vcmp.eq.f32.partialorder %v2130_v25, 8.507059e+37  ;;  %v2807_v32 = vld [vmem:[#allocation14 + $0x2a0] sm:$0xff]  ;;  %2740 = vmatpush.msrb.mxu1 %v2721_v49  ;;  %vm2141_vm5 = vweird.f32 %v5270_v36 }
 0x27a   : > { %v2389_v33 = vld [vmem:[#allocation2 + $0x23] sm:$0xff]  ;;  %2287 = vst [vmem:[#allocation2 + $0x30] sm:$0xff] %v5323_v41  ;;  %v2243_v15 = vadd.f32 %v2232_v40, %v2185_v44  ;;  %v2198_v48 = vmul.f32 %v5007_v10, %v1872_v24  ;;  %2467 = vmatmul.f32.gmra.mxu1 %v5335_v20  ;;  %2366 = vmatmul.f32.gmra.mxu0 %v5323_v41  ;;  %v5352_v44 = vpop.eup %3778  ;;  %v2719_v63 = vld [vmem:[#allocation14 + $0x220] sm:$0xff]  ;;  %vm5407_vm6 = vmor %vm2141_vm5, %vm2142_vm4  ;;  %vm2156_vm9 = vweird.f32 %v5309_v30 }
 0x27b   : > { %v2543_v4 = vld [vmem:[#allocation2 + $0x27] sm:$0xff]  ;;  %2517 = vmatmul.f32.gmra.mxu2 %v2389_v33  ;;  %v1607_v55 = vadd.f32 %v1592_v0, %v1529_v31  ;;  %v2134_v0 = vsel %vm2131_vm3, %v2133_v8, %v2129_v58  ;;  %v5395_v31 = vld [vmem:[#allocation16 + $0x5] ss:$0 sm:$0xff]  ;;  %v6160_v58 = vld [vmem:[#allocation56_spill] sm:$0xff]  ;;  %vm2157_vm8 = vweird.f32 %v5352_v44 }
 0x27c   : > { %2594 = vmatmul.f32.gmra.mxu3 %v2543_v4  ;;  %v2255_v59 = vadd.f32 %v5062_v22, %v2243_v15  ;;  %v2210_v50 = vadd.f32 %v5021_v1, %v2198_v48  ;;  %v3830_v40 = vld [vmem:[#allocation8 + $0x30] sm:$0xff]  ;;  %v5376_v15 = vmul.f32 %v5352_v44, %v5309_v30  ;;  %v2633_v17 = vld [vmem:[#allocation14 + $0x1b0] sm:$0xff]  ;;  %vm5434_vm10 = vmor %vm2156_vm9, %vm2157_vm8 }
 0x27d   : > { %v1767_v3 = vpop.f32.mrf.mxu2  ;;  %2652 = vmatpush.msrb.mxu0 %v2633_v17 }
 0x27e   : > { %v2266_v43 = vmax.f32 %v2255_v59, 0.0  ;;  %v2221_v45 = vmul.f32 %v2210_v50, %v2119_v57  ;;  %v1784_v9 = vadd.f32 %v1767_v3, %v1695_v42  ;;  %v1856_v46 = vpop.f32.mrf.mxu3  ;;  %v1681_v38 = vpop.f32.mrf.mxu1  ;;  %v2896_v59 = vld [vmem:[#allocation14 + $0x328] sm:$0xff] }
 0x27f   : > { %v1696_v57 = vadd.f32 %v1681_v38, %v1607_v55  ;;  %v2720_v3 = vld [vmem:[#allocation14 + $0x228] sm:$0xff]  ;;  %2653 = vmatpush.msrb.mxu0 %v2632_v54  ;;  %2917 = vmatpush.msrb.mxu3 %v2896_v59  ;;  %v2895_v38 = vld [vmem:[#allocation14 + $0x320] sm:$0xff]  ;;  %v1595_v33 = vpop.f32.mrf.mxu0  ;;  %v2806_v55 = vld [vmem:[#allocation14 + $0x298] sm:$0xff] }
 0x280   : > { %v5359_v24 = vmul.f32 %v3830_v40, %v2266_v43  ;;  %v2233_v34 = vmul.f32 %v5047_v27, %v2221_v45  ;;  %v1873_v35 = vadd.f32 %v1856_v46, %v1784_v9  ;;  %v5391_v43 = vadd.f32 %v5315_v21, %v2139_v56  ;;  %v2631_v9 = vld [vmem:[#allocation14 + $0x1a0] sm:$0xff]  ;;  %2741 = vmatpush.msrb.mxu1 %v2720_v3  ;;  %v2894_v54 = vld [vmem:[#allocation14 + $0x318] sm:$0xff]  ;;  %v2629_v3 = vld [vmem:[#allocation14 + $0x190] sm:$0xff] }
 0x281   : > { %v5371_v18 = vld [vmem:[#allocation2 + $0x2c] sm:$0xff]  ;;  %v2153_v45 = vsub.f32 1.0, %v5376_v15  ;;  %v2187_v40 = vadd.f32 %v5395_v31, %v2175_v13  ;;  %2654 = vmatpush.msrb.mxu0 %v2631_v9  ;;  %2918 = vmatpush.msrb.mxu3 %v2895_v38  ;;  %v6163_v59 = vld [vmem:[#allocation43_spill] sm:$0xff] }
 0x282   : > { %v2390_v4 = vld [vmem:[#allocation2 + $0x2b] sm:$0xff]  ;;  %2288 = vst [vmem:[#allocation2 + $0x38] sm:$0xff] %v5359_v24  ;;  %v2244_v48 = vadd.f32 %v2233_v34, %v2186_v12  ;;  %v2199_v29 = vmul.f32 %v5007_v10, %v1873_v35  ;;  %2470 = vmatmul.f32.gmra.mxu1 %v5371_v18  ;;  %2369 = vmatmul.f32.gmra.mxu0 %v5359_v24  ;;  %v2808_v10 = vld [vmem:[#allocation14 + $0x2a8] sm:$0xff]  ;;  %v2145_v34 = vand.u32 2147483647, %v5270_v36  ;;  %v2147_v35 = vand.u32 2147483648, %v5270_v36 }
 0x283   : > { %v2544_v61 = vld [vmem:[#allocation2 + $0x2f] sm:$0xff]  ;;  %2520 = vmatmul.f32.gmra.mxu2 %v2390_v4  ;;  %v1530_v4 = vadd.f32 %v6160_v58, %v1440_v23  ;;  %v2144_v17 = vsel %vm5407_vm6, %v5315_v21, %v5391_v43  ;;  %v2154_v2 = vmul.f32 %v5352_v44, %v2153_v45  ;;  %2742 = vmatpush.msrb.mxu1 %v2719_v63  ;;  %v2893_v43 = vld [vmem:[#allocation14 + $0x310] sm:$0xff]  ;;  %v3835_v58 = vld [vmem:[#allocation8 + $0x40] sm:$0xff] }
 0x284   : > { %2597 = vmatmul.f32.gmra.mxu3 %v2544_v61  ;;  %v2256_v50 = vadd.f32 %v5062_v22, %v2244_v48  ;;  %v2211_v42 = vadd.f32 %v5021_v1, %v2199_v29  ;;  %2829 = vmatpush.msrb.mxu2 %v2808_v10  ;;  %v3833_v61 = vld [vmem:[#allocation8 + $0x38] sm:$0xff]  ;;  %v2630_v36 = vld [vmem:[#allocation14 + $0x198] sm:$0xff]  ;;  %vm2146_vm7 = vcmp.eq.f32.partialorder %v2145_v34, 8.507059e+37  ;;  %v2717_v45 = vld [vmem:[#allocation14 + $0x210] sm:$0xff] }
 0x285   : > { %v1770_v53 = vpop.f32.mrf.mxu2  ;;  %v3834_v23 = vld [vmem:[#allocation16 + $0x6] ss:$0 sm:$0xff]  ;;  %v1608_v10 = vadd.f32 %v1595_v33, %v1530_v4  ;;  %v2718_v21 = vld [vmem:[#allocation14 + $0x218] sm:$0xff]  ;;  %2655 = vmatpush.msrb.mxu0 %v2630_v36  ;;  %2919 = vmatpush.msrb.mxu3 %v2894_v54  ;;  %v2162_v33 = vand.u32 2147483648, %v5309_v30  ;;  %v2706_v29 = vld [vmem:[#allocation2 + $0x19] sm:$0xff] }
 0x286   : > { %v2267_v46 = vmax.f32 %v2256_v50, 0.0  ;;  %v2222_v12 = vmul.f32 %v2211_v42, %v2134_v0  ;;  %v1785_v25 = vadd.f32 %v1770_v53, %v1696_v57  ;;  %v1859_v16 = vpop.f32.mrf.mxu3  ;;  %2830 = vmatpush.msrb.mxu2 %v2807_v32  ;;  %v1684_v47 = vpop.f32.mrf.mxu1  ;;  %v2176_v50 = vmul.f32 %v5381_v5, %v6163_v59  ;;  %v2805_v57 = vld [vmem:[#allocation14 + $0x290] sm:$0xff]  ;;  %2743 = vmatpush.msrb.mxu1 %v2718_v21  ;;  %v2803_v36 = vld [vmem:[#allocation14 + $0x280] sm:$0xff] }
 0x287   : > { %v2148_v42 = vor.u32 1.1754944e-38, %v2147_v35  ;;  %v1697_v53 = vadd.f32 %v1684_v47, %v1608_v10  ;;  %2656 = vmatpush.msrb.mxu0 %v2629_v3  ;;  %2920 = vmatpush.msrb.mxu3 %v2893_v43  ;;  %v2715_v10 = vld [vmem:[#allocation14 + $0x200] sm:$0xff]  ;;  %v2163_v54 = vor.u32 1.1754944e-38, %v2162_v33  ;;  %v6166_v21 = vld [vmem:[#allocation44_spill] sm:$0xff] }
 0x288   : > { %v5402_v56 = vmul.f32 %v3833_v61, %v2267_v46  ;;  %v2234_v15 = vmul.f32 %v5047_v27, %v2222_v12  ;;  %v1874_v48 = vadd.f32 %v1859_v16, %v1785_v25  ;;  %2831 = vmatpush.msrb.mxu2 %v2806_v55  ;;  %v2804_v12 = vld [vmem:[#allocation14 + $0x288] sm:$0xff]  ;;  %v2188_v34 = vadd.f32 %v5395_v31, %v2176_v50  ;;  %v3838_v3 = vld [vmem:[#allocation16 + $0x7] ss:$0 sm:$0xff]  ;;  %v3839_v43 = vld [vmem:[#allocation8 + $0x48] sm:$0xff] }
 0x289   : > { %v5415_v49 = vld [vmem:[#allocation2 + $0x34] sm:$0xff]  ;;  %v2149_v9 = vsel %vm2146_vm7, %v2148_v42, %v2144_v17  ;;  %2744 = vmatpush.msrb.mxu1 %v2717_v45  ;;  %v2160_v55 = vand.u32 2147483647, %v5309_v30  ;;  %v2177_v50 = vmul.f32 %v5381_v5, %v6166_v21 }
 0x28a   : > { %v2391_v13 = vld [vmem:[#allocation2 + $0x33] sm:$0xff]  ;;  %2289 = vst [vmem:[#allocation2 + $0x40] sm:$0xff] %v5402_v56  ;;  %v2245_v52 = vadd.f32 %v2234_v15, %v2187_v40  ;;  %v2200_v8 = vmul.f32 %v3834_v23, %v1874_v48  ;;  %2473 = vmatmul.f32.gmra.mxu1 %v5415_v49  ;;  %2372 = vmatmul.f32.gmra.mxu0 %v5402_v56 }
 0x28b   : > { %v2545_v27 = vld [vmem:[#allocation2 + $0x37] sm:$0xff]  ;;  %2523 = vmatmul.f32.gmra.mxu2 %v2391_v13  ;;  %vm2161_vm11 = vcmp.eq.f32.partialorder %v2160_v55, 8.507059e+37  ;;  %v2708_v55 = vld [vmem:[#allocation2 + $0x29] sm:$0xff] }
 0x28c   : > { %2600 = vmatmul.f32.gmra.mxu3 %v2545_v27  ;;  %v2257_v32 = vadd.f32 %v5062_v22, %v2245_v52  ;;  %v2212_v0 = vadd.f32 %v5021_v1, %v2200_v8  ;;  %v2628_v25 = vld [vmem:[#allocation14 + $0x188] sm:$0xff]  ;;  %v2155_v22 = vadd.f32 %v5352_v44, %v2154_v2  ;;  %2832 = vmatpush.msrb.mxu2 %v2805_v57  ;;  %v2627_v17 = vld [vmem:[#allocation14 + $0x180] sm:$0xff] }
 0x28d   : > { %v1773_v46 = vpop.f32.mrf.mxu2  ;;  %v2892_v1 = vld [vmem:[#allocation14 + $0x308] sm:$0xff]  ;;  %2657 = vmatpush.msrb.mxu0 %v2628_v25  ;;  %v2891_v30 = vld [vmem:[#allocation14 + $0x300] sm:$0xff] }
 0x28e   : > { %v2268_v16 = vmax.f32 %v2257_v32, 0.0  ;;  %v2223_v38 = vmul.f32 %v2212_v0, %v2149_v9  ;;  %v1786_v63 = vadd.f32 %v1773_v46, %v1697_v53  ;;  %v2716_v40 = vld [vmem:[#allocation14 + $0x208] sm:$0xff]  ;;  %v1862_v35 = vpop.f32.mrf.mxu3  ;;  %2833 = vmatpush.msrb.mxu2 %v2804_v12  ;;  %2921 = vmatpush.msrb.mxu3 %v2892_v1  ;;  %v2159_v52 = vsel %vm5434_vm10, %v5352_v44, %v2155_v22 }
 0x28f   : > { %v3836_v61 = vld [vmem:[#allocation16 + $0x8] ss:$0 sm:$0xff]  ;;  %2745 = vmatpush.msrb.mxu1 %v2716_v40  ;;  %v3837_v42 = vld [vmem:[#allocation16 + $0x9] ss:$0 sm:$0xff]  ;;  %2658 = vmatpush.msrb.mxu0 %v2627_v17  ;;  %v2164_v44 = vsel %vm2161_vm11, %v2163_v54, %v2159_v52  ;;  %v2189_v53 = vadd.f32 %v5395_v31, %v2177_v50  ;;  %v3840_v31 = vld [vmem:[#allocation8 + $0x50] sm:$0xff] }
 0x290   : > { %v5430_v4 = vmul.f32 %v3835_v58, %v2268_v16  ;;  %v2235_v15 = vmul.f32 %v3836_v61, %v2223_v38  ;;  %v1875_v48 = vadd.f32 %v1862_v35, %v1786_v63  ;;  %2834 = vmatpush.msrb.mxu2 %v2803_v36  ;;  %2922 = vmatpush.msrb.mxu3 %v2891_v30  ;;  %v2704_v58 = vld [vmem:[#allocation2 + $0x9] sm:$0xff]  ;;  %v2709_v36 = vld [vmem:[#allocation2 + $0x31] sm:$0xff] }
 0x291   : > { %v5439_v47 = vld [vmem:[#allocation2 + $0x3c] sm:$0xff]  ;;  %2746 = vmatpush.msrb.mxu1 %v2715_v10 }
 0x292   : > { %v2392_v13 = vld [vmem:[#allocation2 + $0x3b] sm:$0xff]  ;;  %2290 = vst [vmem:[#allocation2 + $0x48] sm:$0xff] %v5430_v4  ;;  %v2246_v2 = vadd.f32 %v2235_v15, %v2188_v34  ;;  %v2201_v8 = vmul.f32 %v3834_v23, %v1875_v48  ;;  %2476 = vmatmul.f32.gmra.mxu1 %v5439_v47  ;;  %2375 = vmatmul.f32.gmra.mxu0 %v5430_v4  ;;  %v2705_v15 = vld [vmem:[#allocation2 + $0x11] sm:$0xff] }
 0x293   : > { %v2546_v27 = vld [vmem:[#allocation2 + $0x3f] sm:$0xff]  ;;  %2526 = vmatmul.f32.gmra.mxu2 %v2392_v13  ;;  %v2881_v48 = vld [vmem:[#allocation2 + $0x15] sm:$0xff] }
 0x294   : > { %2603 = vmatmul.f32.gmra.mxu3 %v2546_v27  ;;  %v2258_v57 = vadd.f32 %v3837_v42, %v2246_v2  ;;  %v2213_v32 = vadd.f32 %v3838_v3, %v2201_v8  ;;  %v2886_v52 = vld [vmem:[#allocation2 + $0x3d] sm:$0xff] }
 0x296   : > { %v2269_v23 = vmax.f32 %v2258_v57, 0.0  ;;  %v2224_v0 = vmul.f32 %v2213_v32, %v2164_v44 }
 0x298   : > { %v5450_v45 = vmul.f32 %v3839_v43, %v2269_v23  ;;  %v2236_v9 = vmul.f32 %v3836_v61, %v2224_v0  ;;  %v2880_v61 = vld [vmem:[#allocation2 + $0xd] sm:$0xff] }
 0x299   : > { %v5452_v46 = vld [vmem:[#allocation2 + $0x44] sm:$0xff] }
 0x29a   : > { %v2393_v5 = vld [vmem:[#allocation2 + $0x43] sm:$0xff]  ;;  %2291 = vst [vmem:[#allocation2 + $0x50] sm:$0xff] %v5450_v45  ;;  %v2247_v25 = vadd.f32 %v2236_v9, %v2189_v53  ;;  %2479 = vmatmul.f32.gmra.mxu1 %v5452_v46  ;;  %2378 = vmatmul.f32.gmra.mxu0 %v5450_v45 }
 0x29b   : > { %v2547_v12 = vld [vmem:[#allocation2 + $0x47] sm:$0xff]  ;;  %2529 = vmatmul.f32.gmra.mxu2 %v2393_v5 }
 0x29c   : > { %2606 = vmatmul.f32.gmra.mxu3 %v2547_v12  ;;  %v2259_v16 = vadd.f32 %v3837_v42, %v2247_v25  ;;  %v2711_v50 = vld [vmem:[#allocation2 + $0x41] sm:$0xff] }
 0x29d   : > { %v2887_v42 = vld [vmem:[#allocation2 + $0x45] sm:$0xff] }
 0x29e   : > { %v2270_v38 = vmax.f32 %v2259_v16, 0.0 }
 0x2a0   : > { %v5457_v63 = vmul.f32 %v3840_v31, %v2270_v38 }
 0x2a1   : > { %v5459_v22 = vld [vmem:[#allocation2 + $0x4c] sm:$0xff] }
 0x2a2   : > { %v2394_v1 = vld [vmem:[#allocation2 + $0x4b] sm:$0xff]  ;;  %2292 = vst [vmem:[#allocation2 + $0x58] sm:$0xff] %v5457_v63  ;;  %2482 = vmatmul.f32.gmra.mxu1 %v5459_v22  ;;  %2381 = vmatmul.f32.gmra.mxu0 %v5457_v63 }
 0x2a3   : > { %v2548_v40 = vld [vmem:[#allocation2 + $0x4f] sm:$0xff]  ;;  %2532 = vmatmul.f32.gmra.mxu2 %v2394_v1 }
 0x2a4   : > { %2609 = vmatmul.f32.gmra.mxu3 %v2548_v40  ;;  %v2712_v23 = vld [vmem:[#allocation2 + $0x49] sm:$0xff] }
 0x2a5   : > { %v2888_v0 = vld [vmem:[#allocation2 + $0x4d] sm:$0xff] }
 0x2a9   : > { %v5464_v34 = vld [vmem:[#allocation2 + $0x54] sm:$0xff] }
 0x2aa   : > { %v2395_v35 = vld [vmem:[#allocation2 + $0x53] sm:$0xff]  ;;  %2485 = vmatmul.f32.gmra.mxu1 %v5464_v34  ;;  %2659 = vmatmul.f32.vlgmr.msrb.gmra.mxu0 %v5104_v28  ;;  %v2882_v28 = vld [vmem:[#allocation2 + $0x1d] sm:$0xff] }
 0x2ab   : > { %v2549_v33 = vld [vmem:[#allocation2 + $0x57] sm:$0xff]  ;;  %2535 = vmatmul.f32.gmra.mxu2 %v2395_v35 }
 0x2ac   : > { %2612 = vmatmul.f32.gmra.mxu3 %v2549_v33  ;;  %v2713_v12 = vld [vmem:[#allocation2 + $0x51] sm:$0xff]  ;;  %v5514_v35 = vld [vmem:[#allocation16 + $0xa] ss:$0 sm:$0xff] }
 0x2ad   : > { %v2889_v25 = vld [vmem:[#allocation2 + $0x55] sm:$0xff] }
 0x2ae   : > { %v2714_v33 = vld [vmem:[#allocation2 + $0x59] sm:$0xff] }
 0x2b2   : > { %2747 = vmatmul.f32.vlgmr.msrb.gmra.mxu1 %v2704_v58  ;;  %2662 = vmatmul.f32.gmra.mxu0 %v5151_v19  ;;  %v2883_v19 = vld [vmem:[#allocation2 + $0x25] sm:$0xff]  ;;  %v2802_v58 = vld [vmem:[#allocation2 + $0x5c] sm:$0xff] }
 0x2b3   : > { %2835 = vmatmul.f32.vlgmr.msrb.gmra.mxu2 %v5214_v51  ;;  %v2707_v51 = vld [vmem:[#allocation2 + $0x21] sm:$0xff] }
 0x2b4   : > { %2923 = vmatmul.f32.vlgmr.msrb.gmra.mxu3 %v2880_v61  ;;  %v5518_v61 = vld [vmem:[#allocation16 + $0xd] ss:$0 sm:$0xff] }
 0x2ba   : > { %2750 = vmatmul.f32.gmra.mxu1 %v2705_v15  ;;  %2665 = vmatmul.f32.gmra.mxu0 %v5196_v11  ;;  %v2884_v11 = vld [vmem:[#allocation2 + $0x2d] sm:$0xff] }
 0x2bb   : > { %2838 = vmatmul.f32.gmra.mxu2 %v5257_v7  ;;  %v6167_v15 = vld [vmem:[#allocation23_spill] sm:$0xff] }
 0x2bc   : > { %2926 = vmatmul.f32.gmra.mxu3 %v2881_v48  ;;  %v2991_v48 = vmul.f32 %v5514_v35, %v6167_v15 }
 0x2c2   : > { %2753 = vmatmul.f32.gmra.mxu1 %v2706_v29  ;;  %2668 = vmatmul.f32.gmra.mxu0 %v5243_v14  ;;  %v5522_v29 = vld [vmem:[#allocation16 + $0xb] ss:$0 sm:$0xff] }
 0x2c3   : > { %2841 = vmatmul.f32.gmra.mxu2 %v5298_v6 }
 0x2c4   : > { %2929 = vmatmul.f32.gmra.mxu3 %v2882_v28 }
 0x2ca   : > { %2756 = vmatmul.f32.gmra.mxu1 %v2707_v51  ;;  %2671 = vmatmul.f32.gmra.mxu0 %v5284_v60 }
 0x2cb   : > { %2844 = vmatmul.f32.gmra.mxu2 %v5335_v20  ;;  %v2885_v20 = vld [vmem:[#allocation2 + $0x35] sm:$0xff] }
 0x2cc   : > { %2932 = vmatmul.f32.gmra.mxu3 %v2883_v19 }
 0x2cf   : > { %v5476_v7 = vpop.f32.mrf.mxu0 }
 0x2d2   : > { %2759 = vmatmul.f32.gmra.mxu1 %v2708_v55  ;;  %2674 = vmatmul.f32.gmra.mxu0 %v5323_v41  ;;  %v2710_v41 = vld [vmem:[#allocation2 + $0x39] sm:$0xff] }
 0x2d3   : > { %2847 = vmatmul.f32.gmra.mxu2 %v5371_v18 }
 0x2d4   : > { %2935 = vmatmul.f32.gmra.mxu3 %v2884_v11 }
 0x2d7   : > { %v2456_v6 = vpop.f32.mrf.mxu1  ;;  %v5480_v14 = vpop.f32.mrf.mxu0 }
 0x2da   : > { %2762 = vmatmul.f32.gmra.mxu1 %v2709_v36  ;;  %2677 = vmatmul.f32.gmra.mxu0 %v5359_v24 }
 0x2db   : > { %2850 = vmatmul.f32.gmra.mxu2 %v5415_v49 }
 0x2dc   : > { %2938 = vmatmul.f32.gmra.mxu3 %v2885_v20 }
 0x2de   : > { %v2506_v60 = vpop.f32.mrf.mxu2 }
 0x2df   : > { %v2507_v17 = vadd.f32 %v2506_v60, %v2456_v6  ;;  %v2583_v13 = vpop.f32.mrf.mxu3  ;;  %v2459_v27 = vpop.f32.mrf.mxu1 }
 0x2e0   : > { %v5486_v2 = vpop.f32.mrf.mxu0 }
 0x2e1   : > { %v5484_v18 = vadd.f32 %v2583_v13, %v2507_v17  ;;  %v6168_v17 = vld [vmem:[#allocation24_spill] sm:$0xff] }
 0x2e2   : > { %2765 = vmatmul.f32.gmra.mxu1 %v2710_v41  ;;  %2680 = vmatmul.f32.gmra.mxu0 %v5402_v56  ;;  %v2992_v13 = vmul.f32 %v5514_v35, %v6168_v17 }
 0x2e3   : > { %2853 = vmatmul.f32.gmra.mxu2 %v5439_v47 }
 0x2e4   : > { %2941 = vmatmul.f32.gmra.mxu3 %v2886_v52 }
 0x2e6   : > { %v2509_v49 = vpop.f32.mrf.mxu2 }
 0x2e7   : > { %v2510_v8 = vadd.f32 %v2509_v49, %v2459_v27  ;;  %v2586_v30 = vpop.f32.mrf.mxu3  ;;  %v2462_v24 = vpop.f32.mrf.mxu1 }
 0x2e8   : > { %v5492_v54 = vpop.f32.mrf.mxu0 }
 0x2e9   : > { %v5490_v10 = vadd.f32 %v2586_v30, %v2510_v8 }
 0x2ea   : > { %2768 = vmatmul.f32.gmra.mxu1 %v2711_v50  ;;  %2683 = vmatmul.f32.gmra.mxu0 %v5430_v4 }
 0x2eb   : > { %2856 = vmatmul.f32.gmra.mxu2 %v5452_v46 }
 0x2ec   : > { %2944 = vmatmul.f32.gmra.mxu3 %v2887_v42  ;;  %v3004_v42 = vadd.f32 %v5522_v29, %v2992_v13 }
 0x2ee   : > { %v2512_v47 = vpop.f32.mrf.mxu2 }
 0x2ef   : > { %v2513_v57 = vadd.f32 %v2512_v47, %v2462_v24  ;;  %v2589_v3 = vpop.f32.mrf.mxu3  ;;  %v2465_v56 = vpop.f32.mrf.mxu1 }
 0x2f0   : > { %v5498_v44 = vpop.f32.mrf.mxu0 }
 0x2f1   : > { %v5496_v32 = vadd.f32 %v2589_v3, %v2513_v57  ;;  %v6169_v57 = vld [vmem:[#allocation25_spill] sm:$0xff] }
 0x2f2   : > { %2771 = vmatmul.f32.gmra.mxu1 %v2712_v23  ;;  %2686 = vmatmul.f32.gmra.mxu0 %v5450_v45  ;;  %v5508_v45 = vld [vmem:[#allocation16 + $0xc] ss:$0 sm:$0xff]  ;;  %v2993_v3 = vmul.f32 %v5514_v35, %v6169_v57 }
 0x2f3   : > { %2859 = vmatmul.f32.gmra.mxu2 %v5459_v22  ;;  %v3016_v60 = vmul.f32 %v5508_v45, %v5480_v14  ;;  %v3017_v14 = vmul.f32 %v5508_v45, %v5486_v2  ;;  %v3018_v2 = vmul.f32 %v5508_v45, %v5492_v54 }
 0x2f4   : > { %2947 = vmatmul.f32.gmra.mxu3 %v2888_v0 }
 0x2f5   : > { %v3028_v8 = vadd.f32 %v5518_v61, %v3016_v60  ;;  %v6171_v60 = vld [vmem:[#allocation27_spill] sm:$0xff] }
 0x2f6   : > { %v2515_v53 = vpop.f32.mrf.mxu2  ;;  %v2995_v17 = vmul.f32 %v5514_v35, %v6171_v60 }
 0x2f7   : > { %v2516_v43 = vadd.f32 %v2515_v53, %v2465_v56  ;;  %v2592_v9 = vpop.f32.mrf.mxu3  ;;  %v2468_v4 = vpop.f32.mrf.mxu1  ;;  %v3039_v47 = vadd.f32 %v3028_v8, %v3004_v42 }
 0x2f8   : > { %v5504_v5 = vpop.f32.mrf.mxu0 }
 0x2f9   : > { %v5502_v46 = vadd.f32 %v2592_v9, %v2516_v43  ;;  %v3582_v53 = vmul.f32 -1.442695, %v3039_v47  ;;  %v3029_v43 = vadd.f32 %v5518_v61, %v3017_v14  ;;  %v3007_v14 = vadd.f32 %v5522_v29, %v2995_v17 }
 0x2fa   : > { %2774 = vmatmul.f32.gmra.mxu1 %v2713_v12  ;;  %2689 = vmatmul.f32.gmra.mxu0 %v5457_v63  ;;  %v3015_v63 = vmul.f32 %v5508_v45, %v5476_v7  ;;  %v3003_v7 = vadd.f32 %v5522_v29, %v2991_v48 }
 0x2fb   : > { %2862 = vmatmul.f32.gmra.mxu2 %v5464_v34  ;;  %v2890_v34 = vld [vmem:[#allocation2 + $0x5d] sm:$0xff] }
 0x2fc   : > { %2950 = vmatmul.f32.gmra.mxu3 %v2889_v25  ;;  %v3027_v55 = vadd.f32 %v5518_v61, %v3015_v63 }
 0x2fe   : > { %v2518_v16 = vpop.f32.mrf.mxu2  ;;  %v3038_v20 = vadd.f32 %v3027_v55, %v3003_v7  ;;  %v3019_v7 = vmul.f32 %v5508_v45, %v5498_v44 }
 0x2ff   : > { %v2519_v38 = vadd.f32 %v2518_v16, %v2468_v4  ;;  %v2595_v31 = vpop.f32.mrf.mxu3  ;;  %v2471_v22 = vpop.f32.mrf.mxu1  ;;  %v3005_v16 = vadd.f32 %v5522_v29, %v2993_v3  ;;  %v3020_v3 = vmul.f32 %v5508_v45, %v5504_v5  ;;  %v6173_v5 = vld [vmem:[#allocation29_spill] sm:$0xff] }
 0x300   : > { %v5512_v40 = vpop.f32.mrf.mxu0  ;;  %v3581_v49 = vmul.f32 -1.442695, %v3038_v20  ;;  %v3031_v8 = vadd.f32 %v5518_v61, %v3019_v7 }
 0x301   : > { %v5510_v1 = vadd.f32 %v2595_v31, %v2519_v38  ;;  %v6170_v38 = vld [vmem:[#allocation26_spill] sm:$0xff] }
 0x302   : > { %2777 = vmatmul.f32.gmra.mxu1 %v2714_v33  ;;  %3780 = vpow2.f32 %v3581_v49  ;;  %v2994_v31 = vmul.f32 %v5514_v35, %v6170_v38 }
 0x303   : > { %2865 = vmatmul.f32.gmra.mxu2 %v2802_v58  ;;  %3782 = vpow2.f32 %v3582_v53  ;;  %v3030_v58 = vadd.f32 %v5518_v61, %v3018_v2 }
 0x304   : > { %2953 = vmatmul.f32.gmra.mxu3 %v2890_v34  ;;  %v3006_v48 = vadd.f32 %v5522_v29, %v2994_v31 }
 0x306   : > { %v2521_v28 = vpop.f32.mrf.mxu2 }
 0x307   : > { %v2522_v51 = vadd.f32 %v2521_v28, %v2471_v22  ;;  %v2598_v19 = vpop.f32.mrf.mxu3  ;;  %v2474_v11 = vpop.f32.mrf.mxu1  ;;  %v3040_v22 = vadd.f32 %v3029_v43, %v3005_v16  ;;  %v3032_v16 = vadd.f32 %v5518_v61, %v3020_v3  ;;  %v5612_v3 = vld [vmem:[#allocation16 + $0xf] ss:$0 sm:$0xff] }
 0x308   : > { %v5527_v36 = vpop.f32.mrf.mxu0  ;;  %v3781_v25 = vpop.eup %3780 }
 0x309   : > { %v5525_v6 = vadd.f32 %v2598_v19, %v2522_v51  ;;  %v5554_v33 = vadd.f32 1.0, %v3781_v25  ;;  %v3583_v28 = vmul.f32 -1.442695, %v3040_v22  ;;  %v3783_v55 = vpop.eup %3782 }
 0x30a   : > { %v5565_v20 = vadd.f32 1.0, %v3783_v55 }
 0x30b   : > { %3784 = vrcp.f32 %v5554_v33  ;;  %vm3098_vm13 = vweird.f32 %v5554_v33 }
 0x30c   : > { %3786 = vpow2.f32 %v3583_v28  ;;  %vm3113_vm1 = vweird.f32 %v5565_v20 }
 0x30d   : > { %3788 = vrcp.f32 %v5565_v20 }
 0x30e   : > { %v2524_v27 = vpop.f32.mrf.mxu2 }
 0x30f   : > { %v2525_v41 = vadd.f32 %v2524_v27, %v2474_v11  ;;  %v2601_v52 = vpop.f32.mrf.mxu3  ;;  %v2477_v30 = vpop.f32.mrf.mxu1  ;;  %v3041_v11 = vadd.f32 %v3030_v58, %v3006_v48 }
 0x310   : > { %v5537_v50 = vpop.f32.mrf.mxu0 }
 0x311   : > { %v5535_v24 = vadd.f32 %v2601_v52, %v2525_v41  ;;  %v3584_v13 = vmul.f32 -1.442695, %v3041_v11  ;;  %v5569_v41 = vpop.eup %3784 }
 0x312   : > { %v3787_v44 = vpop.eup %3786  ;;  %v3094_v57 = vmul.f32 %v5569_v41, %v5554_v33  ;;  %vm3099_vm12 = vweird.f32 %v5569_v41 }
 0x313   : > { %3790 = vpow2.f32 %v3584_v13  ;;  %v5582_v53 = vadd.f32 1.0, %v3787_v44  ;;  %v5584_v25 = vpop.eup %3788  ;;  %v3021_v13 = vmul.f32 %v5508_v45, %v5512_v40  ;;  %vm5641_vm14 = vmor %vm3098_vm13, %vm3099_vm12 }
 0x314   : > { %v3109_v7 = vmul.f32 %v5584_v25, %v5565_v20  ;;  %vm3114_vm0 = vweird.f32 %v5584_v25 }
 0x315   : > { %3792 = vrcp.f32 %v5582_v53  ;;  %vm5691_vm3 = vmor %vm3113_vm1, %vm3114_vm0  ;;  %vm3128_vm5 = vweird.f32 %v5582_v53 }
 0x316   : > { %v2527_v56 = vpop.f32.mrf.mxu2 }
 0x317   : > { %v2528_v23 = vadd.f32 %v2527_v56, %v2477_v30  ;;  %v2604_v0 = vpop.f32.mrf.mxu3  ;;  %v2480_v9 = vpop.f32.mrf.mxu1  ;;  %v3042_v56 = vadd.f32 %v3031_v8, %v3007_v14  ;;  %v6177_v14 = vld [vmem:[#allocation34_spill] sm:$0xff] }
 0x318   : > { %v5547_v12 = vpop.f32.mrf.mxu0 }
 0x319   : > { %v5545_v4 = vadd.f32 %v2604_v0, %v2528_v23  ;;  %v6172_v23 = vld [vmem:[#allocation28_spill] sm:$0xff]  ;;  %v3791_v31 = vpop.eup %3790  ;;  %v3585_v22 = vmul.f32 -1.442695, %v3042_v56 }
 0x31a   : > { %v2996_v0 = vmul.f32 %v5514_v35, %v6172_v23  ;;  %v5600_v60 = vadd.f32 1.0, %v3791_v31 }
 0x31b   : > { %3794 = vpow2.f32 %v3585_v22  ;;  %v3102_v22 = vand.u32 2147483647, %v5554_v33 }
 0x31c   : > { %3796 = vrcp.f32 %v5600_v60  ;;  %vm3143_vm8 = vweird.f32 %v5600_v60 }
 0x31d   : > { %vm3103_vm15 = vcmp.eq.f32.partialorder %v3102_v22, 8.507059e+37 }
 0x31e   : > { %v2530_v34 = vpop.f32.mrf.mxu2 }
 0x31f   : > { %v2531_v63 = vadd.f32 %v2530_v34, %v2480_v9  ;;  %v2607_v15 = vpop.f32.mrf.mxu3  ;;  %v2483_v51 = vpop.f32.mrf.mxu1  ;;  %v3095_v9 = vsub.f32 1.0, %v3094_v57  ;;  %v3008_v34 = vadd.f32 %v5522_v29, %v2996_v0 }
 0x320   : > { %v5561_v54 = vpop.f32.mrf.mxu0  ;;  %v5619_v0 = vpop.eup %3792 }
 0x321   : > { %v5559_v19 = vadd.f32 %v2607_v15, %v2531_v63  ;;  %v2997_v63 = vmul.f32 %v5514_v35, %v6173_v5  ;;  %v5590_v15 = vld [vmem:[#allocation16 + $0xe] ss:$0 sm:$0xff]  ;;  %v3096_v11 = vmul.f32 %v5569_v41, %v3095_v9  ;;  %v3043_v17 = vadd.f32 %v3032_v16, %v3008_v34 }
 0x322   : > { %v3259_v57 = vmul.f32 %v5590_v15, %v6177_v14  ;;  %v3033_v9 = vadd.f32 %v5518_v61, %v3021_v13  ;;  %v3795_v13 = vpop.eup %3794  ;;  %vm3129_vm4 = vweird.f32 %v5619_v0 }
 0x323   : > { %v3009_v8 = vadd.f32 %v5522_v29, %v2997_v63  ;;  %v6178_v63 = vld [vmem:[#allocation33_spill] sm:$0xff]  ;;  %vm5728_vm7 = vmor %vm3128_vm5, %vm3129_vm4 }
 0x326   : > { %v2533_v27 = vpop.f32.mrf.mxu2 }
 0x327   : > { %v2534_v52 = vadd.f32 %v2533_v27, %v2483_v51  ;;  %v2610_v49 = vpop.f32.mrf.mxu3  ;;  %v2486_v30 = vpop.f32.mrf.mxu1  ;;  %v6174_v51 = vld [vmem:[#allocation30_spill] sm:$0xff] }
 0x328   : > { %v2660_v47 = vpop.f32.mrf.mxu0  ;;  %v2998_v55 = vmul.f32 %v5514_v35, %v6174_v51  ;;  %v5636_v51 = vmul.f32 %v5514_v35, %v6178_v63 }
 0x329   : > { %v5573_v42 = vadd.f32 %v2610_v49, %v2534_v52  ;;  %v2693_v27 = vadd.f32 %v2660_v47, %v5484_v18  ;;  %v6175_v52 = vld [vmem:[#allocation31_spill] sm:$0xff]  ;;  %v3097_v18 = vadd.f32 %v5569_v41, %v3096_v11  ;;  %v3110_v47 = vsub.f32 1.0, %v3109_v7 }
 0x32a   : > { %v2999_v49 = vmul.f32 %v5514_v35, %v6175_v52  ;;  %v5615_v23 = vadd.f32 %v5522_v29, %v2998_v55  ;;  %v3271_v55 = vadd.f32 %v5612_v3, %v3259_v57 }
 0x32c   : > { %v5626_v31 = vadd.f32 %v5522_v29, %v2999_v49  ;;  %v3111_v49 = vmul.f32 %v5584_v25, %v3110_v47 }
 0x32e   : > { %v2536_v43 = vpop.f32.mrf.mxu2 }
 0x32f   : > { %v2537_v2 = vadd.f32 %v2536_v43, %v2486_v30  ;;  %v2613_v38 = vpop.f32.mrf.mxu3  ;;  %v2748_v58 = vpop.f32.mrf.mxu1  ;;  %v6176_v30 = vld [vmem:[#allocation32_spill] sm:$0xff]  ;;  %v3586_v43 = vmul.f32 -1.442695, %v3043_v17 }
 0x330   : > { %v2663_v28 = vpop.f32.mrf.mxu0  ;;  %v3000_v44 = vmul.f32 %v5514_v35, %v6176_v30  ;;  %v2781_v56 = vadd.f32 %v2748_v58, %v2693_v27  ;;  %v3104_v58 = vand.u32 2147483648, %v5554_v33  ;;  %v5645_v17 = vld [vmem:[#allocation16 + $0x11] ss:$0 sm:$0xff]  ;;  %v6181_v27 = vld [vmem:[#allocation35_spill] sm:$0xff]  ;;  %v3101_v35 = vsel %vm5641_vm14, %v5569_v41, %v3097_v18 }
 0x331   : > { %v5593_v48 = vadd.f32 %v2613_v38, %v2537_v2  ;;  %v5623_v38 = vld [vmem:[#allocation16 + $0x10] ss:$0 sm:$0xff]  ;;  %v3260_v52 = vmul.f32 %v5590_v15, %v6181_v27  ;;  %v3124_v30 = vmul.f32 %v5619_v0, %v5582_v53  ;;  %3798 = vpow2.f32 %v3586_v43 }
 0x332   : > { %v5632_v5 = vadd.f32 %v5522_v29, %v3000_v44  ;;  %v3044_v44 = vadd.f32 %v3033_v9, %v3009_v8  ;;  %v2694_v57 = vadd.f32 %v2663_v28, %v5490_v10  ;;  %v5661_v41 = vadd.f32 1.0, %v3795_v13  ;;  %v5666_v8 = vld [vmem:[#allocation16 + $0x12] ss:$0 sm:$0xff] }
 0x333   : > { %v3022_v18 = vmul.f32 %v5508_v45, %v5527_v36  ;;  %v3112_v28 = vadd.f32 %v5584_v25, %v3111_v49  ;;  %v3125_v22 = vsub.f32 1.0, %v3124_v30  ;;  %v6182_v36 = vld [vmem:[#allocation36_spill] sm:$0xff] }
 0x334   : > { %v3587_v63 = vmul.f32 -1.442695, %v3044_v44  ;;  %v5675_v27 = vmul.f32 %v5590_v15, %v6182_v36  ;;  %3800 = vrcp.f32 %v5661_v41  ;;  %vm3158_vm13 = vweird.f32 %v5661_v41 }
 0x335   : > { %v3034_v30 = vadd.f32 %v5518_v61, %v3022_v18  ;;  %v3116_v18 = vsel %vm5691_vm3, %v5584_v25, %v3112_v28 }
 0x336   : > { %v2836_v40 = vpop.f32.mrf.mxu2  ;;  %3802 = vpow2.f32 %v3587_v63 }
 0x337   : > { %v2869_v16 = vadd.f32 %v2836_v40, %v2781_v56  ;;  %v2924_v2 = vpop.f32.mrf.mxu3  ;;  %v2751_v34 = vpop.f32.mrf.mxu1  ;;  %v3105_v56 = vor.u32 1.1754944e-38, %v3104_v58  ;;  %v3117_v40 = vand.u32 2147483647, %v5565_v20  ;;  %v5671_v58 = vadd.f32 %v5612_v3, %v3260_v52 }
 0x338   : > { %v2666_v33 = vpop.f32.mrf.mxu0  ;;  %v2782_v43 = vadd.f32 %v2751_v34, %v2694_v57 }
 0x339   : > { %v2957_v11 = vadd.f32 %v2924_v2, %v2869_v16  ;;  %v3119_v16 = vand.u32 2147483648, %v5565_v20  ;;  %v5659_v2 = vpop.eup %3796  ;;  %v3106_v9 = vsel %vm3103_vm15, %v3105_v56, %v3101_v35  ;;  %vm5678_vm2 = vcmp.eq.f32.partialorder %v3117_v40, 8.507059e+37 }
 0x33a   : > { %v3139_v49 = vmul.f32 %v5659_v2, %v5600_v60  ;;  %v3799_v52 = vpop.eup %3798  ;;  %v3023_v40 = vmul.f32 %v5508_v45, %v5537_v50  ;;  %v3134_v50 = vand.u32 2147483648, %v5582_v53  ;;  %v3045_v20 = vadd.f32 %v3034_v30, %v5615_v23 }
 0x33b   : > { %v3283_v14 = vmul.f32 %v5623_v38, %v2957_v11  ;;  %v5716_v63 = vpop.eup %3800  ;;  %vm3144_vm9 = vweird.f32 %v5659_v2 }
 0x33c   : > { %v3140_v36 = vsub.f32 1.0, %v3139_v49  ;;  %v3135_v34 = vor.u32 1.1754944e-38, %v3134_v50  ;;  %vm5766_vm10 = vmor %vm3143_vm8, %vm3144_vm9  ;;  %vm3159_vm12 = vweird.f32 %v5716_v63 }
 0x33d   : > { %v3295_v47 = vadd.f32 %v5645_v17, %v3283_v14  ;;  %v5687_v14 = vld [vmem:[#allocation16 + $0x13] ss:$0 sm:$0xff]  ;;  %vm5814_vm14 = vmor %vm3158_vm13, %vm3159_vm12 }
 0x33e   : > { %v2839_v10 = vpop.f32.mrf.mxu2 }
 0x33f   : > { %v3306_v11 = vmul.f32 %v3295_v47, %v3106_v9  ;;  %v2870_v7 = vadd.f32 %v2839_v10, %v2782_v43  ;;  %v2927_v13 = vpop.f32.mrf.mxu3  ;;  %v2754_v35 = vpop.f32.mrf.mxu1  ;;  %v3120_v47 = vor.u32 1.1754944e-38, %v3119_v16  ;;  %v3126_v43 = vmul.f32 %v5619_v0, %v3125_v22 }
 0x340   : > { %v2669_v56 = vpop.f32.mrf.mxu0 }
 0x341   : > { %v3318_v44 = vmul.f32 %v5666_v8, %v3306_v11  ;;  %v2958_v57 = vadd.f32 %v2927_v13, %v2870_v7  ;;  %v2695_v11 = vadd.f32 %v2666_v33, %v5496_v32  ;;  %v5703_v7 = vadd.f32 1.0, %v3799_v52 }
 0x342   : > { %v3132_v13 = vand.u32 2147483647, %v5582_v53  ;;  %v3121_v32 = vsel %vm5678_vm2, %v3120_v47, %v3116_v18  ;;  %v3127_v22 = vadd.f32 %v5619_v0, %v3126_v43  ;;  %v3588_v18 = vmul.f32 -1.442695, %v3045_v20  ;;  %v3841_v47 = vld [vmem:[#allocation8] sm:$0xff] }
 0x343   : > { %v3329_v9 = vadd.f32 %v3318_v44, %v3271_v55  ;;  %v3284_v10 = vmul.f32 %v5623_v38, %v2958_v57  ;;  %v2783_v28 = vadd.f32 %v2754_v35, %v2695_v11  ;;  %v3035_v55 = vadd.f32 %v5518_v61, %v3023_v40  ;;  %v3803_v40 = vpop.eup %3802 }
 0x344   : > { %3804 = vrcp.f32 %v5703_v7  ;;  %vm5720_vm6 = vcmp.eq.f32.partialorder %v3132_v13, 8.507059e+37  ;;  %v3141_v57 = vmul.f32 %v5659_v2, %v3140_v36  ;;  %v3131_v50 = vsel %vm5728_vm7, %v5619_v0, %v3127_v22 }
 0x345   : > { %v3341_v25 = vadd.f32 %v5687_v14, %v3329_v9  ;;  %v3296_v16 = vadd.f32 %v5645_v17, %v3284_v10  ;;  %v3046_v13 = vadd.f32 %v3035_v55, %v5626_v31  ;;  %v3154_v36 = vmul.f32 %v5716_v63, %v5661_v41 }
 0x346   : > { %v2842_v33 = vpop.f32.mrf.mxu2  ;;  %v3024_v20 = vmul.f32 %v5508_v45, %v5547_v12  ;;  %v5744_v31 = vadd.f32 1.0, %v3803_v40  ;;  %v3142_v55 = vadd.f32 %v5659_v2, %v3141_v57  ;;  %v3147_v0 = vand.u32 2147483647, %v5600_v60 }
 0x347   : > { %v3352_v49 = vmax.f32 %v3341_v25, 0.0  ;;  %v3307_v23 = vmul.f32 %v3296_v16, %v3121_v32  ;;  %v2871_v52 = vadd.f32 %v2842_v33, %v2783_v28  ;;  %v2930_v30 = vpop.f32.mrf.mxu3  ;;  %v2757_v44 = vpop.f32.mrf.mxu1  ;;  %v2696_v28 = vadd.f32 %v2669_v56, %v5502_v46 }
 0x348   : > { %v2672_v11 = vpop.f32.mrf.mxu0  ;;  %3806 = vpow2.f32 %v3588_v18  ;;  %v3589_v56 = vmul.f32 -1.442695, %v3046_v13  ;;  %v3136_v33 = vsel %vm5720_vm6, %v3135_v34, %v3131_v50  ;;  %v3273_v35 = vadd.f32 %v5612_v3, %v5675_v27  ;;  %v6193_v34 = vld [vmem:[#allocation37_spill] sm:$0xff] }
 0x349   : > { %v3363_v43 = vmul.f32 %v3841_v47, %v3352_v49  ;;  %v3319_v9 = vmul.f32 %v5666_v8, %v3307_v23  ;;  %v2959_v10 = vadd.f32 %v2930_v30, %v2871_v52  ;;  %v2784_v32 = vadd.f32 %v2757_v44, %v2696_v28 }
 0x34a   : > { %v5756_v46 = vpop.eup %3804  ;;  %v3149_v49 = vand.u32 2147483648, %v5600_v60  ;;  %v3155_v23 = vsub.f32 1.0, %v3154_v36  ;;  %v3036_v52 = vadd.f32 %v5518_v61, %v3024_v20  ;;  %v3262_v47 = vmul.f32 %v5590_v15, %v6193_v34  ;;  %v3842_v60 = vld [vmem:[#allocation8 + $0x8] sm:$0xff] }
 0x34b   : > { %3374 = vst [vmem:[#allocation2 + $0x8] sm:$0xff] %v3363_v43  ;;  %v3330_v25 = vadd.f32 %v3319_v9, %v5671_v58  ;;  %v3285_v16 = vmul.f32 %v5623_v38, %v2959_v10  ;;  %vm5777_vm11 = vcmp.eq.f32.partialorder %v3147_v0, 8.507059e+37  ;;  %3808 = vrcp.f32 %v5744_v31 }
 0x34c   : > { %3396 = vst [vmem:[%s5751_s15] sm:$0xff] %v3363_v43  ;;  %v3146_v43 = vsel %vm5766_vm10, %v5659_v2, %v3142_v55  ;;  %3810 = vpow2.f32 %v3589_v56  ;;  %v3150_v36 = vor.u32 1.1754944e-38, %v3149_v49  ;;  %v3156_v20 = vmul.f32 %v5716_v63, %v3155_v23 }
 0x34d   : > { %v3342_v12 = vadd.f32 %v5687_v14, %v3330_v25  ;;  %v3297_v58 = vadd.f32 %v5645_v17, %v3285_v16  ;;  %v3169_v2 = vmul.f32 %v5756_v46, %v5703_v7  ;;  %v3047_v16 = vadd.f32 %v3036_v52, %v5632_v5 }
 0x34e   : > { %v2845_v22 = vpop.f32.mrf.mxu2  ;;  %v3807_v25 = vpop.eup %3806  ;;  %v2697_v0 = vadd.f32 %v2672_v11, %v5510_v1  ;;  %v3025_v56 = vmul.f32 %v5508_v45, %v5561_v54  ;;  %v3157_v11 = vadd.f32 %v5716_v63, %v3156_v20  ;;  %v3162_v44 = vand.u32 2147483647, %v5661_v41 }
 0x34f   : > { %v3353_v30 = vmax.f32 %v3342_v12, 0.0  ;;  %v3308_v57 = vmul.f32 %v3297_v58, %v3136_v33  ;;  %v2872_v40 = vadd.f32 %v2845_v22, %v2784_v32  ;;  %v2933_v18 = vpop.f32.mrf.mxu3  ;;  %v2760_v10 = vpop.f32.mrf.mxu1  ;;  %v3013_v12 = vadd.f32 %v5522_v29, %v5636_v51 }
 0x350   : > { %v2675_v50 = vpop.f32.mrf.mxu0  ;;  %v3274_v58 = vadd.f32 %v5612_v3, %v3262_v47  ;;  %v3151_v32 = vsel %vm5777_vm11, %v3150_v36, %v3146_v43  ;;  %v2785_v22 = vadd.f32 %v2760_v10, %v2697_v0  ;;  %v5799_v49 = vadd.f32 1.0, %v3807_v25  ;;  %v3843_v43 = vld [vmem:[#allocation8 + $0x10] sm:$0xff] }
 0x351   : > { %v3364_v53 = vmul.f32 %v3842_v60, %v3353_v30  ;;  %v3320_v13 = vmul.f32 %v5666_v8, %v3308_v57  ;;  %v2960_v27 = vadd.f32 %v2933_v18, %v2872_v40  ;;  %v3170_v29 = vsub.f32 1.0, %v3169_v2  ;;  %v5803_v51 = vpop.eup %3808  ;;  %v6196_v40 = vld [vmem:[#allocation38_spill] sm:$0xff] }
 0x352   : > { %v3590_v23 = vmul.f32 -1.442695, %v3047_v16  ;;  %v3811_v54 = vpop.eup %3810  ;;  %v3263_v18 = vmul.f32 %v5590_v15, %v6196_v40  ;;  %v3037_v47 = vadd.f32 %v5518_v61, %v3025_v56  ;;  %3812 = vrcp.f32 %v5799_v49 }
 0x353   : > { %3375 = vst [vmem:[#allocation2 + $0x10] sm:$0xff] %v3364_v53  ;;  %v3331_v28 = vadd.f32 %v3320_v13, %v3273_v35  ;;  %v3286_v55 = vmul.f32 %v5623_v38, %v2960_v27  ;;  %v3164_v35 = vand.u32 2147483648, %v5661_v41  ;;  %v3161_v41 = vsel %vm5814_vm14, %v5716_v63, %v3157_v11 }
 0x354   : > { %3397 = vst [vmem:[%s5751_s15 + $0x8] sm:$0xff] %v3364_v53  ;;  %v3171_v61 = vmul.f32 %v5756_v46, %v3170_v29  ;;  %v3184_v27 = vmul.f32 %v5803_v51, %v5744_v31  ;;  %3814 = vpow2.f32 %v3590_v23  ;;  %v2698_v2 = vadd.f32 %v2675_v50, %v5525_v6 }
 0x355   : > { %v3343_v5 = vadd.f32 %v5687_v14, %v3331_v28  ;;  %v3298_v33 = vadd.f32 %v5645_v17, %v3286_v55  ;;  %v5827_v25 = vadd.f32 1.0, %v3811_v54  ;;  %vm3163_vm15 = vcmp.eq.f32.partialorder %v3162_v44, 8.507059e+37 }
 0x356   : > { %v2848_v1 = vpop.f32.mrf.mxu2  ;;  %v3165_v16 = vor.u32 1.1754944e-38, %v3164_v35  ;;  %v3048_v28 = vadd.f32 %v3037_v47, %v3013_v12  ;;  %vm3174_vm0 = vweird.f32 %v5756_v46  ;;  %v3275_v6 = vadd.f32 %v5612_v3, %v3263_v18 }
 0x357   : > { %v3354_v52 = vmax.f32 %v3343_v5, 0.0  ;;  %v3309_v30 = vmul.f32 %v3298_v33, %v3151_v32  ;;  %v2873_v57 = vadd.f32 %v2848_v1, %v2785_v22  ;;  %v2936_v45 = vpop.f32.mrf.mxu3  ;;  %v2763_v34 = vpop.f32.mrf.mxu1  ;;  %v3172_v5 = vadd.f32 %v5756_v46, %v3171_v61 }
 0x358   : > { %v2678_v13 = vpop.f32.mrf.mxu0  ;;  %v2786_v0 = vadd.f32 %v2763_v34, %v2698_v2  ;;  %v3166_v32 = vsel %vm3163_vm15, %v3165_v16, %v3161_v41  ;;  %v5835_v11 = vpop.eup %3812  ;;  %3816 = vrcp.f32 %v5827_v25  ;;  %vm3173_vm1 = vweird.f32 %v5703_v7 }
 0x359   : > { %v3365_v9 = vmul.f32 %v3843_v43, %v3354_v52  ;;  %v3321_v10 = vmul.f32 %v5666_v8, %v3309_v30  ;;  %v2961_v60 = vadd.f32 %v2936_v45, %v2873_v57  ;;  %v3177_v12 = vand.u32 2147483647, %v5703_v7  ;;  %v3844_v57 = vld [vmem:[#allocation8 + $0x18] sm:$0xff]  ;;  %vm5844_vm2 = vmor %vm3173_vm1, %vm3174_vm0 }
 0x35a   : > { %v3179_v29 = vand.u32 2147483648, %v5703_v7  ;;  %v3815_v52 = vpop.eup %3814  ;;  %v3591_v30 = vmul.f32 -1.442695, %v3048_v28  ;;  %v3176_v44 = vsel %vm5844_vm2, %v5756_v46, %v3172_v5  ;;  %v2699_v43 = vadd.f32 %v2678_v13, %v5535_v24 }
 0x35b   : > { %3376 = vst [vmem:[#allocation2 + $0x18] sm:$0xff] %v3365_v9  ;;  %v3332_v36 = vadd.f32 %v3321_v10, %v3274_v58  ;;  %v3287_v20 = vmul.f32 %v5623_v38, %v2961_v60  ;;  %v3185_v58 = vsub.f32 1.0, %v3184_v27  ;;  %v3264_v10 = vmul.f32 %v5590_v15, %v6138_v26 }
 0x35c   : > { %3398 = vst [vmem:[%s5751_s15 + $0x10] sm:$0xff] %v3365_v9  ;;  %v3199_v9 = vmul.f32 %v5835_v11, %v5799_v49  ;;  %v5858_v60 = vadd.f32 1.0, %v3815_v52  ;;  %vm3178_vm3 = vcmp.eq.f32.partialorder %v3177_v12, 8.507059e+37  ;;  %v3180_v53 = vor.u32 1.1754944e-38, %v3179_v29 }
 0x35d   : > { %v3344_v63 = vadd.f32 %v5687_v14, %v3332_v36  ;;  %v3299_v55 = vadd.f32 %v5645_v17, %v3287_v20  ;;  %v3186_v7 = vmul.f32 %v5803_v51, %v3185_v58  ;;  %3818 = vpow2.f32 %v3591_v30 }
 0x35e   : > { %v2851_v56 = vpop.f32.mrf.mxu2  ;;  %v5863_v27 = vpop.eup %3816  ;;  %v3181_v24 = vsel %vm3178_vm3, %v3180_v53, %v3176_v44  ;;  %vm3189_vm4 = vweird.f32 %v5803_v51  ;;  %v3200_v28 = vsub.f32 1.0, %v3199_v9  ;;  %vm3188_vm5 = vweird.f32 %v5744_v31 }
 0x35f   : > { %v3355_v50 = vmax.f32 %v3344_v63, 0.0  ;;  %v3310_v33 = vmul.f32 %v3299_v55, %v3166_v32  ;;  %v2874_v22 = vadd.f32 %v2851_v56, %v2786_v0  ;;  %v2939_v1 = vpop.f32.mrf.mxu3  ;;  %v2766_v23 = vpop.f32.mrf.mxu1  ;;  %v3187_v36 = vadd.f32 %v5803_v51, %v3186_v7  ;;  %v3845_v56 = vld [vmem:[#allocation8 + $0x20] sm:$0xff]  ;;  %vm5875_vm6 = vmor %vm3188_vm5, %vm3189_vm4 }
 0x360   : > { %v2681_v35 = vpop.f32.mrf.mxu0  ;;  %v2787_v61 = vadd.f32 %v2766_v23, %v2699_v43  ;;  %v3276_v63 = vadd.f32 %v5612_v3, %v3264_v10  ;;  %v3192_v55 = vand.u32 2147483647, %v5744_v31  ;;  %v3194_v0 = vand.u32 2147483648, %v5744_v31 }
 0x361   : > { %v3366_v45 = vmul.f32 %v3844_v57, %v3355_v50  ;;  %v3322_v54 = vmul.f32 %v5666_v8, %v3310_v33  ;;  %v2962_v40 = vadd.f32 %v2939_v1, %v2874_v22  ;;  %3820 = vrcp.f32 %v5858_v60 }
 0x362   : > { %v3191_v33 = vsel %vm5875_vm6, %v5803_v51, %v3187_v36  ;;  %v3214_v31 = vmul.f32 %v5863_v27, %v5827_v25  ;;  %v2700_v29 = vadd.f32 %v2681_v35, %v5545_v4  ;;  %v3201_v23 = vmul.f32 %v5835_v11, %v3200_v28 }
 0x363   : > { %3377 = vst [vmem:[#allocation2 + $0x20] sm:$0xff] %v3366_v45  ;;  %v3333_v34 = vadd.f32 %v3322_v54, %v3275_v6  ;;  %v3288_v47 = vmul.f32 %v5623_v38, %v2962_v40  ;;  %v3819_v22 = vpop.eup %3818  ;;  %v3265_v52 = vmul.f32 %v5590_v15, %v6145_v39  ;;  %v3195_v30 = vor.u32 1.1754944e-38, %v3194_v0 }
 0x364   : > { %3399 = vst [vmem:[%s5751_s15 + $0x18] sm:$0xff] %v3366_v45  ;;  %vm3193_vm7 = vcmp.eq.f32.partialorder %v3192_v55, 8.507059e+37  ;;  %v5892_v40 = vadd.f32 1.0, %v3819_v22  ;;  %vm3204_vm8 = vweird.f32 %v5835_v11  ;;  %v3215_v4 = vsub.f32 1.0, %v3214_v31 }
 0x365   : > { %v3345_v46 = vadd.f32 %v5687_v14, %v3333_v34  ;;  %v3300_v41 = vadd.f32 %v5645_v17, %v3288_v47  ;;  %v3196_v18 = vsel %vm3193_vm7, %v3195_v30, %v3191_v33  ;;  %v3202_v43 = vadd.f32 %v5835_v11, %v3201_v23  ;;  %v3847_v23 = vld [vmem:[#allocation8 + $0x30] sm:$0xff] }
 0x366   : > { %v2854_v13 = vpop.f32.mrf.mxu2  ;;  %v3277_v9 = vadd.f32 %v5612_v3, %v3265_v52  ;;  %vm3203_vm9 = vweird.f32 %v5799_v49  ;;  %v3209_v10 = vand.u32 2147483648, %v5799_v49  ;;  %3822 = vrcp.f32 %v5892_v40 }
 0x367   : > { %v3356_v26 = vmax.f32 %v3345_v46, 0.0  ;;  %v3311_v20 = vmul.f32 %v3300_v41, %v3181_v24  ;;  %v2875_v2 = vadd.f32 %v2854_v13, %v2787_v61  ;;  %v2942_v16 = vpop.f32.mrf.mxu3  ;;  %v2769_v32 = vpop.f32.mrf.mxu1  ;;  %v3846_v46 = vld [vmem:[#allocation8 + $0x28] sm:$0xff]  ;;  %v3207_v13 = vand.u32 2147483647, %v5799_v49  ;;  %vm5906_vm10 = vmor %vm3203_vm9, %vm3204_vm8 }
 0x368   : > { %v2684_v57 = vpop.f32.mrf.mxu0  ;;  %v2788_v54 = vadd.f32 %v2769_v32, %v2700_v29  ;;  %v5895_v7 = vpop.eup %3820  ;;  %v3210_v55 = vor.u32 1.1754944e-38, %v3209_v10  ;;  %vm3219_vm12 = vweird.f32 %v5863_v27  ;;  %vm3218_vm13 = vweird.f32 %v5827_v25 }
 0x369   : > { %v3367_v5 = vmul.f32 %v3845_v56, %v3356_v26  ;;  %v3323_v58 = vmul.f32 %v5666_v8, %v3311_v20  ;;  %v2963_v6 = vadd.f32 %v2942_v16, %v2875_v2  ;;  %v3216_v26 = vmul.f32 %v5863_v27, %v3215_v4  ;;  %vm5933_vm14 = vmor %vm3218_vm13, %vm3219_vm12 }
 0x36a   : > { %v3229_v20 = vmul.f32 %v5895_v7, %v5858_v60  ;;  %v3206_v16 = vsel %vm5906_vm10, %v5835_v11, %v3202_v43  ;;  %v2701_v28 = vadd.f32 %v2684_v57, %v5559_v19  ;;  %vm3208_vm11 = vcmp.eq.f32.partialorder %v3207_v13, 8.507059e+37 }
 0x36b   : > { %3378 = vst [vmem:[#allocation2 + $0x28] sm:$0xff] %v3367_v5  ;;  %v3334_v1 = vadd.f32 %v3323_v58, %v3276_v63  ;;  %v3289_v12 = vmul.f32 %v5623_v38, %v2963_v6  ;;  %v3266_v63 = vmul.f32 %v5590_v15, %v6151_v37  ;;  %v3217_v6 = vadd.f32 %v5863_v27, %v3216_v26  ;;  %v3848_v26 = vld [vmem:[#allocation8 + $0x38] sm:$0xff] }
 0x36c   : > { %3400 = vst [vmem:[%s5751_s15 + $0x20] sm:$0xff] %v3367_v5  ;;  %v3211_v5 = vsel %vm3208_vm11, %v3210_v55, %v3206_v16  ;;  %v3230_v50 = vsub.f32 1.0, %v3229_v20  ;;  %v5925_v22 = vpop.eup %3822  ;;  %vm3234_vm0 = vweird.f32 %v5895_v7  ;;  %vm3233_vm1 = vweird.f32 %v5858_v60 }
 0x36d   : > { %v3346_v51 = vadd.f32 %v5687_v14, %v3334_v1  ;;  %v3301_v45 = vadd.f32 %v5645_v17, %v3289_v12  ;;  %v3278_v1 = vadd.f32 %v5612_v3, %v3266_v63  ;;  %v3224_v12 = vand.u32 2147483648, %v5827_v25  ;;  %vm5957_vm2 = vmor %vm3233_vm1, %vm3234_vm0 }
 0x36e   : > { %v2857_v44 = vpop.f32.mrf.mxu2  ;;  %v3239_v13 = vand.u32 2147483648, %v5858_v60  ;;  %vm3249_vm4 = vweird.f32 %v5925_v22  ;;  %vm3248_vm5 = vweird.f32 %v5892_v40 }
 0x36f   : > { %v3357_v35 = vmax.f32 %v3346_v51, 0.0  ;;  %v3312_v39 = vmul.f32 %v3301_v45, %v3196_v18  ;;  %v2876_v34 = vadd.f32 %v2857_v44, %v2788_v54  ;;  %v2945_v47 = vpop.f32.mrf.mxu3  ;;  %v2772_v53 = vpop.f32.mrf.mxu1  ;;  %v3222_v45 = vand.u32 2147483647, %v5827_v25  ;;  %vm3250_vm6 = vmor %vm3248_vm5, %vm3249_vm4 }
 0x370   : > { %v2789_v56 = vadd.f32 %v2772_v53, %v2701_v28  ;;  %v2687_v11 = vpop.f32.mrf.mxu0  ;;  %v3221_v54 = vsel %vm5933_vm14, %v5863_v27, %v3217_v6  ;;  %v3231_v18 = vmul.f32 %v5895_v7, %v3230_v50  ;;  %v3237_v28 = vand.u32 2147483647, %v5858_v60 }
 0x371   : > { %v3368_v41 = vmul.f32 %v3846_v46, %v3357_v35  ;;  %v3324_v61 = vmul.f32 %v5666_v8, %v3312_v39  ;;  %v2964_v24 = vadd.f32 %v2945_v47, %v2876_v34  ;;  %v2702_v35 = vadd.f32 %v2687_v11, %v5573_v42 }
 0x372   : > { %v3244_v39 = vmul.f32 %v5925_v22, %v5892_v40  ;;  %v3267_v34 = vmul.f32 %v5590_v15, %v6157_v62  ;;  %v3225_v47 = vor.u32 1.1754944e-38, %v3224_v12  ;;  %vm3223_vm15 = vcmp.eq.f32.partialorder %v3222_v45, 8.507059e+37 }
 0x373   : > { %3379 = vst [vmem:[#allocation2 + $0x30] sm:$0xff] %v3368_v41  ;;  %v3335_v2 = vadd.f32 %v3324_v61, %v3277_v9  ;;  %v3290_v49 = vmul.f32 %v5623_v38, %v2964_v24  ;;  %v3232_v53 = vadd.f32 %v5895_v7, %v3231_v18  ;;  %v3240_v6 = vor.u32 1.1754944e-38, %v3239_v13 }
 0x374   : > { %3401 = vst [vmem:[%s5751_s15 + $0x28] sm:$0xff] %v3368_v41  ;;  %v3226_v9 = vsel %vm3223_vm15, %v3225_v47, %v3221_v54  ;;  %v3245_v24 = vsub.f32 1.0, %v3244_v39  ;;  %v3279_v62 = vadd.f32 %v5612_v3, %v3267_v34  ;;  %vm3238_vm3 = vcmp.eq.f32.partialorder %v3237_v28, 8.507059e+37  ;;  %v3850_v47 = vld [vmem:[#allocation8 + $0x48] sm:$0xff] }
 0x375   : > { %v3347_v0 = vadd.f32 %v5687_v14, %v3335_v2  ;;  %v3302_v32 = vadd.f32 %v5645_v17, %v3290_v49  ;;  %v3236_v63 = vsel %vm5957_vm2, %v5895_v7, %v3232_v53  ;;  %v3254_v12 = vand.u32 2147483648, %v5892_v40 }
 0x376   : > { %v2860_v58 = vpop.f32.mrf.mxu2  ;;  %v3241_v50 = vsel %vm3238_vm3, %v3240_v6, %v3236_v63 }
 0x377   : > { %v3358_v19 = vmax.f32 %v3347_v0, 0.0  ;;  %v3313_v33 = vmul.f32 %v3302_v32, %v3211_v5  ;;  %v2877_v31 = vadd.f32 %v2860_v58, %v2789_v56  ;;  %v2948_v37 = vpop.f32.mrf.mxu3  ;;  %v2775_v29 = vpop.f32.mrf.mxu1  ;;  %v3246_v5 = vmul.f32 %v5925_v22, %v3245_v24 }
 0x378   : > { %v2790_v43 = vadd.f32 %v2775_v29, %v2702_v35  ;;  %v2690_v36 = vpop.f32.mrf.mxu0  ;;  %v3268_v58 = vmul.f32 %v5590_v15, %v6163_v59  ;;  %v3849_v29 = vld [vmem:[#allocation8 + $0x40] sm:$0xff]  ;;  %v3255_v18 = vor.u32 1.1754944e-38, %v3254_v12 }
 0x379   : > { %v3369_v52 = vmul.f32 %v3847_v23, %v3358_v19  ;;  %v3325_v30 = vmul.f32 %v5666_v8, %v3313_v33  ;;  %v2965_v57 = vadd.f32 %v2948_v37, %v2877_v31  ;;  %v2703_v56 = vadd.f32 %v2690_v36, %v5593_v48 }
 0x37a   : > { %v3247_v37 = vadd.f32 %v5925_v22, %v3246_v5  ;;  %v3280_v59 = vadd.f32 %v5612_v3, %v3268_v58 }
 0x37b   : > { %3380 = vst [vmem:[#allocation2 + $0x38] sm:$0xff] %v3369_v52  ;;  %v3336_v44 = vadd.f32 %v3325_v30, %v3278_v1  ;;  %v3291_v4 = vmul.f32 %v5623_v38, %v2965_v57  ;;  %v3252_v57 = vand.u32 2147483647, %v5892_v40 }
 0x37c   : > { %3402 = vst [vmem:[%s5751_s15 + $0x30] sm:$0xff] %v3369_v52  ;;  %v3251_v45 = vsel %vm3250_vm6, %v5925_v22, %v3247_v37 }
 0x37d   : > { %v3348_v25 = vadd.f32 %v5687_v14, %v3336_v44  ;;  %v3303_v27 = vadd.f32 %v5645_v17, %v3291_v4  ;;  %v3269_v44 = vmul.f32 %v5590_v15, %v6166_v21  ;;  %vm3253_vm7 = vcmp.eq.f32.partialorder %v3252_v57, 8.507059e+37 }
 0x37e   : > { %v2863_v10 = vpop.f32.mrf.mxu2  ;;  %v3256_v40 = vsel %vm3253_vm7, %v3255_v18, %v3251_v45 }
 0x37f   : > { %v3359_v42 = vmax.f32 %v3348_v25, 0.0  ;;  %v3314_v46 = vmul.f32 %v3303_v27, %v3226_v9  ;;  %v2878_v41 = vadd.f32 %v2863_v10, %v2790_v43  ;;  %v2951_v61 = vpop.f32.mrf.mxu3  ;;  %v2778_v55 = vpop.f32.mrf.mxu1  ;;  %v3281_v22 = vadd.f32 %v5612_v3, %v3269_v44  ;;  %v3851_v3 = vld [vmem:[#allocation8 + $0x50] sm:$0xff] }
 0x380   : > { %v2791_v7 = vadd.f32 %v2778_v55, %v2703_v56 }
 0x381   : > { %v3370_v20 = vmul.f32 %v3848_v26, %v3359_v42  ;;  %v3326_v2 = vmul.f32 %v5666_v8, %v3314_v46  ;;  %v2966_v16 = vadd.f32 %v2951_v61, %v2878_v41 }
 0x383   : > { %3381 = vst [vmem:[#allocation2 + $0x40] sm:$0xff] %v3370_v20  ;;  %v3337_v0 = vadd.f32 %v3326_v2, %v3279_v62  ;;  %v3292_v32 = vmul.f32 %v5623_v38, %v2966_v16 }
 0x384   : > { %3403 = vst [vmem:[%s5751_s15 + $0x38] sm:$0xff] %v3370_v20 }
 0x385   : > { %v3349_v60 = vadd.f32 %v5687_v14, %v3337_v0  ;;  %v3304_v11 = vadd.f32 %v5645_v17, %v3292_v32 }
 0x386   : > { %v2866_v19 = vpop.f32.mrf.mxu2 }
 0x387   : > { %v3360_v33 = vmax.f32 %v3349_v60, 0.0  ;;  %v3315_v31 = vmul.f32 %v3304_v11, %v3241_v50  ;;  %v2879_v48 = vadd.f32 %v2866_v19, %v2791_v7  ;;  %v2954_v1 = vpop.f32.mrf.mxu3 }
 0x389   : > { %v3371_v23 = vmul.f32 %v3849_v29, %v3360_v33  ;;  %v3327_v52 = vmul.f32 %v5666_v8, %v3315_v31  ;;  %v2967_v30 = vadd.f32 %v2954_v1, %v2879_v48 }
 0x38b   : > { %3382 = vst [vmem:[#allocation2 + $0x48] sm:$0xff] %v3371_v23  ;;  %v3338_v51 = vadd.f32 %v3327_v52, %v3280_v59  ;;  %v3293_v54 = vmul.f32 %v5623_v38, %v2967_v30 }
 0x38c   : > { %3404 = vst [vmem:[%s5751_s15 + $0x40] sm:$0xff] %v3371_v23 }
 0x38d   : > { %v3350_v4 = vadd.f32 %v5687_v14, %v3338_v51  ;;  %v3305_v35 = vadd.f32 %v5645_v17, %v3293_v54 }
 0x38f   : > { %v3361_v39 = vmax.f32 %v3350_v4, 0.0  ;;  %v3316_v34 = vmul.f32 %v3305_v35, %v3256_v40 }
 0x391   : > { %v3372_v38 = vmul.f32 %v3850_v47, %v3361_v39  ;;  %v3328_v25 = vmul.f32 %v5666_v8, %v3316_v34 }
 0x393   : > { %3383 = vst [vmem:[#allocation2 + $0x50] sm:$0xff] %v3372_v38  ;;  %v3339_v21 = vadd.f32 %v3328_v25, %v3281_v22 }
 0x394   : > { %3405 = vst [vmem:[%s5751_s15 + $0x48] sm:$0xff] %v3372_v38 }
 0x395   : > { %v3351_v15 = vadd.f32 %v5687_v14, %v3339_v21 }
 0x397   : > { %v3362_v17 = vmax.f32 %v3351_v15, 0.0 }
 0x399   : > { %v3373_v27 = vmul.f32 %v3851_v3, %v3362_v17 }
 0x39b   : > { %3384 = vst [vmem:[#allocation2 + $0x58] sm:$0xff] %v3373_v27 }
 0x39c   : > { %3406 = vst [vmem:[%s5751_s15 + $0x50] sm:$0xff] %v3373_v27 }
 0x39d   : > { %4089 = shalt.err (!%p4086_p9)
}
 0x39e   : > { %s4153_s3 = smov 128   ;;  %s4154_s24 = smov 8  }
 0x39f   : > { %3626 = dma.vmem_to_hbm [thread:$0]  (%p4308_p4), %s3421_s14, 1408, %s3423_s12, %s3408_s19, %s4153_s3, %s4153_s3, %s4154_s24  }
 0x3a0 PF: > { %s3437_s16 = sand.u32 1, %s4128_s27   ;;  %p6209_p10 = scmp.ge.s32.totalorder %s4140_s30, 2 }
 0x3a1   : > { %s3438_s15 = scalar_lea.sflag [#allocation7], %s3437_s16 }
 0x3a2   : > { %p3652_p11 = pnand %p6209_p10, %p4312_p6 }
 0x3a4   : > { %p3653_p13 = pneg %p3652_p11 }
 0x3a6   : > { %4123 = dma.done.wait (%p3653_p13), %s3438_s15, 1408  }
 0x3a7   : > { %4125 = vsyncadd (%p3653_p13), %s3438_s15, 4294965888  ;;  %p24_p0 = scmp.ge.s32.totalorder %s4286_s20, 4   ;;  %s6210_s27 = smov %s4132_s28 }
 0x3a8   : > { %s6211_s28 = smov %s4136_s29  ;;  %s6212_s29 = smov %s4297_s18 }
 0x3a9   : > { %s6213_s30 = smov %s4286_s20  ;;  %26 = sbr.rel (!%p24_p0) target bundleno = 13 (0xd), region = 142 }
 0x3ae   :  { %3444 = vsyncpa [#allocation6], 1 }
 0x3af   :  { %3446 = vsyncpa [#allocation6 + $0x1], 1 }
 0x3b0   :  { %3447 = vsyncpa [#allocation9], 1 }
 0x3b1   :  { %3448 = vsyncpa [#allocation12], 1 }
 0x3b2   :  { %3449 = vsyncpa [#allocation15], 1 }
 0x3b3   :  { %3450 = vsyncpa [#allocation7], 1 }
 0x3b4   :  { %3452 = vsyncpa [#allocation7 + $0x1], 1 }

</bundles_post_ra>
